<compile_context>
chip_gen: v7x
topology: tpu7x:2x2x1
jax: 0.10.0
libtpu: 0.0.40
codegen_flags: <defaults>
</compile_context>

<pallas_src>
import functools

import jax
import jax.numpy as jnp
from jax import lax
from jax.experimental import pallas as pl
from jax.experimental.pallas import tpu as pltpu


def _round_up(x, m):
    return ((x + m - 1) // m) * m


# ----------------------------- Pallas kernel --------------------------------
def _lstm_layer_kernel(blk_ref,                         # SMEM (n_bblk, n_tblk) i32
                       x_ref, m_ref, h0_ref, c0_ref, wih_ref, whh_ref, bias_ref,
                       out_ref, hn_ref, cn_ref,
                       gx_sc, h_sc, c_sc,
                       *, hidden_pad, steps_per_block, nl_bf16):
    """One grid step == `steps_per_block` time steps of the masked LSTM.

    x_ref   : (Tb, Bb, D_in)      layer input tile
    m_ref   : (Tb, Bb, 1)   f32   sequence mask tile
    wih_ref : (D_in, 4*Hp)  bf16  input weights (transposed, gate order i,f,o,g)
    whh_ref : (Hp, 4*Hp)    bf16  recurrent weights (transposed, padded)
    bias_ref: (1, 4*Hp)     f32   b_ih + b_hh (reordered, padded)
    """
    Hp = hidden_pad
    Tb = steps_per_block
    b_blk = pl.program_id(0)
    t_blk = pl.program_id(1)

    # Initialize carried state at the first time block (per batch block).
    @pl.when(t_blk == 0)
    def _():
        h_sc[...] = h0_ref[...].astype(jnp.float32)
        c_sc[...] = c0_ref[...].astype(jnp.float32)

    active = blk_ref[b_blk, t_blk] > 0

    @pl.when(active)
    def _():
        Bb = x_ref.shape[1]
        d_in = x_ref.shape[2]

        # Fused input projection for the whole time block: one large bf16 MXU
        # matmul (off the serial h-chain), staged in a VMEM scratch.
        x2d = x_ref[...].astype(jnp.bfloat16).reshape(Tb * Bb, d_in)
        gx2d = jnp.dot(x2d, wih_ref[...], preferred_element_type=jnp.float32)
        gx_sc[...] = (gx2d + bias_ref[...]).reshape(Tb, Bb, 4 * Hp)

        # Hoist the recurrent weight load out of the unrolled step loop.
        whh = whh_ref[...]

        def step(tt, carry):
            h_prev, c_prev = carry                       # (Bb, Hp) f32
            # Only this small recurrent matmul lives on the serial critical path.
            gates = gx_sc[tt] + jnp.dot(h_prev.astype(jnp.bfloat16), whh,
                                        preferred_element_type=jnp.float32)

            g_nl = gates.astype(jnp.bfloat16) if nl_bf16 else gates
            # Gate order (i, f, o, g): one contiguous sigmoid stream + one tanh.
            sig = jax.nn.sigmoid(g_nl[:, :3 * Hp]).astype(jnp.float32)
            i_g = sig[:, 0 * Hp:1 * Hp]
            f_g = sig[:, 1 * Hp:2 * Hp]
            o_g = sig[:, 2 * Hp:3 * Hp]
            g_g = jnp.tanh(g_nl[:, 3 * Hp:4 * Hp]).astype(jnp.float32)

            c_new = f_g * c_prev + i_g * g_g
            h_new = o_g * jnp.tanh(c_new)

            # Masking: keep previous state where mask == 0 (single vsel;
            # assumes 0/1 mask like the original module's usage).
            keep = m_ref[tt] > 0.5
            h_next = jnp.where(keep, h_new, h_prev)
            c_next = jnp.where(keep, c_new, c_prev)

            out_ref[tt] = h_next.astype(out_ref.dtype)
            return h_next, c_next

        h_fin, c_fin = lax.fori_loop(0, Tb, step, (h_sc[...], c_sc[...]),
                                     unroll=True)
        h_sc[...] = h_fin
        c_sc[...] = c_fin

    @pl.when(jnp.logical_not(active))
    def _():
        # Every mask entry in this (batch block, time block) tile is 0: state is
        # frozen and every step's output equals the carried hidden state.
        h_frozen = h_sc[...].astype(out_ref.dtype)
        for tt in range(Tb):
            out_ref[tt] = h_frozen

    # Final hidden/cell state after the last time block.
    @pl.when(t_blk == pl.num_programs(1) - 1)
    def _():
        hn_ref[...] = h_sc[...].astype(hn_ref.dtype)
        cn_ref[...] = c_sc[...].astype(cn_ref.dtype)


# ------------------------------ layer wrapper --------------------------------
def _prepare_layer_weights(w_ih, w_hh, b_ih, b_hh, H, Hp):
    """Reorder PyTorch gate order (i,f,g,o) -> (i,f,o,g), zero-pad each gate
    block to Hp, pad the recurrent input dim to Hp, transpose, cast to bf16."""
    w_ih = jnp.asarray(w_ih, jnp.float32)
    w_hh = jnp.asarray(w_hh, jnp.float32)
    b = jnp.asarray(b_ih, jnp.float32) + jnp.asarray(b_hh, jnp.float32)

    def pad_rows(a):
        return jnp.pad(a, [(0, Hp - H)] + [(0, 0)] * (a.ndim - 1))

    def reorder(a):
        i_, f_, g_, o_ = [a[k * H:(k + 1) * H] for k in range(4)]
        return jnp.concatenate(
            [pad_rows(i_), pad_rows(f_), pad_rows(o_), pad_rows(g_)], axis=0)

    wih_r = reorder(w_ih)                                    # (4Hp, D_in)
    whh_r = jnp.pad(reorder(w_hh), ((0, 0), (0, Hp - H)))    # (4Hp, Hp)
    bias = reorder(b).reshape(1, 4 * Hp)                     # (1, 4Hp) f32

    wih_t = wih_r.T.astype(jnp.bfloat16)                     # (D_in, 4Hp)
    whh_t = whh_r.T.astype(jnp.bfloat16)                     # (Hp, 4Hp)
    return wih_t, whh_t, bias


def lstm_layer_pallas(x, mask, h0, c0, w_ih, w_hh, b_ih, b_hh, *,
                      time_block=16, batch_block=None, out_dtype=jnp.float32,
                      nl_bf16=False, vmem_limit_bytes=None):
    """Runs one masked LSTM layer over the full sequence.

    x: (T,B,D_in), mask: (T,B), h0/c0: (B,H) f32,
    w_ih: (4H,D_in), w_hh: (4H,H), b_ih/b_hh: (4H,)
    Returns (output (T,B,H) out_dtype, h_n (B,H) f32, c_n (B,H) f32).
    """
    T, B, D_in = x.shape
    H = w_hh.shape[-1]
    Hp = _round_up(H, 128)              # lane-dense hidden size
    Bp = _round_up(B, 8)                # sublane-aligned batch
    Tp = _round_up(T, time_block)

    if batch_block is None:
        Bb = Bp                         # no batch split on single-TC chips
    else:
        Bb = _round_up(min(batch_block, Bp), 8)
        if Bp % Bb != 0:
            Bb = Bp

    wih_t, whh_t, bias = _prepare_layer_weights(w_ih, w_hh, b_ih, b_hh, H, Hp)

    # Zero-pad inputs (padded steps have mask 0 -> state frozen; padded hidden
    # lanes stay exactly 0 because their weights/biases/initial state are 0).
    x_p = jnp.zeros((Tp, Bp, D_in), x.dtype).at[:T, :B].set(x)
    m_p = jnp.zeros((Tp, Bp, 1), jnp.float32).at[:T, :B, 0].set(
        mask.astype(jnp.float32))
    h0_p = jnp.zeros((Bp, Hp), jnp.float32).at[:B, :H].set(h0.astype(jnp.float32))
    c0_p = jnp.zeros((Bp, Hp), jnp.float32).at[:B, :H].set(c0.astype(jnp.float32))

    n_tblk = Tp // time_block
    n_bblk = Bp // Bb

    # Scalar-prefetch activity table: 1 iff any mask entry in the
    # (batch block, time block) tile is nonzero. All-zero tiles are skipped.
    blk_active = (m_p[:, :, 0]
                  .reshape(n_tblk, time_block, n_bblk, Bb)
                  .max(axis=(1, 3)) > 0).astype(jnp.int32).T    # (n_bblk, n_tblk)

    kernel = functools.partial(_lstm_layer_kernel, hidden_pad=Hp,
                               steps_per_block=time_block, nl_bf16=nl_bf16)

    out_shapes = (
        jax.ShapeDtypeStruct((Tp, Bp, Hp), out_dtype),     # per-step outputs
        jax.ShapeDtypeStruct((Bp, Hp), jnp.float32),       # h_n
        jax.ShapeDtypeStruct((Bp, Hp), jnp.float32),       # c_n
    )

    grid = (n_bblk, n_tblk)                                # (batch, time)

    grid_spec = pltpu.PrefetchScalarGridSpec(
        num_scalar_prefetch=1,
        grid=grid,
        in_specs=[
            pl.BlockSpec((time_block, Bb, D_in), lambda b, t, blk: (t, b, 0)),   # x
            pl.BlockSpec((time_block, Bb, 1), lambda b, t, blk: (t, b, 0)),      # mask
            pl.BlockSpec((Bb, Hp), lambda b, t, blk: (b, 0)),                    # h0
            pl.BlockSpec((Bb, Hp), lambda b, t, blk: (b, 0)),                    # c0
            pl.BlockSpec((D_in, 4 * Hp), lambda b, t, blk: (0, 0)),              # W_ih^T
            pl.BlockSpec((Hp, 4 * Hp), lambda b, t, blk: (0, 0)),                # W_hh^T
            pl.BlockSpec((1, 4 * Hp), lambda b, t, blk: (0, 0)),                 # bias
        ],
        out_specs=[
            pl.BlockSpec((time_block, Bb, Hp), lambda b, t, blk: (t, b, 0)),     # out
            pl.BlockSpec((Bb, Hp), lambda b, t, blk: (b, 0)),                    # h_n
            pl.BlockSpec((Bb, Hp), lambda b, t, blk: (b, 0)),                    # c_n
        ],
        scratch_shapes=[
            pltpu.VMEM((time_block, Bb, 4 * Hp), jnp.float32),   # gx staging
            pltpu.VMEM((Bb, Hp), jnp.float32),                   # h carry
            pltpu.VMEM((Bb, Hp), jnp.float32),                   # c carry
        ],
    )

    out_p, hn_p, cn_p = pl.pallas_call(
        kernel,
        out_shape=out_shapes,
        grid_spec=grid_spec,
        compiler_params=pltpu.CompilerParams(
            # batch axis independent (usable by v7x megacore); time is serial.
            dimension_semantics=("parallel", "arbitrary"),
            vmem_limit_bytes=vmem_limit_bytes),
    )(blk_active, x_p, m_p, h0_p, c0_p, wih_t, whh_t, bias)

    return out_p[:T, :B, :H], hn_p[:B, :H], cn_p[:B, :H]


# --------------------------- multi-layer forward -----------------------------
def custom_rnn_forward(params, input_, mask, hx=None, *,
                       time_block=16, batch_block=None, nl_bf16=False,
                       vmem_limit_bytes=None):
    """JAX/Pallas equivalent of CustomRNN.forward (batch_first=False,
    dropout=0, reset_indices=None, return_c=False).

    input_: (T, B, input_size), mask: (T, B)
    Returns (output (T,B,H), (h_n (L,B,H), c_n (L,B,H))).
    Note: like the PyTorch module, all layers share the same initial (h0, c0).
    """
    T, B, _ = input_.shape
    H = params[0]["w_hh"].shape[-1]
    num_layers = len(params)

    if hx is None:
        zeros = jnp.zeros((B, H), jnp.float32)
        hx = (zeros, zeros)

    h_n, c_n = [], []
    layer_in = input_
    out = None
    for li, p in enumerate(params):
        last = li == num_layers - 1
        out, h_last, c_last = lstm_layer_pallas(
            layer_in, mask, hx[0], hx[1],
            p["w_ih"], p["w_hh"], p["b_ih"], p["b_hh"],
            time_block=time_block, batch_block=batch_block,
            # Intermediate layers stream bf16 (next layer casts to bf16 for its
            # input matmul anyway); final layer keeps f32 for API parity.
            out_dtype=jnp.float32 if last else jnp.bfloat16,
            nl_bf16=nl_bf16,
            vmem_limit_bytes=vmem_limit_bytes)
        layer_in = out          # dropout=0 -> identity
        h_n.append(h_last)
        c_n.append(c_last)

    return out, (jnp.stack(h_n, 0), jnp.stack(c_n, 0))


# ---------------- pure-JAX reference (for correctness check) ----------------
def _ref_forward(params, input_, mask, hx=None, matmul_dtype=jnp.bfloat16):
    """Reference with the same matmul precision as the kernel (bf16 operands,
    f32 accumulation); gate/state math in f32."""
    T, B, _ = input_.shape
    H = params[0]["w_hh"].shape[-1]
    if hx is None:
        zeros = jnp.zeros((B, H), jnp.float32)
        hx = (zeros, zeros)

    def mm(a, b):
        return jnp.dot(a.astype(matmul_dtype), b.astype(matmul_dtype),
                       preferred_element_type=jnp.float32)

    def cell(p, x, h, c):
        gates = (mm(x, p["w_ih"].T) + (p["b_ih"] + p["b_hh"])
                 + mm(h, p["w_hh"].T))
        i, f, g, o = jnp.split(gates, 4, axis=-1)
        i, f, o = jax.nn.sigmoid(i), jax.nn.sigmoid(f), jax.nn.sigmoid(o)
        g = jnp.tanh(g)
        c_new = f * c + i * g
        h_new = o * jnp.tanh(c_new)
        return h_new, c_new

    h_n, c_n = [], []
    layer_in = input_
    for p in params:
        h, c = hx
        outs = []
        for t in range(T):
            h_new, c_new = cell(p, layer_in[t].astype(jnp.float32), h, c)
            m = mask[t][:, None]
            h = h_new * m + h * (1.0 - m)
            c = c_new * m + c * (1.0 - m)
            outs.append(h)
        layer_in = jnp.stack(outs, 0)
        h_n.append(h)
        c_n.append(c)
    return layer_in, (jnp.stack(h_n, 0), jnp.stack(c_n, 0))


def init_params(key, input_size, hidden_size, num_layers):
    params = []
    stdv = 1.0 / jnp.sqrt(hidden_size)
    for layer in range(num_layers):
        d_in = input_size if layer == 0 else hidden_size
        key, k1, k2, k3, k4 = jax.random.split(key, 5)
        params.append({
            "w_ih": jax.random.uniform(k1, (4 * hidden_size, d_in),
                                       jnp.float32, -stdv, stdv),
            "w_hh": jax.random.uniform(k2, (4 * hidden_size, hidden_size),
                                       jnp.float32, -stdv, stdv),
            "b_ih": jax.random.uniform(k3, (4 * hidden_size,),
                                       jnp.float32, -stdv, stdv),
            "b_hh": jax.random.uniform(k4, (4 * hidden_size,),
                                       jnp.float32, -stdv, stdv),
        })
    return params


if __name__ == "__main__":
    T, B, D_IN, H, L = 24, 16, 32, 32, 2

    key = jax.random.PRNGKey(0)
    k_p, k_x, k_len = jax.random.split(key, 3)

    params = init_params(k_p, D_IN, H, L)
    x = jax.random.normal(k_x, (T, B, D_IN), jnp.float32)

    # Variable-length mask: lengths in [1, T].
    lengths = jax.random.randint(k_len, (B,), 1, T + 1)
    mask = (jnp.arange(T)[:, None] < lengths[None, :]).astype(jnp.float32)

    out, (h_n, c_n) = custom_rnn_forward(params, x, mask, time_block=16)
    out = jax.block_until_ready(out)
    h_n = jax.block_until_ready(h_n)
    c_n = jax.block_until_ready(c_n)

    assert out.shape == (T, B, H)
    assert h_n.shape == (L, B, H) and c_n.shape == (L, B, H)

    # Verify against a matched-precision pure-JAX reference.
    out_ref, (h_ref, c_ref) = _ref_forward(params, x, mask)
    assert jnp.allclose(out, out_ref, atol=5e-3, rtol=5e-3)
    assert jnp.allclose(h_n, h_ref, atol=5e-3, rtol=5e-3)
    assert jnp.allclose(c_n, c_ref, atol=5e-3, rtol=5e-3)

    print("KERNEL_OK")
</pallas_src>

<mosaic_0001>
module attributes {stable_mosaic.version = 11 : i64} {
  func.func @_lstm_layer_kernel(%arg0: i32, %arg1: i32, %arg2: memref<1x2xi32, #tpu.memory_space<smem>>, %arg3: memref<16x16x32xf32, #tpu.memory_space<vmem>>, %arg4: memref<16x16x1xf32, #tpu.memory_space<vmem>>, %arg5: memref<16x128xf32, #tpu.memory_space<vmem>>, %arg6: memref<16x128xf32, #tpu.memory_space<vmem>>, %arg7: memref<32x512xbf16, #tpu.memory_space<vmem>>, %arg8: memref<128x512xbf16, #tpu.memory_space<vmem>>, %arg9: memref<1x512xf32, #tpu.memory_space<vmem>>, %arg10: memref<16x16x128xbf16, #tpu.memory_space<vmem>>, %arg11: memref<16x128xf32, #tpu.memory_space<vmem>>, %arg12: memref<16x128xf32, #tpu.memory_space<vmem>>, %arg13: memref<16x16x512xf32, #tpu.memory_space<vmem>>, %arg14: memref<16x128xf32, #tpu.memory_space<vmem>>, %arg15: memref<16x128xf32, #tpu.memory_space<vmem>>) attributes {dimension_semantics = [#tpu.dimension_semantics<parallel>, #tpu.dimension_semantics<arbitrary>], iteration_bounds = array<i64: 1, 2>, scalar_prefetch = 1 : i64, scratch_operands = 3 : i64, tpu.core_type = #tpu.core_type<tc>, window_params = [{transform_indices = @transform_0, window_bounds = array<i64: 16, 16, 32>}, {transform_indices = @transform_1, window_bounds = array<i64: 16, 16, 1>}, {transform_indices = @transform_2, window_bounds = array<i64: 16, 128>}, {transform_indices = @transform_3, window_bounds = array<i64: 16, 128>}, {pipeline_mode = #tpu.pipeline_mode<synchronous>, transform_indices = @transform_4, window_bounds = array<i64: 32, 512>}, {pipeline_mode = #tpu.pipeline_mode<synchronous>, transform_indices = @transform_5, window_bounds = array<i64: 128, 512>}, {pipeline_mode = #tpu.pipeline_mode<synchronous>, transform_indices = @transform_6, window_bounds = array<i64: 1, 512>}, {transform_indices = @transform_7, window_bounds = array<i64: 16, 16, 128>}, {transform_indices = @transform_8, window_bounds = array<i64: 16, 128>}, {transform_indices = @transform_9, window_bounds = array<i64: 16, 128>}]} {
    %c0_i32 = arith.constant 0 : i32
    %0 = arith.cmpi eq, %arg1, %c0_i32 : i32
    %1 = arith.extui %0 : i1 to i32
    %c0_i32_0 = arith.constant 0 : i32
    %2 = arith.cmpi ne, %1, %c0_i32_0 : i32
    scf.if %2 {
      %c0 = arith.constant 0 : index
      %c0_5 = arith.constant 0 : index
      %15 = vector.load %arg5[%c0, %c0_5] : memref<16x128xf32, #tpu.memory_space<vmem>>, vector<16x128xf32>
      %c0_6 = arith.constant 0 : index
      %c0_7 = arith.constant 0 : index
      %16 = vector.load %arg14[%c0_6, %c0_7] : memref<16x128xf32, #tpu.memory_space<vmem>>, vector<16x128xf32>
      tpu.vector_store %arg14[%c0_6, %c0_7], %15 {strides = array<i32>} : memref<16x128xf32, #tpu.memory_space<vmem>>, vector<16x128xf32>,
      %c0_8 = arith.constant 0 : index
      %c0_9 = arith.constant 0 : index
      %17 = vector.load %arg6[%c0_8, %c0_9] : memref<16x128xf32, #tpu.memory_space<vmem>>, vector<16x128xf32>
      %c0_10 = arith.constant 0 : index
      %c0_11 = arith.constant 0 : index
      %18 = vector.load %arg15[%c0_10, %c0_11] : memref<16x128xf32, #tpu.memory_space<vmem>>, vector<16x128xf32>
      tpu.vector_store %arg15[%c0_10, %c0_11], %17 {strides = array<i32>} : memref<16x128xf32, #tpu.memory_space<vmem>>, vector<16x128xf32>,
    } else {
    }
    %3 = arith.index_cast %arg0 : i32 to index
    %4 = arith.index_cast %arg1 : i32 to index
    %5 = memref.load %arg2[%3, %4] : memref<1x2xi32, #tpu.memory_space<smem>>
    %c0_i32_1 = arith.constant 0 : i32
    %6 = arith.cmpi sgt, %5, %c0_i32_1 : i32
    %7 = arith.extui %6 : i1 to i32
    %c0_i32_2 = arith.constant 0 : i32
    %8 = arith.cmpi ne, %7, %c0_i32_2 : i32
    scf.if %8 {
      %c0 = arith.constant 0 : index
      %c0_5 = arith.constant 0 : index
      %c0_6 = arith.constant 0 : index
      %15 = vector.load %arg3[%c0, %c0_5, %c0_6] : memref<16x16x32xf32, #tpu.memory_space<vmem>>, vector<16x16x32xf32>
      %16 = arith.truncf %15 : vector<16x16x32xf32> to vector<16x16x32xbf16>
      %17 = vector.shape_cast %16 : vector<16x16x32xbf16> to vector<256x32xbf16>
      %c0_7 = arith.constant 0 : index
      %c0_8 = arith.constant 0 : index
      %18 = vector.load %arg7[%c0_7, %c0_8] : memref<32x512xbf16, #tpu.memory_space<vmem>>, vector<32x512xbf16>
      %cst = arith.constant dense<0.000000e+00> : vector<256x512xf32>
      %19 = tpu.matmul %17, %18, %cst {dimension_numbers = #tpu.dot_dimension_numbers<[1], [0], [0], [1], [0, 0, 1, 1], [], []>} : vector<256x32xbf16>, vector<32x512xbf16>, vector<256x512xf32> -> vector<256x512xf32>
      %c0_9 = arith.constant 0 : index
      %c0_10 = arith.constant 0 : index
      %20 = vector.load %arg9[%c0_9, %c0_10] : memref<1x512xf32, #tpu.memory_space<vmem>>, vector<1x512xf32>
      %21 = vector.broadcast %20 : vector<1x512xf32> to vector<256x512xf32>
      %22 = arith.addf %19, %21 : vector<256x512xf32>
      %23 = vector.shape_cast %22 : vector<256x512xf32> to vector<16x16x512xf32>
      %c0_11 = arith.constant 0 : index
      %c0_12 = arith.constant 0 : index
      %c0_13 = arith.constant 0 : index
      %24 = vector.load %arg13[%c0_11, %c0_12, %c0_13] : memref<16x16x512xf32, #tpu.memory_space<vmem>>, vector<16x16x512xf32>
      tpu.vector_store %arg13[%c0_11, %c0_12, %c0_13], %23 {strides = array<i32>} : memref<16x16x512xf32, #tpu.memory_space<vmem>>, vector<16x16x512xf32>,
      %c0_14 = arith.constant 0 : index
      %c0_15 = arith.constant 0 : index
      %25 = vector.load %arg8[%c0_14, %c0_15] : memref<128x512xbf16, #tpu.memory_space<vmem>>, vector<128x512xbf16>
      %c0_16 = arith.constant 0 : index
      %c0_17 = arith.constant 0 : index
      %26 = vector.load %arg14[%c0_16, %c0_17] : memref<16x128xf32, #tpu.memory_space<vmem>>, vector<16x128xf32>
      %c0_18 = arith.constant 0 : index
      %c0_19 = arith.constant 0 : index
      %27 = vector.load %arg15[%c0_18, %c0_19] : memref<16x128xf32, #tpu.memory_space<vmem>>, vector<16x128xf32>
      %c0_i32_20 = arith.constant 0 : i32
      %28 = arith.index_cast %c0_i32_20 : i32 to index
      %c0_21 = arith.constant 0 : index
      %c0_22 = arith.constant 0 : index
      %29 = vector.load %arg13[%28, %c0_21, %c0_22] : memref<16x16x512xf32, #tpu.memory_space<vmem>>, vector<1x16x512xf32>
      %30 = vector.shape_cast %29 : vector<1x16x512xf32> to vector<16x512xf32>
      %31 = arith.truncf %26 : vector<16x128xf32> to vector<16x128xbf16>
      %cst_23 = arith.constant dense<0.000000e+00> : vector<16x512xf32>
      %32 = tpu.matmul %31, %25, %cst_23 {dimension_numbers = #tpu.dot_dimension_numbers<[1], [0], [0], [1], [0, 0, 1, 1], [], []>} : vector<16x128xbf16>, vector<128x512xbf16>, vector<16x512xf32> -> vector<16x512xf32>
      %33 = arith.addf %30, %32 : vector<16x512xf32>
      %34 = vector.extract_strided_slice %33 {offsets = [0, 0], sizes = [16, 384], strides = [1, 1]} : vector<16x512xf32> to vector<16x384xf32>
      %35 = arith.negf %34 : vector<16x384xf32>
      %36 = math.exp %35 : vector<16x384xf32>
      %cst_24 = arith.constant 1.000000e+00 : f32
      %37 = vector.broadcast %cst_24 : f32 to vector<16x384xf32>
      %38 = arith.addf %37, %36 : vector<16x384xf32>
      %39 = arith.divf %37, %38 : vector<16x384xf32>
      %40 = vector.extract_strided_slice %39 {offsets = [0, 0], sizes = [16, 128], strides = [1, 1]} : vector<16x384xf32> to vector<16x128xf32>
      %41 = vector.extract_strided_slice %39 {offsets = [0, 128], sizes = [16, 128], strides = [1, 1]} : vector<16x384xf32> to vector<16x128xf32>
      %42 = vector.extract_strided_slice %39 {offsets = [0, 256], sizes = [16, 128], strides = [1, 1]} : vector<16x384xf32> to vector<16x128xf32>
      %43 = vector.extract_strided_slice %33 {offsets = [0, 384], sizes = [16, 128], strides = [1, 1]} : vector<16x512xf32> to vector<16x128xf32>
      %44 = math.tanh %43 : vector<16x128xf32>
      %45 = arith.mulf %41, %27 : vector<16x128xf32>
      %46 = arith.mulf %40, %44 : vector<16x128xf32>
      %47 = arith.addf %45, %46 : vector<16x128xf32>
      %48 = math.tanh %47 : vector<16x128xf32>
      %49 = arith.mulf %42, %48 : vector<16x128xf32>
      %50 = arith.index_cast %c0_i32_20 : i32 to index
      %c0_25 = arith.constant 0 : index
      %c0_26 = arith.constant 0 : index
      %51 = vector.load %arg4[%50, %c0_25, %c0_26] : memref<16x16x1xf32, #tpu.memory_space<vmem>>, vector<1x16x1xf32>
      %52 = vector.shape_cast %51 : vector<1x16x1xf32> to vector<16x1xf32>
      %cst_27 = arith.constant 5.000000e-01 : f32
      %53 = vector.broadcast %cst_27 : f32 to vector<16x1xf32>
      %54 = arith.cmpf ogt, %52, %53 : vector<16x1xf32>
      %55 = vector.shape_cast %54 : vector<16x1xi1> to vector<16x1xi1>
      %56 = vector.broadcast %55 : vector<16x1xi1> to vector<16x128xi1>
      %57 = arith.select %56, %49, %26 : vector<16x128xi1>, vector<16x128xf32>
      %58 = vector.shape_cast %54 : vector<16x1xi1> to vector<16x1xi1>
      %59 = vector.broadcast %58 : vector<16x1xi1> to vector<16x128xi1>
      %60 = arith.select %59, %47, %27 : vector<16x128xi1>, vector<16x128xf32>
      %61 = arith.truncf %57 : vector<16x128xf32> to vector<16x128xbf16>
      %62 = arith.index_cast %c0_i32_20 : i32 to index
      %c0_28 = arith.constant 0 : index
      %c0_29 = arith.constant 0 : index
      %63 = vector.load %arg10[%62, %c0_28, %c0_29] : memref<16x16x128xbf16, #tpu.memory_space<vmem>>, vector<1x16x128xbf16>
      %64 = vector.shape_cast %63 : vector<1x16x128xbf16> to vector<16x128xbf16>
      %65 = vector.shape_cast %61 : vector<16x128xbf16> to vector<1x16x128xbf16>
      tpu.vector_store %arg10[%62, %c0_28, %c0_29], %65 {strides = array<i32>} : memref<16x16x128xbf16, #tpu.memory_space<vmem>>, vector<1x16x128xbf16>,
      %c1_i32_30 = arith.constant 1 : i32
      %66 = arith.index_cast %c1_i32_30 : i32 to index
      %c0_31 = arith.constant 0 : index
      %c0_32 = arith.constant 0 : index
      %67 = vector.load %arg13[%66, %c0_31, %c0_32] : memref<16x16x512xf32, #tpu.memory_space<vmem>>, vector<1x16x512xf32>
      %68 = vector.shape_cast %67 : vector<1x16x512xf32> to vector<16x512xf32>
      %69 = arith.truncf %57 : vector<16x128xf32> to vector<16x128xbf16>
      %cst_33 = arith.constant dense<0.000000e+00> : vector<16x512xf32>
      %70 = tpu.matmul %69, %25, %cst_33 {dimension_numbers = #tpu.dot_dimension_numbers<[1], [0], [0], [1], [0, 0, 1, 1], [], []>} : vector<16x128xbf16>, vector<128x512xbf16>, vector<16x512xf32> -> vector<16x512xf32>
      %71 = arith.addf %68, %70 : vector<16x512xf32>
      %72 = vector.extract_strided_slice %71 {offsets = [0, 0], sizes = [16, 384], strides = [1, 1]} : vector<16x512xf32> to vector<16x384xf32>
      %73 = arith.negf %72 : vector<16x384xf32>
      %74 = math.exp %73 : vector<16x384xf32>
      %cst_34 = arith.constant 1.000000e+00 : f32
      %75 = vector.broadcast %cst_34 : f32 to vector<16x384xf32>
      %76 = arith.addf %75, %74 : vector<16x384xf32>
      %77 = arith.divf %75, %76 : vector<16x384xf32>
      %78 = vector.extract_strided_slice %77 {offsets = [0, 0], sizes = [16, 128], strides = [1, 1]} : vector<16x384xf32> to vector<16x128xf32>
      %79 = vector.extract_strided_slice %77 {offsets = [0, 128], sizes = [16, 128], strides = [1, 1]} : vector<16x384xf32> to vector<16x128xf32>
      %80 = vector.extract_strided_slice %77 {offsets = [0, 256], sizes = [16, 128], strides = [1, 1]} : vector<16x384xf32> to vector<16x128xf32>
      %81 = vector.extract_strided_slice %71 {offsets = [0, 384], sizes = [16, 128], strides = [1, 1]} : vector<16x512xf32> to vector<16x128xf32>
      %82 = math.tanh %81 : vector<16x128xf32>
      %83 = arith.mulf %79, %60 : vector<16x128xf32>
      %84 = arith.mulf %78, %82 : vector<16x128xf32>
      %85 = arith.addf %83, %84 : vector<16x128xf32>
      %86 = math.tanh %85 : vector<16x128xf32>
      %87 = arith.mulf %80, %86 : vector<16x128xf32>
      %88 = arith.index_cast %c1_i32_30 : i32 to index
      %c0_35 = arith.constant 0 : index
      %c0_36 = arith.constant 0 : index
      %89 = vector.load %arg4[%88, %c0_35, %c0_36] : memref<16x16x1xf32, #tpu.memory_space<vmem>>, vector<1x16x1xf32>
      %90 = vector.shape_cast %89 : vector<1x16x1xf32> to vector<16x1xf32>
      %cst_37 = arith.constant 5.000000e-01 : f32
      %91 = vector.broadcast %cst_37 : f32 to vector<16x1xf32>
      %92 = arith.cmpf ogt, %90, %91 : vector<16x1xf32>
      %93 = vector.shape_cast %92 : vector<16x1xi1> to vector<16x1xi1>
      %94 = vector.broadcast %93 : vector<16x1xi1> to vector<16x128xi1>
      %95 = arith.select %94, %87, %57 : vector<16x128xi1>, vector<16x128xf32>
      %96 = vector.shape_cast %92 : vector<16x1xi1> to vector<16x1xi1>
      %97 = vector.broadcast %96 : vector<16x1xi1> to vector<16x128xi1>
      %98 = arith.select %97, %85, %60 : vector<16x128xi1>, vector<16x128xf32>
      %99 = arith.truncf %95 : vector<16x128xf32> to vector<16x128xbf16>
      %100 = arith.index_cast %c1_i32_30 : i32 to index
      %c0_38 = arith.constant 0 : index
      %c0_39 = arith.constant 0 : index
      %101 = vector.load %arg10[%100, %c0_38, %c0_39] : memref<16x16x128xbf16, #tpu.memory_space<vmem>>, vector<1x16x128xbf16>
      %102 = vector.shape_cast %101 : vector<1x16x128xbf16> to vector<16x128xbf16>
      %103 = vector.shape_cast %99 : vector<16x128xbf16> to vector<1x16x128xbf16>
      tpu.vector_store %arg10[%100, %c0_38, %c0_39], %103 {strides = array<i32>} : memref<16x16x128xbf16, #tpu.memory_space<vmem>>, vector<1x16x128xbf16>,
      %c2_i32 = arith.constant 2 : i32
      %104 = arith.index_cast %c2_i32 : i32 to index
      %c0_40 = arith.constant 0 : index
      %c0_41 = arith.constant 0 : index
      %105 = vector.load %arg13[%104, %c0_40, %c0_41] : memref<16x16x512xf32, #tpu.memory_space<vmem>>, vector<1x16x512xf32>
      %106 = vector.shape_cast %105 : vector<1x16x512xf32> to vector<16x512xf32>
      %107 = arith.truncf %95 : vector<16x128xf32> to vector<16x128xbf16>
      %cst_42 = arith.constant dense<0.000000e+00> : vector<16x512xf32>
      %108 = tpu.matmul %107, %25, %cst_42 {dimension_numbers = #tpu.dot_dimension_numbers<[1], [0], [0], [1], [0, 0, 1, 1], [], []>} : vector<16x128xbf16>, vector<128x512xbf16>, vector<16x512xf32> -> vector<16x512xf32>
      %109 = arith.addf %106, %108 : vector<16x512xf32>
      %110 = vector.extract_strided_slice %109 {offsets = [0, 0], sizes = [16, 384], strides = [1, 1]} : vector<16x512xf32> to vector<16x384xf32>
      %111 = arith.negf %110 : vector<16x384xf32>
      %112 = math.exp %111 : vector<16x384xf32>
      %cst_43 = arith.constant 1.000000e+00 : f32
      %113 = vector.broadcast %cst_43 : f32 to vector<16x384xf32>
      %114 = arith.addf %113, %112 : vector<16x384xf32>
      %115 = arith.divf %113, %114 : vector<16x384xf32>
      %116 = vector.extract_strided_slice %115 {offsets = [0, 0], sizes = [16, 128], strides = [1, 1]} : vector<16x384xf32> to vector<16x128xf32>
      %117 = vector.extract_strided_slice %115 {offsets = [0, 128], sizes = [16, 128], strides = [1, 1]} : vector<16x384xf32> to vector<16x128xf32>
      %118 = vector.extract_strided_slice %115 {offsets = [0, 256], sizes = [16, 128], strides = [1, 1]} : vector<16x384xf32> to vector<16x128xf32>
      %119 = vector.extract_strided_slice %109 {offsets = [0, 384], sizes = [16, 128], strides = [1, 1]} : vector<16x512xf32> to vector<16x128xf32>
      %120 = math.tanh %119 : vector<16x128xf32>
      %121 = arith.mulf %117, %98 : vector<16x128xf32>
      %122 = arith.mulf %116, %120 : vector<16x128xf32>
      %123 = arith.addf %121, %122 : vector<16x128xf32>
      %124 = math.tanh %123 : vector<16x128xf32>
      %125 = arith.mulf %118, %124 : vector<16x128xf32>
      %126 = arith.index_cast %c2_i32 : i32 to index
      %c0_44 = arith.constant 0 : index
      %c0_45 = arith.constant 0 : index
      %127 = vector.load %arg4[%126, %c0_44, %c0_45] : memref<16x16x1xf32, #tpu.memory_space<vmem>>, vector<1x16x1xf32>
      %128 = vector.shape_cast %127 : vector<1x16x1xf32> to vector<16x1xf32>
      %cst_46 = arith.constant 5.000000e-01 : f32
      %129 = vector.broadcast %cst_46 : f32 to vector<16x1xf32>
      %130 = arith.cmpf ogt, %128, %129 : vector<16x1xf32>
      %131 = vector.shape_cast %130 : vector<16x1xi1> to vector<16x1xi1>
      %132 = vector.broadcast %131 : vector<16x1xi1> to vector<16x128xi1>
      %133 = arith.select %132, %125, %95 : vector<16x128xi1>, vector<16x128xf32>
      %134 = vector.shape_cast %130 : vector<16x1xi1> to vector<16x1xi1>
      %135 = vector.broadcast %134 : vector<16x1xi1> to vector<16x128xi1>
      %136 = arith.select %135, %123, %98 : vector<16x128xi1>, vector<16x128xf32>
      %137 = arith.truncf %133 : vector<16x128xf32> to vector<16x128xbf16>
      %138 = arith.index_cast %c2_i32 : i32 to index
      %c0_47 = arith.constant 0 : index
      %c0_48 = arith.constant 0 : index
      %139 = vector.load %arg10[%138, %c0_47, %c0_48] : memref<16x16x128xbf16, #tpu.memory_space<vmem>>, vector<1x16x128xbf16>
      %140 = vector.shape_cast %139 : vector<1x16x128xbf16> to vector<16x128xbf16>
      %141 = vector.shape_cast %137 : vector<16x128xbf16> to vector<1x16x128xbf16>
      tpu.vector_store %arg10[%138, %c0_47, %c0_48], %141 {strides = array<i32>} : memref<16x16x128xbf16, #tpu.memory_space<vmem>>, vector<1x16x128xbf16>,
      %c3_i32 = arith.constant 3 : i32
      %142 = arith.index_cast %c3_i32 : i32 to index
      %c0_49 = arith.constant 0 : index
      %c0_50 = arith.constant 0 : index
      %143 = vector.load %arg13[%142, %c0_49, %c0_50] : memref<16x16x512xf32, #tpu.memory_space<vmem>>, vector<1x16x512xf32>
      %144 = vector.shape_cast %143 : vector<1x16x512xf32> to vector<16x512xf32>
      %145 = arith.truncf %133 : vector<16x128xf32> to vector<16x128xbf16>
      %cst_51 = arith.constant dense<0.000000e+00> : vector<16x512xf32>
      %146 = tpu.matmul %145, %25, %cst_51 {dimension_numbers = #tpu.dot_dimension_numbers<[1], [0], [0], [1], [0, 0, 1, 1], [], []>} : vector<16x128xbf16>, vector<128x512xbf16>, vector<16x512xf32> -> vector<16x512xf32>
      %147 = arith.addf %144, %146 : vector<16x512xf32>
      %148 = vector.extract_strided_slice %147 {offsets = [0, 0], sizes = [16, 384], strides = [1, 1]} : vector<16x512xf32> to vector<16x384xf32>
      %149 = arith.negf %148 : vector<16x384xf32>
      %150 = math.exp %149 : vector<16x384xf32>
      %cst_52 = arith.constant 1.000000e+00 : f32
      %151 = vector.broadcast %cst_52 : f32 to vector<16x384xf32>
      %152 = arith.addf %151, %150 : vector<16x384xf32>
      %153 = arith.divf %151, %152 : vector<16x384xf32>
      %154 = vector.extract_strided_slice %153 {offsets = [0, 0], sizes = [16, 128], strides = [1, 1]} : vector<16x384xf32> to vector<16x128xf32>
      %155 = vector.extract_strided_slice %153 {offsets = [0, 128], sizes = [16, 128], strides = [1, 1]} : vector<16x384xf32> to vector<16x128xf32>
      %156 = vector.extract_strided_slice %153 {offsets = [0, 256], sizes = [16, 128], strides = [1, 1]} : vector<16x384xf32> to vector<16x128xf32>
      %157 = vector.extract_strided_slice %147 {offsets = [0, 384], sizes = [16, 128], strides = [1, 1]} : vector<16x512xf32> to vector<16x128xf32>
      %158 = math.tanh %157 : vector<16x128xf32>
      %159 = arith.mulf %155, %136 : vector<16x128xf32>
      %160 = arith.mulf %154, %158 : vector<16x128xf32>
      %161 = arith.addf %159, %160 : vector<16x128xf32>
      %162 = math.tanh %161 : vector<16x128xf32>
      %163 = arith.mulf %156, %162 : vector<16x128xf32>
      %164 = arith.index_cast %c3_i32 : i32 to index
      %c0_53 = arith.constant 0 : index
      %c0_54 = arith.constant 0 : index
      %165 = vector.load %arg4[%164, %c0_53, %c0_54] : memref<16x16x1xf32, #tpu.memory_space<vmem>>, vector<1x16x1xf32>
      %166 = vector.shape_cast %165 : vector<1x16x1xf32> to vector<16x1xf32>
      %cst_55 = arith.constant 5.000000e-01 : f32
      %167 = vector.broadcast %cst_55 : f32 to vector<16x1xf32>
      %168 = arith.cmpf ogt, %166, %167 : vector<16x1xf32>
      %169 = vector.shape_cast %168 : vector<16x1xi1> to vector<16x1xi1>
      %170 = vector.broadcast %169 : vector<16x1xi1> to vector<16x128xi1>
      %171 = arith.select %170, %163, %133 : vector<16x128xi1>, vector<16x128xf32>
      %172 = vector.shape_cast %168 : vector<16x1xi1> to vector<16x1xi1>
      %173 = vector.broadcast %172 : vector<16x1xi1> to vector<16x128xi1>
      %174 = arith.select %173, %161, %136 : vector<16x128xi1>, vector<16x128xf32>
      %175 = arith.truncf %171 : vector<16x128xf32> to vector<16x128xbf16>
      %176 = arith.index_cast %c3_i32 : i32 to index
      %c0_56 = arith.constant 0 : index
      %c0_57 = arith.constant 0 : index
      %177 = vector.load %arg10[%176, %c0_56, %c0_57] : memref<16x16x128xbf16, #tpu.memory_space<vmem>>, vector<1x16x128xbf16>
      %178 = vector.shape_cast %177 : vector<1x16x128xbf16> to vector<16x128xbf16>
      %179 = vector.shape_cast %175 : vector<16x128xbf16> to vector<1x16x128xbf16>
      tpu.vector_store %arg10[%176, %c0_56, %c0_57], %179 {strides = array<i32>} : memref<16x16x128xbf16, #tpu.memory_space<vmem>>, vector<1x16x128xbf16>,
      %c4_i32 = arith.constant 4 : i32
      %180 = arith.index_cast %c4_i32 : i32 to index
      %c0_58 = arith.constant 0 : index
      %c0_59 = arith.constant 0 : index
      %181 = vector.load %arg13[%180, %c0_58, %c0_59] : memref<16x16x512xf32, #tpu.memory_space<vmem>>, vector<1x16x512xf32>
      %182 = vector.shape_cast %181 : vector<1x16x512xf32> to vector<16x512xf32>
      %183 = arith.truncf %171 : vector<16x128xf32> to vector<16x128xbf16>
      %cst_60 = arith.constant dense<0.000000e+00> : vector<16x512xf32>
      %184 = tpu.matmul %183, %25, %cst_60 {dimension_numbers = #tpu.dot_dimension_numbers<[1], [0], [0], [1], [0, 0, 1, 1], [], []>} : vector<16x128xbf16>, vector<128x512xbf16>, vector<16x512xf32> -> vector<16x512xf32>
      %185 = arith.addf %182, %184 : vector<16x512xf32>
      %186 = vector.extract_strided_slice %185 {offsets = [0, 0], sizes = [16, 384], strides = [1, 1]} : vector<16x512xf32> to vector<16x384xf32>
      %187 = arith.negf %186 : vector<16x384xf32>
      %188 = math.exp %187 : vector<16x384xf32>
      %cst_61 = arith.constant 1.000000e+00 : f32
      %189 = vector.broadcast %cst_61 : f32 to vector<16x384xf32>
      %190 = arith.addf %189, %188 : vector<16x384xf32>
      %191 = arith.divf %189, %190 : vector<16x384xf32>
      %192 = vector.extract_strided_slice %191 {offsets = [0, 0], sizes = [16, 128], strides = [1, 1]} : vector<16x384xf32> to vector<16x128xf32>
      %193 = vector.extract_strided_slice %191 {offsets = [0, 128], sizes = [16, 128], strides = [1, 1]} : vector<16x384xf32> to vector<16x128xf32>
      %194 = vector.extract_strided_slice %191 {offsets = [0, 256], sizes = [16, 128], strides = [1, 1]} : vector<16x384xf32> to vector<16x128xf32>
      %195 = vector.extract_strided_slice %185 {offsets = [0, 384], sizes = [16, 128], strides = [1, 1]} : vector<16x512xf32> to vector<16x128xf32>
      %196 = math.tanh %195 : vector<16x128xf32>
      %197 = arith.mulf %193, %174 : vector<16x128xf32>
      %198 = arith.mulf %192, %196 : vector<16x128xf32>
      %199 = arith.addf %197, %198 : vector<16x128xf32>
      %200 = math.tanh %199 : vector<16x128xf32>
      %201 = arith.mulf %194, %200 : vector<16x128xf32>
      %202 = arith.index_cast %c4_i32 : i32 to index
      %c0_62 = arith.constant 0 : index
      %c0_63 = arith.constant 0 : index
      %203 = vector.load %arg4[%202, %c0_62, %c0_63] : memref<16x16x1xf32, #tpu.memory_space<vmem>>, vector<1x16x1xf32>
      %204 = vector.shape_cast %203 : vector<1x16x1xf32> to vector<16x1xf32>
      %cst_64 = arith.constant 5.000000e-01 : f32
      %205 = vector.broadcast %cst_64 : f32 to vector<16x1xf32>
      %206 = arith.cmpf ogt, %204, %205 : vector<16x1xf32>
      %207 = vector.shape_cast %206 : vector<16x1xi1> to vector<16x1xi1>
      %208 = vector.broadcast %207 : vector<16x1xi1> to vector<16x128xi1>
      %209 = arith.select %208, %201, %171 : vector<16x128xi1>, vector<16x128xf32>
      %210 = vector.shape_cast %206 : vector<16x1xi1> to vector<16x1xi1>
      %211 = vector.broadcast %210 : vector<16x1xi1> to vector<16x128xi1>
      %212 = arith.select %211, %199, %174 : vector<16x128xi1>, vector<16x128xf32>
      %213 = arith.truncf %209 : vector<16x128xf32> to vector<16x128xbf16>
      %214 = arith.index_cast %c4_i32 : i32 to index
      %c0_65 = arith.constant 0 : index
      %c0_66 = arith.constant 0 : index
      %215 = vector.load %arg10[%214, %c0_65, %c0_66] : memref<16x16x128xbf16, #tpu.memory_space<vmem>>, vector<1x16x128xbf16>
      %216 = vector.shape_cast %215 : vector<1x16x128xbf16> to vector<16x128xbf16>
      %217 = vector.shape_cast %213 : vector<16x128xbf16> to vector<1x16x128xbf16>
      tpu.vector_store %arg10[%214, %c0_65, %c0_66], %217 {strides = array<i32>} : memref<16x16x128xbf16, #tpu.memory_space<vmem>>, vector<1x16x128xbf16>,
      %c5_i32 = arith.constant 5 : i32
      %218 = arith.index_cast %c5_i32 : i32 to index
      %c0_67 = arith.constant 0 : index
      %c0_68 = arith.constant 0 : index
      %219 = vector.load %arg13[%218, %c0_67, %c0_68] : memref<16x16x512xf32, #tpu.memory_space<vmem>>, vector<1x16x512xf32>
      %220 = vector.shape_cast %219 : vector<1x16x512xf32> to vector<16x512xf32>
      %221 = arith.truncf %209 : vector<16x128xf32> to vector<16x128xbf16>
      %cst_69 = arith.constant dense<0.000000e+00> : vector<16x512xf32>
      %222 = tpu.matmul %221, %25, %cst_69 {dimension_numbers = #tpu.dot_dimension_numbers<[1], [0], [0], [1], [0, 0, 1, 1], [], []>} : vector<16x128xbf16>, vector<128x512xbf16>, vector<16x512xf32> -> vector<16x512xf32>
      %223 = arith.addf %220, %222 : vector<16x512xf32>
      %224 = vector.extract_strided_slice %223 {offsets = [0, 0], sizes = [16, 384], strides = [1, 1]} : vector<16x512xf32> to vector<16x384xf32>
      %225 = arith.negf %224 : vector<16x384xf32>
      %226 = math.exp %225 : vector<16x384xf32>
      %cst_70 = arith.constant 1.000000e+00 : f32
      %227 = vector.broadcast %cst_70 : f32 to vector<16x384xf32>
      %228 = arith.addf %227, %226 : vector<16x384xf32>
      %229 = arith.divf %227, %228 : vector<16x384xf32>
      %230 = vector.extract_strided_slice %229 {offsets = [0, 0], sizes = [16, 128], strides = [1, 1]} : vector<16x384xf32> to vector<16x128xf32>
      %231 = vector.extract_strided_slice %229 {offsets = [0, 128], sizes = [16, 128], strides = [1, 1]} : vector<16x384xf32> to vector<16x128xf32>
      %232 = vector.extract_strided_slice %229 {offsets = [0, 256], sizes = [16, 128], strides = [1, 1]} : vector<16x384xf32> to vector<16x128xf32>
      %233 = vector.extract_strided_slice %223 {offsets = [0, 384], sizes = [16, 128], strides = [1, 1]} : vector<16x512xf32> to vector<16x128xf32>
      %234 = math.tanh %233 : vector<16x128xf32>
      %235 = arith.mulf %231, %212 : vector<16x128xf32>
      %236 = arith.mulf %230, %234 : vector<16x128xf32>
      %237 = arith.addf %235, %236 : vector<16x128xf32>
      %238 = math.tanh %237 : vector<16x128xf32>
      %239 = arith.mulf %232, %238 : vector<16x128xf32>
      %240 = arith.index_cast %c5_i32 : i32 to index
      %c0_71 = arith.constant 0 : index
      %c0_72 = arith.constant 0 : index
      %241 = vector.load %arg4[%240, %c0_71, %c0_72] : memref<16x16x1xf32, #tpu.memory_space<vmem>>, vector<1x16x1xf32>
      %242 = vector.shape_cast %241 : vector<1x16x1xf32> to vector<16x1xf32>
      %cst_73 = arith.constant 5.000000e-01 : f32
      %243 = vector.broadcast %cst_73 : f32 to vector<16x1xf32>
      %244 = arith.cmpf ogt, %242, %243 : vector<16x1xf32>
      %245 = vector.shape_cast %244 : vector<16x1xi1> to vector<16x1xi1>
      %246 = vector.broadcast %245 : vector<16x1xi1> to vector<16x128xi1>
      %247 = arith.select %246, %239, %209 : vector<16x128xi1>, vector<16x128xf32>
      %248 = vector.shape_cast %244 : vector<16x1xi1> to vector<16x1xi1>
      %249 = vector.broadcast %248 : vector<16x1xi1> to vector<16x128xi1>
      %250 = arith.select %249, %237, %212 : vector<16x128xi1>, vector<16x128xf32>
      %251 = arith.truncf %247 : vector<16x128xf32> to vector<16x128xbf16>
      %252 = arith.index_cast %c5_i32 : i32 to index
      %c0_74 = arith.constant 0 : index
      %c0_75 = arith.constant 0 : index
      %253 = vector.load %arg10[%252, %c0_74, %c0_75] : memref<16x16x128xbf16, #tpu.memory_space<vmem>>, vector<1x16x128xbf16>
      %254 = vector.shape_cast %253 : vector<1x16x128xbf16> to vector<16x128xbf16>
      %255 = vector.shape_cast %251 : vector<16x128xbf16> to vector<1x16x128xbf16>
      tpu.vector_store %arg10[%252, %c0_74, %c0_75], %255 {strides = array<i32>} : memref<16x16x128xbf16, #tpu.memory_space<vmem>>, vector<1x16x128xbf16>,
      %c6_i32 = arith.constant 6 : i32
      %256 = arith.index_cast %c6_i32 : i32 to index
      %c0_76 = arith.constant 0 : index
      %c0_77 = arith.constant 0 : index
      %257 = vector.load %arg13[%256, %c0_76, %c0_77] : memref<16x16x512xf32, #tpu.memory_space<vmem>>, vector<1x16x512xf32>
      %258 = vector.shape_cast %257 : vector<1x16x512xf32> to vector<16x512xf32>
      %259 = arith.truncf %247 : vector<16x128xf32> to vector<16x128xbf16>
      %cst_78 = arith.constant dense<0.000000e+00> : vector<16x512xf32>
      %260 = tpu.matmul %259, %25, %cst_78 {dimension_numbers = #tpu.dot_dimension_numbers<[1], [0], [0], [1], [0, 0, 1, 1], [], []>} : vector<16x128xbf16>, vector<128x512xbf16>, vector<16x512xf32> -> vector<16x512xf32>
      %261 = arith.addf %258, %260 : vector<16x512xf32>
      %262 = vector.extract_strided_slice %261 {offsets = [0, 0], sizes = [16, 384], strides = [1, 1]} : vector<16x512xf32> to vector<16x384xf32>
      %263 = arith.negf %262 : vector<16x384xf32>
      %264 = math.exp %263 : vector<16x384xf32>
      %cst_79 = arith.constant 1.000000e+00 : f32
      %265 = vector.broadcast %cst_79 : f32 to vector<16x384xf32>
      %266 = arith.addf %265, %264 : vector<16x384xf32>
      %267 = arith.divf %265, %266 : vector<16x384xf32>
      %268 = vector.extract_strided_slice %267 {offsets = [0, 0], sizes = [16, 128], strides = [1, 1]} : vector<16x384xf32> to vector<16x128xf32>
      %269 = vector.extract_strided_slice %267 {offsets = [0, 128], sizes = [16, 128], strides = [1, 1]} : vector<16x384xf32> to vector<16x128xf32>
      %270 = vector.extract_strided_slice %267 {offsets = [0, 256], sizes = [16, 128], strides = [1, 1]} : vector<16x384xf32> to vector<16x128xf32>
      %271 = vector.extract_strided_slice %261 {offsets = [0, 384], sizes = [16, 128], strides = [1, 1]} : vector<16x512xf32> to vector<16x128xf32>
      %272 = math.tanh %271 : vector<16x128xf32>
      %273 = arith.mulf %269, %250 : vector<16x128xf32>
      %274 = arith.mulf %268, %272 : vector<16x128xf32>
      %275 = arith.addf %273, %274 : vector<16x128xf32>
      %276 = math.tanh %275 : vector<16x128xf32>
      %277 = arith.mulf %270, %276 : vector<16x128xf32>
      %278 = arith.index_cast %c6_i32 : i32 to index
      %c0_80 = arith.constant 0 : index
      %c0_81 = arith.constant 0 : index
      %279 = vector.load %arg4[%278, %c0_80, %c0_81] : memref<16x16x1xf32, #tpu.memory_space<vmem>>, vector<1x16x1xf32>
      %280 = vector.shape_cast %279 : vector<1x16x1xf32> to vector<16x1xf32>
      %cst_82 = arith.constant 5.000000e-01 : f32
      %281 = vector.broadcast %cst_82 : f32 to vector<16x1xf32>
      %282 = arith.cmpf ogt, %280, %281 : vector<16x1xf32>
      %283 = vector.shape_cast %282 : vector<16x1xi1> to vector<16x1xi1>
      %284 = vector.broadcast %283 : vector<16x1xi1> to vector<16x128xi1>
      %285 = arith.select %284, %277, %247 : vector<16x128xi1>, vector<16x128xf32>
      %286 = vector.shape_cast %282 : vector<16x1xi1> to vector<16x1xi1>
      %287 = vector.broadcast %286 : vector<16x1xi1> to vector<16x128xi1>
      %288 = arith.select %287, %275, %250 : vector<16x128xi1>, vector<16x128xf32>
      %289 = arith.truncf %285 : vector<16x128xf32> to vector<16x128xbf16>
      %290 = arith.index_cast %c6_i32 : i32 to index
      %c0_83 = arith.constant 0 : index
      %c0_84 = arith.constant 0 : index
      %291 = vector.load %arg10[%290, %c0_83, %c0_84] : memref<16x16x128xbf16, #tpu.memory_space<vmem>>, vector<1x16x128xbf16>
      %292 = vector.shape_cast %291 : vector<1x16x128xbf16> to vector<16x128xbf16>
      %293 = vector.shape_cast %289 : vector<16x128xbf16> to vector<1x16x128xbf16>
      tpu.vector_store %arg10[%290, %c0_83, %c0_84], %293 {strides = array<i32>} : memref<16x16x128xbf16, #tpu.memory_space<vmem>>, vector<1x16x128xbf16>,
      %c7_i32 = arith.constant 7 : i32
      %294 = arith.index_cast %c7_i32 : i32 to index
      %c0_85 = arith.constant 0 : index
      %c0_86 = arith.constant 0 : index
      %295 = vector.load %arg13[%294, %c0_85, %c0_86] : memref<16x16x512xf32, #tpu.memory_space<vmem>>, vector<1x16x512xf32>
      %296 = vector.shape_cast %295 : vector<1x16x512xf32> to vector<16x512xf32>
      %297 = arith.truncf %285 : vector<16x128xf32> to vector<16x128xbf16>
      %cst_87 = arith.constant dense<0.000000e+00> : vector<16x512xf32>
      %298 = tpu.matmul %297, %25, %cst_87 {dimension_numbers = #tpu.dot_dimension_numbers<[1], [0], [0], [1], [0, 0, 1, 1], [], []>} : vector<16x128xbf16>, vector<128x512xbf16>, vector<16x512xf32> -> vector<16x512xf32>
      %299 = arith.addf %296, %298 : vector<16x512xf32>
      %300 = vector.extract_strided_slice %299 {offsets = [0, 0], sizes = [16, 384], strides = [1, 1]} : vector<16x512xf32> to vector<16x384xf32>
      %301 = arith.negf %300 : vector<16x384xf32>
      %302 = math.exp %301 : vector<16x384xf32>
      %cst_88 = arith.constant 1.000000e+00 : f32
      %303 = vector.broadcast %cst_88 : f32 to vector<16x384xf32>
      %304 = arith.addf %303, %302 : vector<16x384xf32>
      %305 = arith.divf %303, %304 : vector<16x384xf32>
      %306 = vector.extract_strided_slice %305 {offsets = [0, 0], sizes = [16, 128], strides = [1, 1]} : vector<16x384xf32> to vector<16x128xf32>
      %307 = vector.extract_strided_slice %305 {offsets = [0, 128], sizes = [16, 128], strides = [1, 1]} : vector<16x384xf32> to vector<16x128xf32>
      %308 = vector.extract_strided_slice %305 {offsets = [0, 256], sizes = [16, 128], strides = [1, 1]} : vector<16x384xf32> to vector<16x128xf32>
      %309 = vector.extract_strided_slice %299 {offsets = [0, 384], sizes = [16, 128], strides = [1, 1]} : vector<16x512xf32> to vector<16x128xf32>
      %310 = math.tanh %309 : vector<16x128xf32>
      %311 = arith.mulf %307, %288 : vector<16x128xf32>
      %312 = arith.mulf %306, %310 : vector<16x128xf32>
      %313 = arith.addf %311, %312 : vector<16x128xf32>
      %314 = math.tanh %313 : vector<16x128xf32>
      %315 = arith.mulf %308, %314 : vector<16x128xf32>
      %316 = arith.index_cast %c7_i32 : i32 to index
      %c0_89 = arith.constant 0 : index
      %c0_90 = arith.constant 0 : index
      %317 = vector.load %arg4[%316, %c0_89, %c0_90] : memref<16x16x1xf32, #tpu.memory_space<vmem>>, vector<1x16x1xf32>
      %318 = vector.shape_cast %317 : vector<1x16x1xf32> to vector<16x1xf32>
      %cst_91 = arith.constant 5.000000e-01 : f32
      %319 = vector.broadcast %cst_91 : f32 to vector<16x1xf32>
      %320 = arith.cmpf ogt, %318, %319 : vector<16x1xf32>
      %321 = vector.shape_cast %320 : vector<16x1xi1> to vector<16x1xi1>
      %322 = vector.broadcast %321 : vector<16x1xi1> to vector<16x128xi1>
      %323 = arith.select %322, %315, %285 : vector<16x128xi1>, vector<16x128xf32>
      %324 = vector.shape_cast %320 : vector<16x1xi1> to vector<16x1xi1>
      %325 = vector.broadcast %324 : vector<16x1xi1> to vector<16x128xi1>
      %326 = arith.select %325, %313, %288 : vector<16x128xi1>, vector<16x128xf32>
      %327 = arith.truncf %323 : vector<16x128xf32> to vector<16x128xbf16>
      %328 = arith.index_cast %c7_i32 : i32 to index
      %c0_92 = arith.constant 0 : index
      %c0_93 = arith.constant 0 : index
      %329 = vector.load %arg10[%328, %c0_92, %c0_93] : memref<16x16x128xbf16, #tpu.memory_space<vmem>>, vector<1x16x128xbf16>
      %330 = vector.shape_cast %329 : vector<1x16x128xbf16> to vector<16x128xbf16>
      %331 = vector.shape_cast %327 : vector<16x128xbf16> to vector<1x16x128xbf16>
      tpu.vector_store %arg10[%328, %c0_92, %c0_93], %331 {strides = array<i32>} : memref<16x16x128xbf16, #tpu.memory_space<vmem>>, vector<1x16x128xbf16>,
      %c8_i32 = arith.constant 8 : i32
      %332 = arith.index_cast %c8_i32 : i32 to index
      %c0_94 = arith.constant 0 : index
      %c0_95 = arith.constant 0 : index
      %333 = vector.load %arg13[%332, %c0_94, %c0_95] : memref<16x16x512xf32, #tpu.memory_space<vmem>>, vector<1x16x512xf32>
      %334 = vector.shape_cast %333 : vector<1x16x512xf32> to vector<16x512xf32>
      %335 = arith.truncf %323 : vector<16x128xf32> to vector<16x128xbf16>
      %cst_96 = arith.constant dense<0.000000e+00> : vector<16x512xf32>
      %336 = tpu.matmul %335, %25, %cst_96 {dimension_numbers = #tpu.dot_dimension_numbers<[1], [0], [0], [1], [0, 0, 1, 1], [], []>} : vector<16x128xbf16>, vector<128x512xbf16>, vector<16x512xf32> -> vector<16x512xf32>
      %337 = arith.addf %334, %336 : vector<16x512xf32>
      %338 = vector.extract_strided_slice %337 {offsets = [0, 0], sizes = [16, 384], strides = [1, 1]} : vector<16x512xf32> to vector<16x384xf32>
      %339 = arith.negf %338 : vector<16x384xf32>
      %340 = math.exp %339 : vector<16x384xf32>
      %cst_97 = arith.constant 1.000000e+00 : f32
      %341 = vector.broadcast %cst_97 : f32 to vector<16x384xf32>
      %342 = arith.addf %341, %340 : vector<16x384xf32>
      %343 = arith.divf %341, %342 : vector<16x384xf32>
      %344 = vector.extract_strided_slice %343 {offsets = [0, 0], sizes = [16, 128], strides = [1, 1]} : vector<16x384xf32> to vector<16x128xf32>
      %345 = vector.extract_strided_slice %343 {offsets = [0, 128], sizes = [16, 128], strides = [1, 1]} : vector<16x384xf32> to vector<16x128xf32>
      %346 = vector.extract_strided_slice %343 {offsets = [0, 256], sizes = [16, 128], strides = [1, 1]} : vector<16x384xf32> to vector<16x128xf32>
      %347 = vector.extract_strided_slice %337 {offsets = [0, 384], sizes = [16, 128], strides = [1, 1]} : vector<16x512xf32> to vector<16x128xf32>
      %348 = math.tanh %347 : vector<16x128xf32>
      %349 = arith.mulf %345, %326 : vector<16x128xf32>
      %350 = arith.mulf %344, %348 : vector<16x128xf32>
      %351 = arith.addf %349, %350 : vector<16x128xf32>
      %352 = math.tanh %351 : vector<16x128xf32>
      %353 = arith.mulf %346, %352 : vector<16x128xf32>
      %354 = arith.index_cast %c8_i32 : i32 to index
      %c0_98 = arith.constant 0 : index
      %c0_99 = arith.constant 0 : index
      %355 = vector.load %arg4[%354, %c0_98, %c0_99] : memref<16x16x1xf32, #tpu.memory_space<vmem>>, vector<1x16x1xf32>
      %356 = vector.shape_cast %355 : vector<1x16x1xf32> to vector<16x1xf32>
      %cst_100 = arith.constant 5.000000e-01 : f32
      %357 = vector.broadcast %cst_100 : f32 to vector<16x1xf32>
      %358 = arith.cmpf ogt, %356, %357 : vector<16x1xf32>
      %359 = vector.shape_cast %358 : vector<16x1xi1> to vector<16x1xi1>
      %360 = vector.broadcast %359 : vector<16x1xi1> to vector<16x128xi1>
      %361 = arith.select %360, %353, %323 : vector<16x128xi1>, vector<16x128xf32>
      %362 = vector.shape_cast %358 : vector<16x1xi1> to vector<16x1xi1>
      %363 = vector.broadcast %362 : vector<16x1xi1> to vector<16x128xi1>
      %364 = arith.select %363, %351, %326 : vector<16x128xi1>, vector<16x128xf32>
      %365 = arith.truncf %361 : vector<16x128xf32> to vector<16x128xbf16>
      %366 = arith.index_cast %c8_i32 : i32 to index
      %c0_101 = arith.constant 0 : index
      %c0_102 = arith.constant 0 : index
      %367 = vector.load %arg10[%366, %c0_101, %c0_102] : memref<16x16x128xbf16, #tpu.memory_space<vmem>>, vector<1x16x128xbf16>
      %368 = vector.shape_cast %367 : vector<1x16x128xbf16> to vector<16x128xbf16>
      %369 = vector.shape_cast %365 : vector<16x128xbf16> to vector<1x16x128xbf16>
      tpu.vector_store %arg10[%366, %c0_101, %c0_102], %369 {strides = array<i32>} : memref<16x16x128xbf16, #tpu.memory_space<vmem>>, vector<1x16x128xbf16>,
      %c9_i32 = arith.constant 9 : i32
      %370 = arith.index_cast %c9_i32 : i32 to index
      %c0_103 = arith.constant 0 : index
      %c0_104 = arith.constant 0 : index
      %371 = vector.load %arg13[%370, %c0_103, %c0_104] : memref<16x16x512xf32, #tpu.memory_space<vmem>>, vector<1x16x512xf32>
      %372 = vector.shape_cast %371 : vector<1x16x512xf32> to vector<16x512xf32>
      %373 = arith.truncf %361 : vector<16x128xf32> to vector<16x128xbf16>
      %cst_105 = arith.constant dense<0.000000e+00> : vector<16x512xf32>
      %374 = tpu.matmul %373, %25, %cst_105 {dimension_numbers = #tpu.dot_dimension_numbers<[1], [0], [0], [1], [0, 0, 1, 1], [], []>} : vector<16x128xbf16>, vector<128x512xbf16>, vector<16x512xf32> -> vector<16x512xf32>
      %375 = arith.addf %372, %374 : vector<16x512xf32>
      %376 = vector.extract_strided_slice %375 {offsets = [0, 0], sizes = [16, 384], strides = [1, 1]} : vector<16x512xf32> to vector<16x384xf32>
      %377 = arith.negf %376 : vector<16x384xf32>
      %378 = math.exp %377 : vector<16x384xf32>
      %cst_106 = arith.constant 1.000000e+00 : f32
      %379 = vector.broadcast %cst_106 : f32 to vector<16x384xf32>
      %380 = arith.addf %379, %378 : vector<16x384xf32>
      %381 = arith.divf %379, %380 : vector<16x384xf32>
      %382 = vector.extract_strided_slice %381 {offsets = [0, 0], sizes = [16, 128], strides = [1, 1]} : vector<16x384xf32> to vector<16x128xf32>
      %383 = vector.extract_strided_slice %381 {offsets = [0, 128], sizes = [16, 128], strides = [1, 1]} : vector<16x384xf32> to vector<16x128xf32>
      %384 = vector.extract_strided_slice %381 {offsets = [0, 256], sizes = [16, 128], strides = [1, 1]} : vector<16x384xf32> to vector<16x128xf32>
      %385 = vector.extract_strided_slice %375 {offsets = [0, 384], sizes = [16, 128], strides = [1, 1]} : vector<16x512xf32> to vector<16x128xf32>
      %386 = math.tanh %385 : vector<16x128xf32>
      %387 = arith.mulf %383, %364 : vector<16x128xf32>
      %388 = arith.mulf %382, %386 : vector<16x128xf32>
      %389 = arith.addf %387, %388 : vector<16x128xf32>
      %390 = math.tanh %389 : vector<16x128xf32>
      %391 = arith.mulf %384, %390 : vector<16x128xf32>
      %392 = arith.index_cast %c9_i32 : i32 to index
      %c0_107 = arith.constant 0 : index
      %c0_108 = arith.constant 0 : index
      %393 = vector.load %arg4[%392, %c0_107, %c0_108] : memref<16x16x1xf32, #tpu.memory_space<vmem>>, vector<1x16x1xf32>
      %394 = vector.shape_cast %393 : vector<1x16x1xf32> to vector<16x1xf32>
      %cst_109 = arith.constant 5.000000e-01 : f32
      %395 = vector.broadcast %cst_109 : f32 to vector<16x1xf32>
      %396 = arith.cmpf ogt, %394, %395 : vector<16x1xf32>
      %397 = vector.shape_cast %396 : vector<16x1xi1> to vector<16x1xi1>
      %398 = vector.broadcast %397 : vector<16x1xi1> to vector<16x128xi1>
      %399 = arith.select %398, %391, %361 : vector<16x128xi1>, vector<16x128xf32>
      %400 = vector.shape_cast %396 : vector<16x1xi1> to vector<16x1xi1>
      %401 = vector.broadcast %400 : vector<16x1xi1> to vector<16x128xi1>
      %402 = arith.select %401, %389, %364 : vector<16x128xi1>, vector<16x128xf32>
      %403 = arith.truncf %399 : vector<16x128xf32> to vector<16x128xbf16>
      %404 = arith.index_cast %c9_i32 : i32 to index
      %c0_110 = arith.constant 0 : index
      %c0_111 = arith.constant 0 : index
      %405 = vector.load %arg10[%404, %c0_110, %c0_111] : memref<16x16x128xbf16, #tpu.memory_space<vmem>>, vector<1x16x128xbf16>
      %406 = vector.shape_cast %405 : vector<1x16x128xbf16> to vector<16x128xbf16>
      %407 = vector.shape_cast %403 : vector<16x128xbf16> to vector<1x16x128xbf16>
      tpu.vector_store %arg10[%404, %c0_110, %c0_111], %407 {strides = array<i32>} : memref<16x16x128xbf16, #tpu.memory_space<vmem>>, vector<1x16x128xbf16>,
      %c10_i32 = arith.constant 10 : i32
      %408 = arith.index_cast %c10_i32 : i32 to index
      %c0_112 = arith.constant 0 : index
      %c0_113 = arith.constant 0 : index
      %409 = vector.load %arg13[%408, %c0_112, %c0_113] : memref<16x16x512xf32, #tpu.memory_space<vmem>>, vector<1x16x512xf32>
      %410 = vector.shape_cast %409 : vector<1x16x512xf32> to vector<16x512xf32>
      %411 = arith.truncf %399 : vector<16x128xf32> to vector<16x128xbf16>
      %cst_114 = arith.constant dense<0.000000e+00> : vector<16x512xf32>
      %412 = tpu.matmul %411, %25, %cst_114 {dimension_numbers = #tpu.dot_dimension_numbers<[1], [0], [0], [1], [0, 0, 1, 1], [], []>} : vector<16x128xbf16>, vector<128x512xbf16>, vector<16x512xf32> -> vector<16x512xf32>
      %413 = arith.addf %410, %412 : vector<16x512xf32>
      %414 = vector.extract_strided_slice %413 {offsets = [0, 0], sizes = [16, 384], strides = [1, 1]} : vector<16x512xf32> to vector<16x384xf32>
      %415 = arith.negf %414 : vector<16x384xf32>
      %416 = math.exp %415 : vector<16x384xf32>
      %cst_115 = arith.constant 1.000000e+00 : f32
      %417 = vector.broadcast %cst_115 : f32 to vector<16x384xf32>
      %418 = arith.addf %417, %416 : vector<16x384xf32>
      %419 = arith.divf %417, %418 : vector<16x384xf32>
      %420 = vector.extract_strided_slice %419 {offsets = [0, 0], sizes = [16, 128], strides = [1, 1]} : vector<16x384xf32> to vector<16x128xf32>
      %421 = vector.extract_strided_slice %419 {offsets = [0, 128], sizes = [16, 128], strides = [1, 1]} : vector<16x384xf32> to vector<16x128xf32>
      %422 = vector.extract_strided_slice %419 {offsets = [0, 256], sizes = [16, 128], strides = [1, 1]} : vector<16x384xf32> to vector<16x128xf32>
      %423 = vector.extract_strided_slice %413 {offsets = [0, 384], sizes = [16, 128], strides = [1, 1]} : vector<16x512xf32> to vector<16x128xf32>
      %424 = math.tanh %423 : vector<16x128xf32>
      %425 = arith.mulf %421, %402 : vector<16x128xf32>
      %426 = arith.mulf %420, %424 : vector<16x128xf32>
      %427 = arith.addf %425, %426 : vector<16x128xf32>
      %428 = math.tanh %427 : vector<16x128xf32>
      %429 = arith.mulf %422, %428 : vector<16x128xf32>
      %430 = arith.index_cast %c10_i32 : i32 to index
      %c0_116 = arith.constant 0 : index
      %c0_117 = arith.constant 0 : index
      %431 = vector.load %arg4[%430, %c0_116, %c0_117] : memref<16x16x1xf32, #tpu.memory_space<vmem>>, vector<1x16x1xf32>
      %432 = vector.shape_cast %431 : vector<1x16x1xf32> to vector<16x1xf32>
      %cst_118 = arith.constant 5.000000e-01 : f32
      %433 = vector.broadcast %cst_118 : f32 to vector<16x1xf32>
      %434 = arith.cmpf ogt, %432, %433 : vector<16x1xf32>
      %435 = vector.shape_cast %434 : vector<16x1xi1> to vector<16x1xi1>
      %436 = vector.broadcast %435 : vector<16x1xi1> to vector<16x128xi1>
      %437 = arith.select %436, %429, %399 : vector<16x128xi1>, vector<16x128xf32>
      %438 = vector.shape_cast %434 : vector<16x1xi1> to vector<16x1xi1>
      %439 = vector.broadcast %438 : vector<16x1xi1> to vector<16x128xi1>
      %440 = arith.select %439, %427, %402 : vector<16x128xi1>, vector<16x128xf32>
      %441 = arith.truncf %437 : vector<16x128xf32> to vector<16x128xbf16>
      %442 = arith.index_cast %c10_i32 : i32 to index
      %c0_119 = arith.constant 0 : index
      %c0_120 = arith.constant 0 : index
      %443 = vector.load %arg10[%442, %c0_119, %c0_120] : memref<16x16x128xbf16, #tpu.memory_space<vmem>>, vector<1x16x128xbf16>
      %444 = vector.shape_cast %443 : vector<1x16x128xbf16> to vector<16x128xbf16>
      %445 = vector.shape_cast %441 : vector<16x128xbf16> to vector<1x16x128xbf16>
      tpu.vector_store %arg10[%442, %c0_119, %c0_120], %445 {strides = array<i32>} : memref<16x16x128xbf16, #tpu.memory_space<vmem>>, vector<1x16x128xbf16>,
      %c11_i32 = arith.constant 11 : i32
      %446 = arith.index_cast %c11_i32 : i32 to index
      %c0_121 = arith.constant 0 : index
      %c0_122 = arith.constant 0 : index
      %447 = vector.load %arg13[%446, %c0_121, %c0_122] : memref<16x16x512xf32, #tpu.memory_space<vmem>>, vector<1x16x512xf32>
      %448 = vector.shape_cast %447 : vector<1x16x512xf32> to vector<16x512xf32>
      %449 = arith.truncf %437 : vector<16x128xf32> to vector<16x128xbf16>
      %cst_123 = arith.constant dense<0.000000e+00> : vector<16x512xf32>
      %450 = tpu.matmul %449, %25, %cst_123 {dimension_numbers = #tpu.dot_dimension_numbers<[1], [0], [0], [1], [0, 0, 1, 1], [], []>} : vector<16x128xbf16>, vector<128x512xbf16>, vector<16x512xf32> -> vector<16x512xf32>
      %451 = arith.addf %448, %450 : vector<16x512xf32>
      %452 = vector.extract_strided_slice %451 {offsets = [0, 0], sizes = [16, 384], strides = [1, 1]} : vector<16x512xf32> to vector<16x384xf32>
      %453 = arith.negf %452 : vector<16x384xf32>
      %454 = math.exp %453 : vector<16x384xf32>
      %cst_124 = arith.constant 1.000000e+00 : f32
      %455 = vector.broadcast %cst_124 : f32 to vector<16x384xf32>
      %456 = arith.addf %455, %454 : vector<16x384xf32>
      %457 = arith.divf %455, %456 : vector<16x384xf32>
      %458 = vector.extract_strided_slice %457 {offsets = [0, 0], sizes = [16, 128], strides = [1, 1]} : vector<16x384xf32> to vector<16x128xf32>
      %459 = vector.extract_strided_slice %457 {offsets = [0, 128], sizes = [16, 128], strides = [1, 1]} : vector<16x384xf32> to vector<16x128xf32>
      %460 = vector.extract_strided_slice %457 {offsets = [0, 256], sizes = [16, 128], strides = [1, 1]} : vector<16x384xf32> to vector<16x128xf32>
      %461 = vector.extract_strided_slice %451 {offsets = [0, 384], sizes = [16, 128], strides = [1, 1]} : vector<16x512xf32> to vector<16x128xf32>
      %462 = math.tanh %461 : vector<16x128xf32>
      %463 = arith.mulf %459, %440 : vector<16x128xf32>
      %464 = arith.mulf %458, %462 : vector<16x128xf32>
      %465 = arith.addf %463, %464 : vector<16x128xf32>
      %466 = math.tanh %465 : vector<16x128xf32>
      %467 = arith.mulf %460, %466 : vector<16x128xf32>
      %468 = arith.index_cast %c11_i32 : i32 to index
      %c0_125 = arith.constant 0 : index
      %c0_126 = arith.constant 0 : index
      %469 = vector.load %arg4[%468, %c0_125, %c0_126] : memref<16x16x1xf32, #tpu.memory_space<vmem>>, vector<1x16x1xf32>
      %470 = vector.shape_cast %469 : vector<1x16x1xf32> to vector<16x1xf32>
      %cst_127 = arith.constant 5.000000e-01 : f32
      %471 = vector.broadcast %cst_127 : f32 to vector<16x1xf32>
      %472 = arith.cmpf ogt, %470, %471 : vector<16x1xf32>
      %473 = vector.shape_cast %472 : vector<16x1xi1> to vector<16x1xi1>
      %474 = vector.broadcast %473 : vector<16x1xi1> to vector<16x128xi1>
      %475 = arith.select %474, %467, %437 : vector<16x128xi1>, vector<16x128xf32>
      %476 = vector.shape_cast %472 : vector<16x1xi1> to vector<16x1xi1>
      %477 = vector.broadcast %476 : vector<16x1xi1> to vector<16x128xi1>
      %478 = arith.select %477, %465, %440 : vector<16x128xi1>, vector<16x128xf32>
      %479 = arith.truncf %475 : vector<16x128xf32> to vector<16x128xbf16>
      %480 = arith.index_cast %c11_i32 : i32 to index
      %c0_128 = arith.constant 0 : index
      %c0_129 = arith.constant 0 : index
      %481 = vector.load %arg10[%480, %c0_128, %c0_129] : memref<16x16x128xbf16, #tpu.memory_space<vmem>>, vector<1x16x128xbf16>
      %482 = vector.shape_cast %481 : vector<1x16x128xbf16> to vector<16x128xbf16>
      %483 = vector.shape_cast %479 : vector<16x128xbf16> to vector<1x16x128xbf16>
      tpu.vector_store %arg10[%480, %c0_128, %c0_129], %483 {strides = array<i32>} : memref<16x16x128xbf16, #tpu.memory_space<vmem>>, vector<1x16x128xbf16>,
      %c12_i32 = arith.constant 12 : i32
      %484 = arith.index_cast %c12_i32 : i32 to index
      %c0_130 = arith.constant 0 : index
      %c0_131 = arith.constant 0 : index
      %485 = vector.load %arg13[%484, %c0_130, %c0_131] : memref<16x16x512xf32, #tpu.memory_space<vmem>>, vector<1x16x512xf32>
      %486 = vector.shape_cast %485 : vector<1x16x512xf32> to vector<16x512xf32>
      %487 = arith.truncf %475 : vector<16x128xf32> to vector<16x128xbf16>
      %cst_132 = arith.constant dense<0.000000e+00> : vector<16x512xf32>
      %488 = tpu.matmul %487, %25, %cst_132 {dimension_numbers = #tpu.dot_dimension_numbers<[1], [0], [0], [1], [0, 0, 1, 1], [], []>} : vector<16x128xbf16>, vector<128x512xbf16>, vector<16x512xf32> -> vector<16x512xf32>
      %489 = arith.addf %486, %488 : vector<16x512xf32>
      %490 = vector.extract_strided_slice %489 {offsets = [0, 0], sizes = [16, 384], strides = [1, 1]} : vector<16x512xf32> to vector<16x384xf32>
      %491 = arith.negf %490 : vector<16x384xf32>
      %492 = math.exp %491 : vector<16x384xf32>
      %cst_133 = arith.constant 1.000000e+00 : f32
      %493 = vector.broadcast %cst_133 : f32 to vector<16x384xf32>
      %494 = arith.addf %493, %492 : vector<16x384xf32>
      %495 = arith.divf %493, %494 : vector<16x384xf32>
      %496 = vector.extract_strided_slice %495 {offsets = [0, 0], sizes = [16, 128], strides = [1, 1]} : vector<16x384xf32> to vector<16x128xf32>
      %497 = vector.extract_strided_slice %495 {offsets = [0, 128], sizes = [16, 128], strides = [1, 1]} : vector<16x384xf32> to vector<16x128xf32>
      %498 = vector.extract_strided_slice %495 {offsets = [0, 256], sizes = [16, 128], strides = [1, 1]} : vector<16x384xf32> to vector<16x128xf32>
      %499 = vector.extract_strided_slice %489 {offsets = [0, 384], sizes = [16, 128], strides = [1, 1]} : vector<16x512xf32> to vector<16x128xf32>
      %500 = math.tanh %499 : vector<16x128xf32>
      %501 = arith.mulf %497, %478 : vector<16x128xf32>
      %502 = arith.mulf %496, %500 : vector<16x128xf32>
      %503 = arith.addf %501, %502 : vector<16x128xf32>
      %504 = math.tanh %503 : vector<16x128xf32>
      %505 = arith.mulf %498, %504 : vector<16x128xf32>
      %506 = arith.index_cast %c12_i32 : i32 to index
      %c0_134 = arith.constant 0 : index
      %c0_135 = arith.constant 0 : index
      %507 = vector.load %arg4[%506, %c0_134, %c0_135] : memref<16x16x1xf32, #tpu.memory_space<vmem>>, vector<1x16x1xf32>
      %508 = vector.shape_cast %507 : vector<1x16x1xf32> to vector<16x1xf32>
      %cst_136 = arith.constant 5.000000e-01 : f32
      %509 = vector.broadcast %cst_136 : f32 to vector<16x1xf32>
      %510 = arith.cmpf ogt, %508, %509 : vector<16x1xf32>
      %511 = vector.shape_cast %510 : vector<16x1xi1> to vector<16x1xi1>
      %512 = vector.broadcast %511 : vector<16x1xi1> to vector<16x128xi1>
      %513 = arith.select %512, %505, %475 : vector<16x128xi1>, vector<16x128xf32>
      %514 = vector.shape_cast %510 : vector<16x1xi1> to vector<16x1xi1>
      %515 = vector.broadcast %514 : vector<16x1xi1> to vector<16x128xi1>
      %516 = arith.select %515, %503, %478 : vector<16x128xi1>, vector<16x128xf32>
      %517 = arith.truncf %513 : vector<16x128xf32> to vector<16x128xbf16>
      %518 = arith.index_cast %c12_i32 : i32 to index
      %c0_137 = arith.constant 0 : index
      %c0_138 = arith.constant 0 : index
      %519 = vector.load %arg10[%518, %c0_137, %c0_138] : memref<16x16x128xbf16, #tpu.memory_space<vmem>>, vector<1x16x128xbf16>
      %520 = vector.shape_cast %519 : vector<1x16x128xbf16> to vector<16x128xbf16>
      %521 = vector.shape_cast %517 : vector<16x128xbf16> to vector<1x16x128xbf16>
      tpu.vector_store %arg10[%518, %c0_137, %c0_138], %521 {strides = array<i32>} : memref<16x16x128xbf16, #tpu.memory_space<vmem>>, vector<1x16x128xbf16>,
      %c13_i32 = arith.constant 13 : i32
      %522 = arith.index_cast %c13_i32 : i32 to index
      %c0_139 = arith.constant 0 : index
      %c0_140 = arith.constant 0 : index
      %523 = vector.load %arg13[%522, %c0_139, %c0_140] : memref<16x16x512xf32, #tpu.memory_space<vmem>>, vector<1x16x512xf32>
      %524 = vector.shape_cast %523 : vector<1x16x512xf32> to vector<16x512xf32>
      %525 = arith.truncf %513 : vector<16x128xf32> to vector<16x128xbf16>
      %cst_141 = arith.constant dense<0.000000e+00> : vector<16x512xf32>
      %526 = tpu.matmul %525, %25, %cst_141 {dimension_numbers = #tpu.dot_dimension_numbers<[1], [0], [0], [1], [0, 0, 1, 1], [], []>} : vector<16x128xbf16>, vector<128x512xbf16>, vector<16x512xf32> -> vector<16x512xf32>
      %527 = arith.addf %524, %526 : vector<16x512xf32>
      %528 = vector.extract_strided_slice %527 {offsets = [0, 0], sizes = [16, 384], strides = [1, 1]} : vector<16x512xf32> to vector<16x384xf32>
      %529 = arith.negf %528 : vector<16x384xf32>
      %530 = math.exp %529 : vector<16x384xf32>
      %cst_142 = arith.constant 1.000000e+00 : f32
      %531 = vector.broadcast %cst_142 : f32 to vector<16x384xf32>
      %532 = arith.addf %531, %530 : vector<16x384xf32>
      %533 = arith.divf %531, %532 : vector<16x384xf32>
      %534 = vector.extract_strided_slice %533 {offsets = [0, 0], sizes = [16, 128], strides = [1, 1]} : vector<16x384xf32> to vector<16x128xf32>
      %535 = vector.extract_strided_slice %533 {offsets = [0, 128], sizes = [16, 128], strides = [1, 1]} : vector<16x384xf32> to vector<16x128xf32>
      %536 = vector.extract_strided_slice %533 {offsets = [0, 256], sizes = [16, 128], strides = [1, 1]} : vector<16x384xf32> to vector<16x128xf32>
      %537 = vector.extract_strided_slice %527 {offsets = [0, 384], sizes = [16, 128], strides = [1, 1]} : vector<16x512xf32> to vector<16x128xf32>
      %538 = math.tanh %537 : vector<16x128xf32>
      %539 = arith.mulf %535, %516 : vector<16x128xf32>
      %540 = arith.mulf %534, %538 : vector<16x128xf32>
      %541 = arith.addf %539, %540 : vector<16x128xf32>
      %542 = math.tanh %541 : vector<16x128xf32>
      %543 = arith.mulf %536, %542 : vector<16x128xf32>
      %544 = arith.index_cast %c13_i32 : i32 to index
      %c0_143 = arith.constant 0 : index
      %c0_144 = arith.constant 0 : index
      %545 = vector.load %arg4[%544, %c0_143, %c0_144] : memref<16x16x1xf32, #tpu.memory_space<vmem>>, vector<1x16x1xf32>
      %546 = vector.shape_cast %545 : vector<1x16x1xf32> to vector<16x1xf32>
      %cst_145 = arith.constant 5.000000e-01 : f32
      %547 = vector.broadcast %cst_145 : f32 to vector<16x1xf32>
      %548 = arith.cmpf ogt, %546, %547 : vector<16x1xf32>
      %549 = vector.shape_cast %548 : vector<16x1xi1> to vector<16x1xi1>
      %550 = vector.broadcast %549 : vector<16x1xi1> to vector<16x128xi1>
      %551 = arith.select %550, %543, %513 : vector<16x128xi1>, vector<16x128xf32>
      %552 = vector.shape_cast %548 : vector<16x1xi1> to vector<16x1xi1>
      %553 = vector.broadcast %552 : vector<16x1xi1> to vector<16x128xi1>
      %554 = arith.select %553, %541, %516 : vector<16x128xi1>, vector<16x128xf32>
      %555 = arith.truncf %551 : vector<16x128xf32> to vector<16x128xbf16>
      %556 = arith.index_cast %c13_i32 : i32 to index
      %c0_146 = arith.constant 0 : index
      %c0_147 = arith.constant 0 : index
      %557 = vector.load %arg10[%556, %c0_146, %c0_147] : memref<16x16x128xbf16, #tpu.memory_space<vmem>>, vector<1x16x128xbf16>
      %558 = vector.shape_cast %557 : vector<1x16x128xbf16> to vector<16x128xbf16>
      %559 = vector.shape_cast %555 : vector<16x128xbf16> to vector<1x16x128xbf16>
      tpu.vector_store %arg10[%556, %c0_146, %c0_147], %559 {strides = array<i32>} : memref<16x16x128xbf16, #tpu.memory_space<vmem>>, vector<1x16x128xbf16>,
      %c14_i32 = arith.constant 14 : i32
      %560 = arith.index_cast %c14_i32 : i32 to index
      %c0_148 = arith.constant 0 : index
      %c0_149 = arith.constant 0 : index
      %561 = vector.load %arg13[%560, %c0_148, %c0_149] : memref<16x16x512xf32, #tpu.memory_space<vmem>>, vector<1x16x512xf32>
      %562 = vector.shape_cast %561 : vector<1x16x512xf32> to vector<16x512xf32>
      %563 = arith.truncf %551 : vector<16x128xf32> to vector<16x128xbf16>
      %cst_150 = arith.constant dense<0.000000e+00> : vector<16x512xf32>
      %564 = tpu.matmul %563, %25, %cst_150 {dimension_numbers = #tpu.dot_dimension_numbers<[1], [0], [0], [1], [0, 0, 1, 1], [], []>} : vector<16x128xbf16>, vector<128x512xbf16>, vector<16x512xf32> -> vector<16x512xf32>
      %565 = arith.addf %562, %564 : vector<16x512xf32>
      %566 = vector.extract_strided_slice %565 {offsets = [0, 0], sizes = [16, 384], strides = [1, 1]} : vector<16x512xf32> to vector<16x384xf32>
      %567 = arith.negf %566 : vector<16x384xf32>
      %568 = math.exp %567 : vector<16x384xf32>
      %cst_151 = arith.constant 1.000000e+00 : f32
      %569 = vector.broadcast %cst_151 : f32 to vector<16x384xf32>
      %570 = arith.addf %569, %568 : vector<16x384xf32>
      %571 = arith.divf %569, %570 : vector<16x384xf32>
      %572 = vector.extract_strided_slice %571 {offsets = [0, 0], sizes = [16, 128], strides = [1, 1]} : vector<16x384xf32> to vector<16x128xf32>
      %573 = vector.extract_strided_slice %571 {offsets = [0, 128], sizes = [16, 128], strides = [1, 1]} : vector<16x384xf32> to vector<16x128xf32>
      %574 = vector.extract_strided_slice %571 {offsets = [0, 256], sizes = [16, 128], strides = [1, 1]} : vector<16x384xf32> to vector<16x128xf32>
      %575 = vector.extract_strided_slice %565 {offsets = [0, 384], sizes = [16, 128], strides = [1, 1]} : vector<16x512xf32> to vector<16x128xf32>
      %576 = math.tanh %575 : vector<16x128xf32>
      %577 = arith.mulf %573, %554 : vector<16x128xf32>
      %578 = arith.mulf %572, %576 : vector<16x128xf32>
      %579 = arith.addf %577, %578 : vector<16x128xf32>
      %580 = math.tanh %579 : vector<16x128xf32>
      %581 = arith.mulf %574, %580 : vector<16x128xf32>
      %582 = arith.index_cast %c14_i32 : i32 to index
      %c0_152 = arith.constant 0 : index
      %c0_153 = arith.constant 0 : index
      %583 = vector.load %arg4[%582, %c0_152, %c0_153] : memref<16x16x1xf32, #tpu.memory_space<vmem>>, vector<1x16x1xf32>
      %584 = vector.shape_cast %583 : vector<1x16x1xf32> to vector<16x1xf32>
      %cst_154 = arith.constant 5.000000e-01 : f32
      %585 = vector.broadcast %cst_154 : f32 to vector<16x1xf32>
      %586 = arith.cmpf ogt, %584, %585 : vector<16x1xf32>
      %587 = vector.shape_cast %586 : vector<16x1xi1> to vector<16x1xi1>
      %588 = vector.broadcast %587 : vector<16x1xi1> to vector<16x128xi1>
      %589 = arith.select %588, %581, %551 : vector<16x128xi1>, vector<16x128xf32>
      %590 = vector.shape_cast %586 : vector<16x1xi1> to vector<16x1xi1>
      %591 = vector.broadcast %590 : vector<16x1xi1> to vector<16x128xi1>
      %592 = arith.select %591, %579, %554 : vector<16x128xi1>, vector<16x128xf32>
      %593 = arith.truncf %589 : vector<16x128xf32> to vector<16x128xbf16>
      %594 = arith.index_cast %c14_i32 : i32 to index
      %c0_155 = arith.constant 0 : index
      %c0_156 = arith.constant 0 : index
      %595 = vector.load %arg10[%594, %c0_155, %c0_156] : memref<16x16x128xbf16, #tpu.memory_space<vmem>>, vector<1x16x128xbf16>
      %596 = vector.shape_cast %595 : vector<1x16x128xbf16> to vector<16x128xbf16>
      %597 = vector.shape_cast %593 : vector<16x128xbf16> to vector<1x16x128xbf16>
      tpu.vector_store %arg10[%594, %c0_155, %c0_156], %597 {strides = array<i32>} : memref<16x16x128xbf16, #tpu.memory_space<vmem>>, vector<1x16x128xbf16>,
      %c15_i32 = arith.constant 15 : i32
      %598 = arith.index_cast %c15_i32 : i32 to index
      %c0_157 = arith.constant 0 : index
      %c0_158 = arith.constant 0 : index
      %599 = vector.load %arg13[%598, %c0_157, %c0_158] : memref<16x16x512xf32, #tpu.memory_space<vmem>>, vector<1x16x512xf32>
      %600 = vector.shape_cast %599 : vector<1x16x512xf32> to vector<16x512xf32>
      %601 = arith.truncf %589 : vector<16x128xf32> to vector<16x128xbf16>
      %cst_159 = arith.constant dense<0.000000e+00> : vector<16x512xf32>
      %602 = tpu.matmul %601, %25, %cst_159 {dimension_numbers = #tpu.dot_dimension_numbers<[1], [0], [0], [1], [0, 0, 1, 1], [], []>} : vector<16x128xbf16>, vector<128x512xbf16>, vector<16x512xf32> -> vector<16x512xf32>
      %603 = arith.addf %600, %602 : vector<16x512xf32>
      %604 = vector.extract_strided_slice %603 {offsets = [0, 0], sizes = [16, 384], strides = [1, 1]} : vector<16x512xf32> to vector<16x384xf32>
      %605 = arith.negf %604 : vector<16x384xf32>
      %606 = math.exp %605 : vector<16x384xf32>
      %cst_160 = arith.constant 1.000000e+00 : f32
      %607 = vector.broadcast %cst_160 : f32 to vector<16x384xf32>
      %608 = arith.addf %607, %606 : vector<16x384xf32>
      %609 = arith.divf %607, %608 : vector<16x384xf32>
      %610 = vector.extract_strided_slice %609 {offsets = [0, 0], sizes = [16, 128], strides = [1, 1]} : vector<16x384xf32> to vector<16x128xf32>
      %611 = vector.extract_strided_slice %609 {offsets = [0, 128], sizes = [16, 128], strides = [1, 1]} : vector<16x384xf32> to vector<16x128xf32>
      %612 = vector.extract_strided_slice %609 {offsets = [0, 256], sizes = [16, 128], strides = [1, 1]} : vector<16x384xf32> to vector<16x128xf32>
      %613 = vector.extract_strided_slice %603 {offsets = [0, 384], sizes = [16, 128], strides = [1, 1]} : vector<16x512xf32> to vector<16x128xf32>
      %614 = math.tanh %613 : vector<16x128xf32>
      %615 = arith.mulf %611, %592 : vector<16x128xf32>
      %616 = arith.mulf %610, %614 : vector<16x128xf32>
      %617 = arith.addf %615, %616 : vector<16x128xf32>
      %618 = math.tanh %617 : vector<16x128xf32>
      %619 = arith.mulf %612, %618 : vector<16x128xf32>
      %620 = arith.index_cast %c15_i32 : i32 to index
      %c0_161 = arith.constant 0 : index
      %c0_162 = arith.constant 0 : index
      %621 = vector.load %arg4[%620, %c0_161, %c0_162] : memref<16x16x1xf32, #tpu.memory_space<vmem>>, vector<1x16x1xf32>
      %622 = vector.shape_cast %621 : vector<1x16x1xf32> to vector<16x1xf32>
      %cst_163 = arith.constant 5.000000e-01 : f32
      %623 = vector.broadcast %cst_163 : f32 to vector<16x1xf32>
      %624 = arith.cmpf ogt, %622, %623 : vector<16x1xf32>
      %625 = vector.shape_cast %624 : vector<16x1xi1> to vector<16x1xi1>
      %626 = vector.broadcast %625 : vector<16x1xi1> to vector<16x128xi1>
      %627 = arith.select %626, %619, %589 : vector<16x128xi1>, vector<16x128xf32>
      %628 = vector.shape_cast %624 : vector<16x1xi1> to vector<16x1xi1>
      %629 = vector.broadcast %628 : vector<16x1xi1> to vector<16x128xi1>
      %630 = arith.select %629, %617, %592 : vector<16x128xi1>, vector<16x128xf32>
      %631 = arith.truncf %627 : vector<16x128xf32> to vector<16x128xbf16>
      %632 = arith.index_cast %c15_i32 : i32 to index
      %c0_164 = arith.constant 0 : index
      %c0_165 = arith.constant 0 : index
      %633 = vector.load %arg10[%632, %c0_164, %c0_165] : memref<16x16x128xbf16, #tpu.memory_space<vmem>>, vector<1x16x128xbf16>
      %634 = vector.shape_cast %633 : vector<1x16x128xbf16> to vector<16x128xbf16>
      %635 = vector.shape_cast %631 : vector<16x128xbf16> to vector<1x16x128xbf16>
      tpu.vector_store %arg10[%632, %c0_164, %c0_165], %635 {strides = array<i32>} : memref<16x16x128xbf16, #tpu.memory_space<vmem>>, vector<1x16x128xbf16>,
      %c16_i32 = arith.constant 16 : i32
      %c0_166 = arith.constant 0 : index
      %c0_167 = arith.constant 0 : index
      %636 = vector.load %arg14[%c0_166, %c0_167] : memref<16x128xf32, #tpu.memory_space<vmem>>, vector<16x128xf32>
      tpu.vector_store %arg14[%c0_166, %c0_167], %627 {strides = array<i32>} : memref<16x128xf32, #tpu.memory_space<vmem>>, vector<16x128xf32>,
      %c0_168 = arith.constant 0 : index
      %c0_169 = arith.constant 0 : index
      %637 = vector.load %arg15[%c0_168, %c0_169] : memref<16x128xf32, #tpu.memory_space<vmem>>, vector<16x128xf32>
      tpu.vector_store %arg15[%c0_168, %c0_169], %630 {strides = array<i32>} : memref<16x128xf32, #tpu.memory_space<vmem>>, vector<16x128xf32>,
    } else {
    }
    %true = arith.constant true
    %9 = arith.xori %6, %true : i1
    %10 = arith.extui %9 : i1 to i32
    %c0_i32_3 = arith.constant 0 : i32
    %11 = arith.cmpi ne, %10, %c0_i32_3 : i32
    scf.if %11 {
      %c0 = arith.constant 0 : index
      %c0_5 = arith.constant 0 : index
      %15 = vector.load %arg14[%c0, %c0_5] : memref<16x128xf32, #tpu.memory_space<vmem>>, vector<16x128xf32>
      %16 = arith.truncf %15 : vector<16x128xf32> to vector<16x128xbf16>
      %c0_6 = arith.constant 0 : index
      %c0_7 = arith.constant 0 : index
      %c0_8 = arith.constant 0 : index
      %17 = vector.load %arg10[%c0_6, %c0_7, %c0_8] : memref<16x16x128xbf16, #tpu.memory_space<vmem>>, vector<1x16x128xbf16>
      %18 = vector.shape_cast %17 : vector<1x16x128xbf16> to vector<16x128xbf16>
      %19 = vector.shape_cast %16 : vector<16x128xbf16> to vector<1x16x128xbf16>
      tpu.vector_store %arg10[%c0_6, %c0_7, %c0_8], %19 {strides = array<i32>} : memref<16x16x128xbf16, #tpu.memory_space<vmem>>, vector<1x16x128xbf16>,
      %c1 = arith.constant 1 : index
      %c0_9 = arith.constant 0 : index
      %c0_10 = arith.constant 0 : index
      %20 = vector.load %arg10[%c1, %c0_9, %c0_10] : memref<16x16x128xbf16, #tpu.memory_space<vmem>>, vector<1x16x128xbf16>
      %21 = vector.shape_cast %20 : vector<1x16x128xbf16> to vector<16x128xbf16>
      %22 = vector.shape_cast %16 : vector<16x128xbf16> to vector<1x16x128xbf16>
      tpu.vector_store %arg10[%c1, %c0_9, %c0_10], %22 {strides = array<i32>} : memref<16x16x128xbf16, #tpu.memory_space<vmem>>, vector<1x16x128xbf16>,
      %c2 = arith.constant 2 : index
      %c0_11 = arith.constant 0 : index
      %c0_12 = arith.constant 0 : index
      %23 = vector.load %arg10[%c2, %c0_11, %c0_12] : memref<16x16x128xbf16, #tpu.memory_space<vmem>>, vector<1x16x128xbf16>
      %24 = vector.shape_cast %23 : vector<1x16x128xbf16> to vector<16x128xbf16>
      %25 = vector.shape_cast %16 : vector<16x128xbf16> to vector<1x16x128xbf16>
      tpu.vector_store %arg10[%c2, %c0_11, %c0_12], %25 {strides = array<i32>} : memref<16x16x128xbf16, #tpu.memory_space<vmem>>, vector<1x16x128xbf16>,
      %c3 = arith.constant 3 : index
      %c0_13 = arith.constant 0 : index
      %c0_14 = arith.constant 0 : index
      %26 = vector.load %arg10[%c3, %c0_13, %c0_14] : memref<16x16x128xbf16, #tpu.memory_space<vmem>>, vector<1x16x128xbf16>
      %27 = vector.shape_cast %26 : vector<1x16x128xbf16> to vector<16x128xbf16>
      %28 = vector.shape_cast %16 : vector<16x128xbf16> to vector<1x16x128xbf16>
      tpu.vector_store %arg10[%c3, %c0_13, %c0_14], %28 {strides = array<i32>} : memref<16x16x128xbf16, #tpu.memory_space<vmem>>, vector<1x16x128xbf16>,
      %c4 = arith.constant 4 : index
      %c0_15 = arith.constant 0 : index
      %c0_16 = arith.constant 0 : index
      %29 = vector.load %arg10[%c4, %c0_15, %c0_16] : memref<16x16x128xbf16, #tpu.memory_space<vmem>>, vector<1x16x128xbf16>
      %30 = vector.shape_cast %29 : vector<1x16x128xbf16> to vector<16x128xbf16>
      %31 = vector.shape_cast %16 : vector<16x128xbf16> to vector<1x16x128xbf16>
      tpu.vector_store %arg10[%c4, %c0_15, %c0_16], %31 {strides = array<i32>} : memref<16x16x128xbf16, #tpu.memory_space<vmem>>, vector<1x16x128xbf16>,
      %c5 = arith.constant 5 : index
      %c0_17 = arith.constant 0 : index
      %c0_18 = arith.constant 0 : index
      %32 = vector.load %arg10[%c5, %c0_17, %c0_18] : memref<16x16x128xbf16, #tpu.memory_space<vmem>>, vector<1x16x128xbf16>
      %33 = vector.shape_cast %32 : vector<1x16x128xbf16> to vector<16x128xbf16>
      %34 = vector.shape_cast %16 : vector<16x128xbf16> to vector<1x16x128xbf16>
      tpu.vector_store %arg10[%c5, %c0_17, %c0_18], %34 {strides = array<i32>} : memref<16x16x128xbf16, #tpu.memory_space<vmem>>, vector<1x16x128xbf16>,
      %c6 = arith.constant 6 : index
      %c0_19 = arith.constant 0 : index
      %c0_20 = arith.constant 0 : index
      %35 = vector.load %arg10[%c6, %c0_19, %c0_20] : memref<16x16x128xbf16, #tpu.memory_space<vmem>>, vector<1x16x128xbf16>
      %36 = vector.shape_cast %35 : vector<1x16x128xbf16> to vector<16x128xbf16>
      %37 = vector.shape_cast %16 : vector<16x128xbf16> to vector<1x16x128xbf16>
      tpu.vector_store %arg10[%c6, %c0_19, %c0_20], %37 {strides = array<i32>} : memref<16x16x128xbf16, #tpu.memory_space<vmem>>, vector<1x16x128xbf16>,
      %c7 = arith.constant 7 : index
      %c0_21 = arith.constant 0 : index
      %c0_22 = arith.constant 0 : index
      %38 = vector.load %arg10[%c7, %c0_21, %c0_22] : memref<16x16x128xbf16, #tpu.memory_space<vmem>>, vector<1x16x128xbf16>
      %39 = vector.shape_cast %38 : vector<1x16x128xbf16> to vector<16x128xbf16>
      %40 = vector.shape_cast %16 : vector<16x128xbf16> to vector<1x16x128xbf16>
      tpu.vector_store %arg10[%c7, %c0_21, %c0_22], %40 {strides = array<i32>} : memref<16x16x128xbf16, #tpu.memory_space<vmem>>, vector<1x16x128xbf16>,
      %c8 = arith.constant 8 : index
      %c0_23 = arith.constant 0 : index
      %c0_24 = arith.constant 0 : index
      %41 = vector.load %arg10[%c8, %c0_23, %c0_24] : memref<16x16x128xbf16, #tpu.memory_space<vmem>>, vector<1x16x128xbf16>
      %42 = vector.shape_cast %41 : vector<1x16x128xbf16> to vector<16x128xbf16>
      %43 = vector.shape_cast %16 : vector<16x128xbf16> to vector<1x16x128xbf16>
      tpu.vector_store %arg10[%c8, %c0_23, %c0_24], %43 {strides = array<i32>} : memref<16x16x128xbf16, #tpu.memory_space<vmem>>, vector<1x16x128xbf16>,
      %c9 = arith.constant 9 : index
      %c0_25 = arith.constant 0 : index
      %c0_26 = arith.constant 0 : index
      %44 = vector.load %arg10[%c9, %c0_25, %c0_26] : memref<16x16x128xbf16, #tpu.memory_space<vmem>>, vector<1x16x128xbf16>
      %45 = vector.shape_cast %44 : vector<1x16x128xbf16> to vector<16x128xbf16>
      %46 = vector.shape_cast %16 : vector<16x128xbf16> to vector<1x16x128xbf16>
      tpu.vector_store %arg10[%c9, %c0_25, %c0_26], %46 {strides = array<i32>} : memref<16x16x128xbf16, #tpu.memory_space<vmem>>, vector<1x16x128xbf16>,
      %c10 = arith.constant 10 : index
      %c0_27 = arith.constant 0 : index
      %c0_28 = arith.constant 0 : index
      %47 = vector.load %arg10[%c10, %c0_27, %c0_28] : memref<16x16x128xbf16, #tpu.memory_space<vmem>>, vector<1x16x128xbf16>
      %48 = vector.shape_cast %47 : vector<1x16x128xbf16> to vector<16x128xbf16>
      %49 = vector.shape_cast %16 : vector<16x128xbf16> to vector<1x16x128xbf16>
      tpu.vector_store %arg10[%c10, %c0_27, %c0_28], %49 {strides = array<i32>} : memref<16x16x128xbf16, #tpu.memory_space<vmem>>, vector<1x16x128xbf16>,
      %c11 = arith.constant 11 : index
      %c0_29 = arith.constant 0 : index
      %c0_30 = arith.constant 0 : index
      %50 = vector.load %arg10[%c11, %c0_29, %c0_30] : memref<16x16x128xbf16, #tpu.memory_space<vmem>>, vector<1x16x128xbf16>
      %51 = vector.shape_cast %50 : vector<1x16x128xbf16> to vector<16x128xbf16>
      %52 = vector.shape_cast %16 : vector<16x128xbf16> to vector<1x16x128xbf16>
      tpu.vector_store %arg10[%c11, %c0_29, %c0_30], %52 {strides = array<i32>} : memref<16x16x128xbf16, #tpu.memory_space<vmem>>, vector<1x16x128xbf16>,
      %c12 = arith.constant 12 : index
      %c0_31 = arith.constant 0 : index
      %c0_32 = arith.constant 0 : index
      %53 = vector.load %arg10[%c12, %c0_31, %c0_32] : memref<16x16x128xbf16, #tpu.memory_space<vmem>>, vector<1x16x128xbf16>
      %54 = vector.shape_cast %53 : vector<1x16x128xbf16> to vector<16x128xbf16>
      %55 = vector.shape_cast %16 : vector<16x128xbf16> to vector<1x16x128xbf16>
      tpu.vector_store %arg10[%c12, %c0_31, %c0_32], %55 {strides = array<i32>} : memref<16x16x128xbf16, #tpu.memory_space<vmem>>, vector<1x16x128xbf16>,
      %c13 = arith.constant 13 : index
      %c0_33 = arith.constant 0 : index
      %c0_34 = arith.constant 0 : index
      %56 = vector.load %arg10[%c13, %c0_33, %c0_34] : memref<16x16x128xbf16, #tpu.memory_space<vmem>>, vector<1x16x128xbf16>
      %57 = vector.shape_cast %56 : vector<1x16x128xbf16> to vector<16x128xbf16>
      %58 = vector.shape_cast %16 : vector<16x128xbf16> to vector<1x16x128xbf16>
      tpu.vector_store %arg10[%c13, %c0_33, %c0_34], %58 {strides = array<i32>} : memref<16x16x128xbf16, #tpu.memory_space<vmem>>, vector<1x16x128xbf16>,
      %c14 = arith.constant 14 : index
      %c0_35 = arith.constant 0 : index
      %c0_36 = arith.constant 0 : index
      %59 = vector.load %arg10[%c14, %c0_35, %c0_36] : memref<16x16x128xbf16, #tpu.memory_space<vmem>>, vector<1x16x128xbf16>
      %60 = vector.shape_cast %59 : vector<1x16x128xbf16> to vector<16x128xbf16>
      %61 = vector.shape_cast %16 : vector<16x128xbf16> to vector<1x16x128xbf16>
      tpu.vector_store %arg10[%c14, %c0_35, %c0_36], %61 {strides = array<i32>} : memref<16x16x128xbf16, #tpu.memory_space<vmem>>, vector<1x16x128xbf16>,
      %c15 = arith.constant 15 : index
      %c0_37 = arith.constant 0 : index
      %c0_38 = arith.constant 0 : index
      %62 = vector.load %arg10[%c15, %c0_37, %c0_38] : memref<16x16x128xbf16, #tpu.memory_space<vmem>>, vector<1x16x128xbf16>
      %63 = vector.shape_cast %62 : vector<1x16x128xbf16> to vector<16x128xbf16>
      %64 = vector.shape_cast %16 : vector<16x128xbf16> to vector<1x16x128xbf16>
      tpu.vector_store %arg10[%c15, %c0_37, %c0_38], %64 {strides = array<i32>} : memref<16x16x128xbf16, #tpu.memory_space<vmem>>, vector<1x16x128xbf16>,
    } else {
    }
    %c1_i32 = arith.constant 1 : i32
    %12 = arith.cmpi eq, %arg1, %c1_i32 : i32
    %13 = arith.extui %12 : i1 to i32
    %c0_i32_4 = arith.constant 0 : i32
    %14 = arith.cmpi ne, %13, %c0_i32_4 : i32
    scf.if %14 {
      %c0 = arith.constant 0 : index
      %c0_5 = arith.constant 0 : index
      %15 = vector.load %arg14[%c0, %c0_5] : memref<16x128xf32, #tpu.memory_space<vmem>>, vector<16x128xf32>
      %c0_6 = arith.constant 0 : index
      %c0_7 = arith.constant 0 : index
      %16 = vector.load %arg11[%c0_6, %c0_7] : memref<16x128xf32, #tpu.memory_space<vmem>>, vector<16x128xf32>
      tpu.vector_store %arg11[%c0_6, %c0_7], %15 {strides = array<i32>} : memref<16x128xf32, #tpu.memory_space<vmem>>, vector<16x128xf32>,
      %c0_8 = arith.constant 0 : index
      %c0_9 = arith.constant 0 : index
      %17 = vector.load %arg15[%c0_8, %c0_9] : memref<16x128xf32, #tpu.memory_space<vmem>>, vector<16x128xf32>
      %c0_10 = arith.constant 0 : index
      %c0_11 = arith.constant 0 : index
      %18 = vector.load %arg12[%c0_10, %c0_11] : memref<16x128xf32, #tpu.memory_space<vmem>>, vector<16x128xf32>
      tpu.vector_store %arg12[%c0_10, %c0_11], %17 {strides = array<i32>} : memref<16x128xf32, #tpu.memory_space<vmem>>, vector<16x128xf32>,
    } else {
    }
    return
  }
  func.func @transform_0(%arg0: i32, %arg1: i32, %arg2: memref<1x2xi32, #tpu.memory_space<smem>>) -> (i32, i32, i32) {
    %c0_i32 = arith.constant 0 : i32
    %c0_i32_0 = arith.constant 0 : i32
    return %arg1, %arg0, %c0_i32 : i32, i32, i32
  }
  func.func @transform_1(%arg0: i32, %arg1: i32, %arg2: memref<1x2xi32, #tpu.memory_space<smem>>) -> (i32, i32, i32) {
    %c0_i32 = arith.constant 0 : i32
    %c0_i32_0 = arith.constant 0 : i32
    return %arg1, %arg0, %c0_i32 : i32, i32, i32
  }
  func.func @transform_2(%arg0: i32, %arg1: i32, %arg2: memref<1x2xi32, #tpu.memory_space<smem>>) -> (i32, i32) {
    %c0_i32 = arith.constant 0 : i32
    %c0_i32_0 = arith.constant 0 : i32
    return %arg0, %c0_i32 : i32, i32
  }
  func.func @transform_3(%arg0: i32, %arg1: i32, %arg2: memref<1x2xi32, #tpu.memory_space<smem>>) -> (i32, i32) {
    %c0_i32 = arith.constant 0 : i32
    %c0_i32_0 = arith.constant 0 : i32
    return %arg0, %c0_i32 : i32, i32
  }
  func.func @transform_4(%arg0: i32, %arg1: i32, %arg2: memref<1x2xi32, #tpu.memory_space<smem>>) -> (i32, i32) {
    %c0_i32 = arith.constant 0 : i32
    %c0_i32_0 = arith.constant 0 : i32
    %c0_i32_1 = arith.constant 0 : i32
    return %c0_i32, %c0_i32_0 : i32, i32
  }
  func.func @transform_5(%arg0: i32, %arg1: i32, %arg2: memref<1x2xi32, #tpu.memory_space<smem>>) -> (i32, i32) {
    %c0_i32 = arith.constant 0 : i32
    %c0_i32_0 = arith.constant 0 : i32
    %c0_i32_1 = arith.constant 0 : i32
    return %c0_i32, %c0_i32_0 : i32, i32
  }
  func.func @transform_6(%arg0: i32, %arg1: i32, %arg2: memref<1x2xi32, #tpu.memory_space<smem>>) -> (i32, i32) {
    %c0_i32 = arith.constant 0 : i32
    %c0_i32_0 = arith.constant 0 : i32
    %c0_i32_1 = arith.constant 0 : i32
    return %c0_i32, %c0_i32_0 : i32, i32
  }
  func.func @transform_7(%arg0: i32, %arg1: i32, %arg2: memref<1x2xi32, #tpu.memory_space<smem>>) -> (i32, i32, i32) {
    %c0_i32 = arith.constant 0 : i32
    %c0_i32_0 = arith.constant 0 : i32
    return %arg1, %arg0, %c0_i32 : i32, i32, i32
  }
  func.func @transform_8(%arg0: i32, %arg1: i32, %arg2: memref<1x2xi32, #tpu.memory_space<smem>>) -> (i32, i32) {
    %c0_i32 = arith.constant 0 : i32
    %c0_i32_0 = arith.constant 0 : i32
    return %arg0, %c0_i32 : i32, i32
  }
  func.func @transform_9(%arg0: i32, %arg1: i32, %arg2: memref<1x2xi32, #tpu.memory_space<smem>>) -> (i32, i32) {
    %c0_i32 = arith.constant 0 : i32
    %c0_i32_0 = arith.constant 0 : i32
    return %arg0, %c0_i32 : i32, i32
  }
}

</mosaic_0001>

<bundles_post_ra>
// kernel: tpu_custom_call.1
= control target key start
LH: loop header
LB: loop body
LE: loop exit
PB: predicated region body
PF: predicated region fallthrough
CT: control target
= control target key end

     0   :  { %s8196_s0 = inlined_call_operand.vmem [shape: s32[1,2], index: 0, kind: input, shape index: {}]   ;;  %s8197_s1 = inlined_call_operand.vmem [shape: f32[32,16,32], index: 1, kind: input, shape index: {}]   ;;  %s8198_s2 = inlined_call_operand.vmem [shape: f32[32,16,1], index: 2, kind: input, shape index: {}]   ;;  %s8199_s3 = inlined_call_operand.vmem [shape: f32[16,128], index: 3, kind: input, shape index: {}]   ;;  %s8200_s4 = inlined_call_operand.hbm [shape: f32[16,128], index: 4, kind: input, shape index: {}]   ;;  %s8201_s5 = inlined_call_operand.hbm [shape: bf16[32,512], index: 5, kind: input, shape index: {}]   ;;  %s8202_s6 = inlined_call_operand.hbm [shape: bf16[128,512], index: 6, kind: input, shape index: {}]   ;;  %s8203_s7 = inlined_call_operand.vmem [shape: f32[1,512], index: 7, kind: input, shape index: {}]   ;;  %s8204_s8 = inlined_call_operand.hbm [shape: bf16[32,16,128], index: 8, kind: output, shape index: {0}]   ;;  %s8205_s9 = inlined_call_operand.hbm [shape: f32[16,128], index: 9, kind: output, shape index: {1}]   ;;  %s8206_s10 = inlined_call_operand.hbm [shape: f32[16,128], index: 10, kind: output, shape index: {2}]  }
   0x1   :  { %8222 = sst [smem:[#allocation29_spill]] %s8201_s5  ;;  %s16_s15 = sshll.u32 %s8196_s0, 4  ;;  %s17_s15 = int_to_ptr.vmem [resolvable:$true] %s16_s15 }
   0x2   :  { %s6181_s16 = scalar_lea.vmem %s17_s15, 16  ;;  %p6186_p1 = scmp.lt.s32.totalorder %s17_s15, %s17_s15 }
   0x3   :  { %p6182_p0 = scmp.ne.s32.totalorder %s17_s15, %s6181_s16  ;;  %p6187_p2 = scmp.lt.s32.totalorder %s6181_s16, %s6181_s16 }
   0x5   :  { %p6188_p3 = por %p6187_p2, %p6186_p1 }
   0x7   :  { %p6189_p4 = pnand %p6188_p3, %p6182_p0 }
   0x9   :  { %6192 = shalt.err (!%p6189_p4)  }
   0xa   :  { %s6423_s17 = smov [#allocation6]  }
   0xb   :  { %19 = dma.vmem_to_smem %s17_s15, 16, %s6423_s17, [#allocation5] }
   0xc   :  { %6381 = dma.done.wait [#allocation5], 16 }
   0xd   :  { %6382 = vsyncadd [#allocation5], 4294967280 }
   0xe   :  { %21 = sfence }
   0xf   :  { %22 = vsyncpa [#allocation8], 0 }
  0x10   :  { %23 = vsyncpa [#allocation11], 0 }
  0x11   :  { %24 = vsyncpa [#allocation9], 0 }
  0x12   :  { %26 = vsyncpa [#allocation9 + $0x1], 0 }
  0x13   :  { %27 = vsyncpa [#allocation15], 0  ;;  %s6497_s18 = smov 0   ;;  %s6499_s0 = smov 0  }
  0x14   :  { %s6501_s19 = smov 0   ;;  %s6503_s20 = smov 0  }
  0x15   :  { %s6505_s21 = smov 0   ;;  %s6507_s22 = smov 0  }
  0x16 LB: > { %8223 = sst [smem:[#allocation22_spill]] %s6401_s18  ;;  %s4591_s23 = sadd.s32 4294967295, %s6421_s22   ;;  %s6421_s22 = sphi %s6507_s22, %s33_s22   ;;  %s6417_s21 = sphi %s6505_s21, %s8251_s21   ;;  %s6413_s20 = sphi %s6503_s20, %s8250_s20   ;;  %s6409_s19 = sphi %s6501_s19, %s8249_s19   ;;  %s6405_s0 = sphi %s6499_s0, %s8253_s0   ;;  %s6401_s18 = sphi %s6497_s18, %s8252_s18  }
  0x17   : > { %8224 = sst [smem:[#allocation23_spill]] %s6409_s19  ;;  %s4592_s24 = sadd.s32 4294967294, %s6421_s22  }
  0x18   : > { %8225 = sst [smem:[#allocation24_spill]] %s6417_s21  ;;  %s42_s25 = sadd.s32 1, %s6417_s21 }
  0x19   : > { %8226 = sst [smem:[#allocation25_spill]] %s6421_s22  ;;  %s225_s26 = sadd.s32 1, %s6409_s19 }
  0x1a   : > { %p43_p5 = scmp.ge.s32.totalorder %s42_s25, 2  ;;  %p235_p6 = scmp.ne.s32.totalorder %s6409_s19, %s6405_s0 }
  0x1b   : > { %p6533_p7 = scmp.eq.s32.totalorder %s4591_s23, 1  ;;  %p241_p8 = scmp.ne.s32.totalorder %s6405_s0, %s6401_s18 }
  0x1c   : > { %s8255_s25 = smov (%p43_p5, %s42_s25), 0  ;;  %p242_p10 = scmp.eq.s32.totalorder %s4592_s24, 1 }
  0x1d   : > { %s8227_s27 = scalar_select %p6533_p7, 1, 0 }
  0x1e   : > { %8228 = sst [smem:[#allocation26_spill]] %s8255_s25  ;;  %p6543_p9 = por %p6533_p7, %p235_p6 }
  0x1f   : > { %s220_s29 = ssub.s32 %s6417_s21, %s8255_s25  ;;  %p4593_p11 = scmp.ge.s32.totalorder %s6421_s22, 1 }
  0x20   : > { %s8229_s28 = scalar_select %p6543_p9, 1, 0 }
  0x21   : > { %p223_p12 = scmp.eq.s32.totalorder %s220_s29, 0  ;;  %p6550_p13 = por %p242_p10, %p241_p8 }
  0x22   : > { %p301_p0 = scmp.lt.s32.totalorder %s6421_s22, 3  ;;  %p6562_p2 = scmp.eq.s32.totalorder %s4591_s23, 0 }
  0x23   : > { %s8230_s30 = scalar_select %p6550_p13, 1, 0 }
  0x24   : > { %s6556_s11 = scalar_select %p223_p12, %s6409_s19, %s225_s26  }
  0x25   : > { %8231 = sst [smem:[#allocation27_spill]] %s8230_s30  ;;  %p6558_p1 = pnand %p4593_p11, %p301_p0 }
  0x26   : > { %8232 = sst [smem:[#allocation28_spill]] %s6556_s11  ;;  %s6424_s14 = smov [#allocation10]  }
  0x27   : > { %s8233_s12 = scalar_select %p6558_p1, 1, 0 }
  0x28   : > { %s8234_s13 = scalar_select %p6562_p2, 1, 0 }
  0x29   : > { %p5423_p3 = pneg %p6558_p1  ;;  %s338_s15 = sshll.u32 %s6424_s14, 4  ;;  %s339_s15 = int_to_ptr.vmem [resolvable:$true] %s338_s15 }
  0x2a   : > { %s6425_s17 = smov [#allocation7]   ;;  %s8236_s5 = sld [smem:[#allocation29_spill]] }
  0x2b   : > { %p6570_p4 = pnand %p6562_p2, %p5423_p3  ;;  %s325_s24 = sshll.u32 %s6425_s17, 4  ;;  %s326_s24 = int_to_ptr.vmem [resolvable:$true] %s325_s24 }
  0x2d   : > { %p6582_p6 = pneg %p6570_p4 }
  0x30   : > { %s6193_s23 = scalar_lea.hbm %s8236_s5, 1024 }
  0x31   : > { %p6194_p5 = scmp.ne.s32.totalorder %s8236_s5, %s6193_s23  ;;  %p6200_p11 = scmp.lt.u32.totalorder %s6193_s23, %s8236_s5 }
  0x33   : > { %p6196_p8 = pnand %p6582_p6, %p6194_p5 }
  0x35   : > { %p6197_p10 = pneg %p6196_p8 }
  0x37   : > { %p6202_p12 = pnand %p6200_p11, %p6197_p10 }
  0x39   : > { %6205 = shalt.err (!%p6202_p12)
}
  0x3a   : > { %s6206_s17 = scalar_lea.vmem %s339_s15, 1024  ;;  %p6214_p9 = scmp.lt.s32.totalorder %s339_s15, %s339_s15 }
  0x3b   : > { %p6207_p0 = scmp.ne.s32.totalorder %s339_s15, %s6206_s17  ;;  %p6215_p7 = scmp.lt.s32.totalorder %s6206_s17, %s6206_s17 }
  0x3d   : > { %p6209_p3 = pnand %p6207_p0, %p6582_p6  ;;  %p6216_p2 = por %p6215_p7, %p6214_p9 }
  0x3f   : > { %p6210_p13 = pneg %p6209_p3 }
  0x41   : > { %p6217_p1 = pnand %p6216_p2, %p6210_p13 }
  0x43   : > { %6220 = shalt.err (!%p6217_p1)
}
  0x44   : > { %s8220_s21 = smov 256   ;;  %s8221_s25 = smov 16  }
  0x45   : > { %5429 = dma.hbm_to_vmem [thread:$0]  (!%p6570_p4), %s8236_s5, 1024, %s339_s15, [#allocation11], %s8220_s21, %s8220_s21, %s8221_s25  }
  0x46   : > { %s6221_s23 = scalar_lea.hbm %s8200_s4, 256 }
  0x47   : > { %p6222_p7 = scmp.ne.s32.totalorder %s8200_s4, %s6221_s23  ;;  %p6228_p1 = scmp.lt.u32.totalorder %s6221_s23, %s8200_s4 }
  0x49   : > { %p6224_p9 = pnand %p6222_p7, %p6582_p6 }
  0x4b   : > { %p6225_p13 = pneg %p6224_p9 }
  0x4d   : > { %p6230_p2 = pnand %p6228_p1, %p6225_p13 }
  0x4f   : > { %6233 = shalt.err (!%p6230_p2)
}
  0x50   : > { %s6234_s19 = scalar_lea.vmem %s326_s24, 256  ;;  %p6242_p11 = scmp.lt.s32.totalorder %s326_s24, %s326_s24 }
  0x51   : > { %p6235_p5 = scmp.ne.s32.totalorder %s326_s24, %s6234_s19  ;;  %p6243_p12 = scmp.lt.s32.totalorder %s6234_s19, %s6234_s19 }
  0x53   : > { %p6237_p8 = pnand %p6235_p5, %p6582_p6  ;;  %p6244_p0 = por %p6243_p12, %p6242_p11 }
  0x55   : > { %p6238_p10 = pneg %p6237_p8 }
  0x57   : > { %p6245_p3 = pnand %p6244_p0, %p6238_p10 }
  0x59   : > { %6248 = shalt.err (!%p6245_p3)
}
  0x5a   : > { %s6428_s30 = smov 128   ;;  %s6429_s15 = smov 8  }
  0x5b   : > { %5426 = dma.hbm_to_vmem [thread:$0]  (!%p6570_p4), %s8200_s4, 256, %s326_s24, [#allocation8], %s6428_s30, %s6428_s30, %s6429_s15  }
  0x5c   : > { %s6430_s11 = smov [#allocation12]   ;;  %s6249_s17 = scalar_lea.hbm %s8202_s6, 4096 }
  0x5d   : > { %s351_s26 = sshll.u32 %s6430_s11, 4  ;;  %p6250_p7 = scmp.ne.s32.totalorder %s8202_s6, %s6249_s17  ;;  %s352_s26 = int_to_ptr.vmem [resolvable:$true] %s351_s26 }
  0x5e   : > { %p6256_p1 = scmp.lt.u32.totalorder %s6249_s17, %s8202_s6 }
  0x5f   : > { %p6252_p9 = pnand %p6250_p7, %p6582_p6 }
  0x61   : > { %p6253_p13 = pneg %p6252_p9 }
  0x63   : > { %p6258_p2 = pnand %p6256_p1, %p6253_p13 }
  0x65   : > { %6261 = shalt.err (!%p6258_p2)
}
  0x66   : > { %s6262_s24 = scalar_lea.vmem %s352_s26, 4096  ;;  %p6270_p11 = scmp.lt.s32.totalorder %s352_s26, %s352_s26 }
  0x67   : > { %p6263_p5 = scmp.ne.s32.totalorder %s352_s26, %s6262_s24  ;;  %p6271_p12 = scmp.lt.s32.totalorder %s6262_s24, %s6262_s24 }
  0x69   : > { %p6265_p8 = pnand %p6263_p5, %p6582_p6  ;;  %p6272_p0 = por %p6271_p12, %p6270_p11 }
  0x6b   : > { %p6266_p10 = pneg %p6265_p8 }
  0x6d   : > { %p6273_p3 = pnand %p6272_p0, %p6266_p10 }
  0x6f   : > { %6276 = shalt.err (!%p6273_p3)
}
  0x70   : > { %s8238_s21 = smov 16   ;;  %s8239_s30 = smov 256  }
  0x71   : > { %5432 = dma.hbm_to_vmem [thread:$0]  (!%p6570_p4), %s8202_s6, 4096, %s352_s26, [#allocation11], %s8239_s30, %s8239_s30, %s8238_s21  }
  0x72   : > { %p8240_p7 = scmp.ne.s32.totalorder %s8233_s12, 0 }
  0x73   : > { %p8241_p6 = scmp.ne.s32.totalorder (!%p8240_p7), %s8234_s13, 0 }
  0x74   : > { %400 = sbr.rel (%p8240_p7) target bundleno = 4610 (0x1202), region = 48 }
  0x7b   : > { %6384 = dma.done.wait (%p8241_p6), [#allocation8], 256  }
  0x7c   : > { %6386 = vsyncadd (%p8241_p6), [#allocation8], 4294967040 }
  0x7d   : > { %6388 = dma.done.wait (%p8241_p6), [#allocation11], 5120  }
  0x7e   : > { %6390 = vsyncadd (%p8241_p6), [#allocation11], 4294962176  ;;  %s457_s16 = sand.u32 1, %s6405_s0   ;;  %s4604_s14 = sshll.u32 %s6413_s20, 4 }
  0x7f   : > { %s4603_s12 = sshll.u32 %s457_s16, 7  ;;  %p466_p4 = scmp.lt.s32.totalorder %s4604_s14, 31 }
  0x80   : > { %s6664_s23 = scalar_lea.vmem [#allocation13], %s4603_s12  ;;  %p4610_p9 = scmp.ne.s32.totalorder %s6413_s20, 0 }
  0x81   : > { %s8257_s14 = smov (!%p466_p4, %s4604_s14), 31  ;;  %v504_v0 = vld [vmem:[%s8199_s3] sm:$0xff] (!%p4610_p9)  ;;  %v505_v1 = vld [vmem:[%s8199_s3 + $0x8] sm:$0xff] (!%p4610_p9) }
  0x82   : > { %s4917_s15 = sshll.u32 %s8257_s14, 4  ;;  %503 = sbr.rel (%p4610_p9) target bundleno = 137 (0x89), region = 64  ;;  %v508_v2 = vld [vmem:[#allocation7] sm:$0xff] (!%p4610_p9)  ;;  %506 = vst [vmem:[#allocation3] sm:$0xff] (!%p4610_p9), %v504_v0  ;;  %507 = vst [vmem:[#allocation3 + $0x8] sm:$0xff] (!%p4610_p9), %v505_v1  ;;  %v509_v3 = vld [vmem:[#allocation7 + $0x8] sm:$0xff] (!%p4610_p9) }
  0x83   : > { %s6657_s11 = scalar_lea.vmem %s8197_s1, %s4917_s15  ;;  %s6662_s13 = scalar_lea.vmem %s8198_s2, %s4917_s15  ;;  %510 = vst [vmem:[#allocation4] sm:$0xff] (!%p4610_p9), %v508_v2  ;;  %511 = vst [vmem:[#allocation4 + $0x8] sm:$0xff] (!%p4610_p9), %v509_v3 }
  0x89 PF: > { %s512_s30 = sshra.s32 %s6413_s20, 7  ;;  %s517_s5 = sand.u32 127, %s6413_s20 }
  0x8a   : > { %s4611_s25 = sshll.u32 %s512_s30, 7 }
  0x8b   : > { %s518_s14 = sadd.s32 %s4611_s25, %s517_s5 }
  0x8c   : > { %s6675_s12 = sld [smem:[#allocation6 + %s518_s14]] }
  0x92   : > { %p4612_p13 = scmp.le.s32.totalorder %s6675_s12, 0 }
  0x93   : > { %v5513_v4 = vld [vmem:[#allocation10 + $0x4] ss:$16 sps:$4 sm:$0xff] (!%p4612_p13)   ;;  %v5515_v5 = vld [vmem:[#allocation10 + $0xc] ss:$16 sps:$4 sm:$0xff] (!%p4612_p13)   ;;  %v6431_v6 = vmov (!%p4612_p13), 0   ;;  %vm642_vm0 = vcmask (!%p4612_p13), 261120  }
  0x94   : > { %523 = sbr.rel (%p4612_p13) target bundleno = 4511 (0x119f), region = 68  ;;  %723 = vmatprep.mubr.bf16.mxu0 (!%p4612_p13), %v6431_v6  ;;  %916 = vmatprep.mubr.bf16.mxu1 (!%p4612_p13), %v6431_v6  ;;  %v5517_v7 = vld [vmem:[#allocation10] ss:$16 sps:$4 sm:$0xff] (!%p4612_p13)   ;;  %v5518_v8 = vld [vmem:[#allocation10 + $0x8] ss:$16 sps:$4 sm:$0xff] (!%p4612_p13)  }
  0x95   : > { %691 = vmatprep.subr.bf16.mxu0 (!%p4612_p13), %v5513_v4  ;;  %5511 = vset.pattern.permute.xlu0 (!%p4612_p13), %v6431_v6  ;;  %v5519_v9 = vld [vmem:[#allocation10 + $0x24] ss:$16 sps:$4 sm:$0xff] (!%p4612_p13)   ;;  %v5521_v10 = vld [vmem:[#allocation10 + $0x2c] ss:$16 sps:$4 sm:$0xff] (!%p4612_p13)   ;;  %v5523_v11 = vld [vmem:[#allocation10 + $0x20] ss:$16 sps:$4 sm:$0xff] (!%p4612_p13)  }
  0x96   : > { %884 = vmatprep.subr.bf16.mxu1 (!%p4612_p13), %v5515_v5  ;;  %5512 = vset.pattern.permute.xlu1 (!%p4612_p13), %v6431_v6  ;;  %v5524_v12 = vld [vmem:[#allocation10 + $0x28] ss:$16 sps:$4 sm:$0xff] (!%p4612_p13)   ;;  %v524_v13 = vld [vmem:[%s6657_s11] sm:$0xff] (!%p4612_p13)  ;;  %v6688_v18 = vld [vmem:[#allocation12 + $0xc] ss:$16 sps:$4 sm:$0xff] (!%p4612_p13)  }
  0x97   : > { %692 = vmatpush1.bf16.msra.mxu0 (!%p4612_p13), %v5517_v7  ;;  %885 = vmatpush1.bf16.msra.mxu1 (!%p4612_p13), %v5518_v8  ;;  %v525_v14 = vld [vmem:[%s6657_s11 + $0x8] sm:$0xff] (!%p4612_p13)  ;;  %v6684_v15 = vld [vmem:[#allocation12 + $0x4] ss:$16 sps:$4 sm:$0xff] (!%p4612_p13)   ;;  %v6686_v17 = vld [vmem:[#allocation12] ss:$16 sps:$4 sm:$0xff] (!%p4612_p13)  }
  0x98   : > { %693 = vmatprep.subr.bf16.mxu0 (!%p4612_p13), %v5519_v9  ;;  %886 = vmatprep.subr.bf16.mxu1 (!%p4612_p13), %v5521_v10  ;;  %v556_v16 = vpack.c.bf16 (!%p4612_p13), %v525_v14, %v524_v13  ;;  %v6692_v19 = vld [vmem:[#allocation12 + $0x24] ss:$16 sps:$4 sm:$0xff] (!%p4612_p13)   ;;  %v6694_v20 = vld [vmem:[#allocation12 + $0x8] ss:$16 sps:$4 sm:$0xff] (!%p4612_p13)   ;;  %v6700_v23 = vld [vmem:[#allocation12 + $0x20] ss:$16 sps:$4 sm:$0xff] (!%p4612_p13)  }
  0x99   : > { %v526_v21 = vld [vmem:[%s6657_s11 + $0x10] sm:$0xff] (!%p4612_p13)  ;;  %v527_v22 = vld [vmem:[%s6657_s11 + $0x18] sm:$0xff] (!%p4612_p13)  ;;  %v528_v32 = vld [vmem:[%s6657_s11 + $0x20] sm:$0xff] (!%p4612_p13) }
  0x9a   : > { %v6704_v24 = vld [vmem:[#allocation12 + $0x2c] ss:$16 sps:$4 sm:$0xff] (!%p4612_p13)   ;;  %v6709_v25 = vld [vmem:[#allocation12 + $0x44] ss:$16 sps:$4 sm:$0xff] (!%p4612_p13)   ;;  %v6711_v26 = vld [vmem:[#allocation12 + $0x28] ss:$16 sps:$4 sm:$0xff] (!%p4612_p13)   ;;  %v557_v27 = vpack.c.bf16 (!%p4612_p13), %v527_v22, %v526_v21 }
  0x9b   : > { %694 = vmatpush1.bf16.msra.mxu0 %v5523_v11  ;;  %887 = vmatpush1.bf16.msra.mxu1 %v5524_v12  ;;  %v6716_v28 = vld [vmem:[#allocation12 + $0x40] ss:$16 sps:$4 sm:$0xff]   ;;  %v6718_v29 = vld [vmem:[#allocation12 + $0x4c] ss:$16 sps:$4 sm:$0xff]   ;;  %v6721_v30 = vld [vmem:[#allocation12 + $0x64] ss:$16 sps:$4 sm:$0xff]  }
  0x9c   : > { %1410 = vmatprep.subr.bf16.mxu0 %v6684_v15  ;;  %1453 = vmatprep.subr.bf16.mxu1 %v6688_v18  ;;  %v6723_v31 = vld [vmem:[#allocation12 + $0x48] ss:$16 sps:$4 sm:$0xff]   ;;  %v6731_v34 = vld [vmem:[#allocation12 + $0x6c] ss:$16 sps:$4 sm:$0xff]   ;;  %v6735_v35 = vld [vmem:[#allocation12 + $0x60] ss:$16 sps:$4 sm:$0xff]  }
  0x9d   : > { %v529_v33 = vld [vmem:[%s6657_s11 + $0x28] sm:$0xff]  ;;  %v6739_v36 = vld [vmem:[#allocation12 + $0x84] ss:$16 sps:$4 sm:$0xff]   ;;  %v6745_v39 = vld [vmem:[#allocation12 + $0x80] ss:$16 sps:$4 sm:$0xff]  }
  0x9e   : > { %4621 = vmatmul.mubr.msk.bf16.vlgmr.msra.gmra.mrb[0].mxu0 %vm642_vm0, %v556_v16  ;;  %4637 = vmatmul.mubr.msk.bf16.vlgmr.msra.gmra.mrb[0].mxu1 %vm642_vm0, %v556_v16  ;;  %v6741_v37 = vld [vmem:[#allocation12 + $0x68] ss:$16 sps:$4 sm:$0xff]   ;;  %v558_v38 = vpack.c.bf16 %v529_v33, %v528_v32  ;;  %v6747_v40 = vld [vmem:[#allocation12 + $0x8c] ss:$16 sps:$4 sm:$0xff]   ;;  %v6751_v41 = vld [vmem:[#allocation12 + $0xa4] ss:$16 sps:$4 sm:$0xff]  }
  0x9f   : > { %1411 = vmatpush1.bf16.msra.mxu0 %v6686_v17  ;;  %733 = vmatprep.mubr.bf16.mxu0 %v6431_v6  ;;  %v6753_v42 = vld [vmem:[#allocation12 + $0x88] ss:$16 sps:$4 sm:$0xff]   ;;  %v530_v43 = vld [vmem:[%s6657_s11 + $0x30] sm:$0xff]  ;;  %v6761_v45 = vld [vmem:[#allocation12 + $0xac] ss:$16 sps:$4 sm:$0xff]  }
  0xa0   : > { %926 = vmatprep.mubr.bf16.mxu1 %v6431_v6  ;;  %1412 = vmatprep.subr.bf16.mxu0 %v6692_v19  ;;  %v531_v44 = vld [vmem:[%s6657_s11 + $0x38] sm:$0xff]  ;;  %v6765_v46 = vld [vmem:[#allocation12 + $0xa0] ss:$16 sps:$4 sm:$0xff]   ;;  %v6769_v47 = vld [vmem:[#allocation12 + $0xc4] ss:$16 sps:$4 sm:$0xff]  }
  0xa1   : > { %1454 = vmatpush1.bf16.msra.mxu1 %v6694_v20  ;;  %v6771_v48 = vld [vmem:[#allocation12 + $0xa8] ss:$16 sps:$4 sm:$0xff]   ;;  %v559_v49 = vpack.c.bf16 %v531_v44, %v530_v43  ;;  %v6775_v50 = vld [vmem:[#allocation12 + $0xc0] ss:$16 sps:$4 sm:$0xff]   ;;  %v6777_v51 = vld [vmem:[#allocation12 + $0xcc] ss:$16 sps:$4 sm:$0xff]  }
  0xa2   : > { %1455 = vmatprep.subr.bf16.mxu1 %v6704_v24  ;;  %v6781_v52 = vld [vmem:[#allocation12 + $0xe4] ss:$16 sps:$4 sm:$0xff]   ;;  %v6783_v53 = vld [vmem:[#allocation12 + $0xc8] ss:$16 sps:$4 sm:$0xff]   ;;  %v6791_v56 = vld [vmem:[#allocation12 + $0xec] ss:$16 sps:$4 sm:$0xff]  }
  0xa3   : > { %1413 = vmatpush1.bf16.msra.mxu0 %v6700_v23  ;;  %v532_v54 = vld [vmem:[%s6657_s11 + $0x40] sm:$0xff]  ;;  %v533_v55 = vld [vmem:[%s6657_s11 + $0x48] sm:$0xff]  ;;  %v534_v1 = vld [vmem:[%s6657_s11 + $0x50] sm:$0xff] }
  0xa4   : > { %1414 = vmatprep.subr.bf16.mxu0 %v6709_v25  ;;  %v6795_v57 = vld [vmem:[#allocation12 + $0xe0] ss:$16 sps:$4 sm:$0xff]   ;;  %v6799_v58 = vld [vmem:[#allocation12 + $0xe8] ss:$16 sps:$4 sm:$0xff]   ;;  %v560_v61 = vpack.c.bf16 %v533_v55, %v532_v54 }
  0xa5   : > { %1456 = vmatpush1.bf16.msra.mxu1 %v6711_v26  ;;  %v1552_v59 = vld [vmem:[%s6662_s13] sm:$0xff]  ;;  %v1553_v60 = vld [vmem:[%s6662_s13 + $0x8] sm:$0xff]  ;;  %v535_v2 = vld [vmem:[%s6657_s11 + $0x58] sm:$0xff] }
  0xa6   : > { %4622 = vmatmul.mubr.msk.bf16.gmra.mrb[4].mxu0 %vm642_vm0, %v557_v27  ;;  %4638 = vmatmul.mubr.msk.bf16.gmra.mrb[4].mxu1 %vm642_vm0, %v557_v27  ;;  %vm1554_vm1 = vcmp.gt.f32.partialorder %v1552_v59, 0.5  ;;  %vm1555_vm2 = vcmp.gt.f32.partialorder %v1553_v60, 0.5  ;;  %v4711_v63 = vld [vmem:[%s6662_s13 + $0x20] sm:$0xff]  ;;  %v4723_v3 = vld [vmem:[%s6662_s13 + $0x30] sm:$0xff]  ;;  %v561_v5 = vpack.c.bf16 %v535_v2, %v534_v1  ;;  %v537_v10 = vld [vmem:[%s6657_s11 + $0x68] sm:$0xff] }
  0xa7   : > { %743 = vmatprep.mubr.bf16.mxu0 %v6431_v6  ;;  %936 = vmatprep.mubr.bf16.mxu1 %v6431_v6  ;;  %v1556_v62 = vsel %vm1554_vm1, 1, %v6431_v6  ;;  %v1557_v0 = vsel %vm1555_vm2, 1, %v6431_v6  ;;  %vm1915_vm3 = vcmp.gt.f32.partialorder %v4711_v63, 0.5  ;;  %vm2096_vm4 = vcmp.gt.f32.partialorder %v4723_v3, 0.5  ;;  %v4735_v7 = vld [vmem:[%s6662_s13 + $0x40] sm:$0xff]  ;;  %v4747_v11 = vld [vmem:[%s6662_s13 + $0x50] sm:$0xff] }
  0xa8   : > { %1415 = vmatpush1.bf16.msra.mxu0 %v6716_v28  ;;  %1457 = vmatprep.subr.bf16.mxu1 %v6718_v29  ;;  %v1917_v4 = vsel %vm1915_vm3, 1, %v6431_v6  ;;  %v2098_v8 = vsel %vm2096_vm4, 1, %v6431_v6  ;;  %vm2277_vm5 = vcmp.gt.f32.partialorder %v4735_v7, 0.5  ;;  %v536_v9 = vld [vmem:[%s6657_s11 + $0x60] sm:$0xff]  ;;  %vm2458_vm6 = vcmp.gt.f32.partialorder %v4747_v11, 0.5  ;;  %v538_v21 = vld [vmem:[%s6657_s11 + $0x70] sm:$0xff] }
  0xa9   : > { %1416 = vmatprep.subr.bf16.mxu0 %v6721_v30  ;;  %1458 = vmatpush1.bf16.msra.mxu1 %v6723_v31  ;;  %v2279_v12 = vsel %vm2277_vm5, 1, %v6431_v6  ;;  %v562_v13 = vpack.c.bf16 %v537_v10, %v536_v9  ;;  %v4759_v14 = vld [vmem:[%s6662_s13 + $0x60] sm:$0xff]  ;;  %v2460_v16 = vsel %vm2458_vm6, 1, %v6431_v6  ;;  %v539_v22 = vld [vmem:[%s6657_s11 + $0x78] sm:$0xff]  ;;  %v4771_v27 = vld [vmem:[%s6662_s13 + $0x70] sm:$0xff] }
  0xaa   : > { %1459 = vmatprep.subr.bf16.mxu1 %v6731_v34  ;;  %1559 = vperm.xlu0 %5511, %v1556_v62   ;;  %vm2639_vm7 = vcmp.gt.f32.partialorder %v4759_v14, 0.5  ;;  %v563_v33 = vpack.c.bf16 %v539_v22, %v538_v21  ;;  %vm2820_vm8 = vcmp.gt.f32.partialorder %v4771_v27, 0.5  ;;  %v540_v44 = vld [vmem:[%s6657_s11 + $0x80] sm:$0xff]  ;;  %v4795_v54 = vld [vmem:[%s6662_s13 + $0x90] sm:$0xff]  ;;  %v543_v63 = vld [vmem:[%s6657_s11 + $0x98] sm:$0xff] }
  0xab   : > { %v2641_v32 = vsel %vm2639_vm7, 1, %v6431_v6  ;;  %v2822_v43 = vsel %vm2820_vm8, 1, %v6431_v6  ;;  %vm3182_vm10 = vcmp.gt.f32.partialorder %v4795_v54, 0.5  ;;  %v4807_v60 = vld [vmem:[%s6662_s13 + $0xa0] sm:$0xff]  ;;  %v542_v62 = vld [vmem:[%s6657_s11 + $0x90] sm:$0xff]  ;;  %v545_v7 = vld [vmem:[%s6657_s11 + $0xa8] sm:$0xff] }
  0xac   : > { %1417 = vmatpush1.bf16.msra.mxu0 %v6735_v35  ;;  %vm3363_vm11 = vcmp.gt.f32.partialorder %v4807_v60, 0.5  ;;  %v565_v2 = vpack.c.bf16 %v543_v63, %v542_v62  ;;  %v4831_v3 = vld [vmem:[%s6662_s13 + $0xc0] sm:$0xff]  ;;  %v547_v14 = vld [vmem:[%s6657_s11 + $0xb8] sm:$0xff]  ;;  %v554_v60 = vld [vmem:[%s6657_s11 + $0xf0] sm:$0xff] }
  0xad   : > { %1418 = vmatprep.subr.bf16.mxu0 %v6739_v36  ;;  %1460 = vmatpush1.bf16.msra.mxu1 %v6741_v37  ;;  %v3365_v1 = vsel %vm3363_vm11, 1, %v6431_v6  ;;  %vm3725_vm13 = vcmp.gt.f32.partialorder %v4831_v3, 0.5  ;;  %v4855_v11 = vld [vmem:[%s6662_s13 + $0xe0] sm:$0xff]  ;;  %v4700_v3 = vld [vmem:[%s6662_s13 + $0x18] sm:$0xff] }
  0xae   : > { %4623 = vmatmul.mubr.msk.bf16.gmra.mrb[8].mxu0 %vm642_vm0, %v558_v38  ;;  %4639 = vmatmul.mubr.msk.bf16.gmra.mrb[8].mxu1 %vm642_vm0, %v558_v38  ;;  %v4783_v38 = vld [vmem:[%s6662_s13 + $0x80] sm:$0xff]  ;;  %v3727_v9 = vsel %vm3725_vm13, 1, %v6431_v6  ;;  %vm4087_vm15 = vcmp.gt.f32.partialorder %v4855_v11, 0.5  ;;  %vm1735_vm2 = vcmp.gt.f32.partialorder %v4700_v3, 0.5 }
  0xaf   : > { %753 = vmatprep.mubr.bf16.mxu0 %v6431_v6  ;;  %946 = vmatprep.mubr.bf16.mxu1 %v6431_v6  ;;  %vm3001_vm9 = vcmp.gt.f32.partialorder %v4783_v38, 0.5  ;;  %v4089_v21 = vsel %vm4087_vm15, 1, %v6431_v6  ;;  %v552_v54 = vld [vmem:[%s6657_s11 + $0xe0] sm:$0xff] }
  0xb0   : > { %1419 = vmatpush1.bf16.msra.mxu0 %v6745_v39  ;;  %1461 = vmatprep.subr.bf16.mxu1 %v6747_v40  ;;  %v3003_v55 = vsel %vm3001_vm9, 1, %v6431_v6  ;;  %v6908_v63 = vld [vmem:[#allocation3] sm:$0xff] }
  0xb1   : > { %1420 = vmatprep.subr.bf16.mxu0 %v6751_v41  ;;  %1462 = vmatpush1.bf16.msra.mxu1 %v6753_v42 }
  0xb2   : > { %1463 = vmatprep.subr.bf16.mxu1 %v6761_v45  ;;  %1562 = vperm.xlu0 %5511, %v1557_v0   ;;  %v4819_v0 = vld [vmem:[%s6662_s13 + $0xb0] sm:$0xff] }
  0xb3   : > { %vm3544_vm12 = vcmp.gt.f32.partialorder %v4819_v0, 0.5  ;;  %v6910_v0 = vld [vmem:[#allocation3 + $0x8] sm:$0xff] }
  0xb4   : > { %1421 = vmatpush1.bf16.msra.mxu0 %v6765_v46 }
  0xb5   : > { %1422 = vmatprep.subr.bf16.mxu0 %v6769_v47  ;;  %1464 = vmatpush1.bf16.msra.mxu1 %v6771_v48 }
  0xb6   : > { %4624 = vmatmul.mubr.msk.bf16.gmra.mrb[12].mxu0 %vm642_vm0, %v559_v49  ;;  %4640 = vmatmul.mubr.msk.bf16.gmra.mrb[12].mxu1 %vm642_vm0, %v559_v49  ;;  %v541_v49 = vld [vmem:[%s6657_s11 + $0x88] sm:$0xff] }
  0xb7   : > { %763 = vmatprep.mubr.bf16.mxu0 %v6431_v6  ;;  %956 = vmatprep.mubr.bf16.mxu1 %v6431_v6  ;;  %v564_v59 = vpack.c.bf16 %v541_v49, %v540_v44  ;;  %v551_v44 = vld [vmem:[%s6657_s11 + $0xd8] sm:$0xff] }
  0xb8   : > { %1423 = vmatpush1.bf16.msra.mxu0 %v6775_v50  ;;  %1465 = vmatprep.subr.bf16.mxu1 %v6777_v51 }
  0xb9   : > { %1424 = vmatprep.subr.bf16.mxu0 %v6781_v52  ;;  %1466 = vmatpush1.bf16.msra.mxu1 %v6783_v53 }
  0xba   : > { %1467 = vmatprep.subr.bf16.mxu1 %v6791_v56  ;;  %1920 = vperm.xlu0 %5511, %v1917_v4   ;;  %v3546_v4 = vsel %vm3544_vm12, 1, %v6431_v6 }
  0xbc   : > { %1425 = vmatpush1.bf16.msra.mxu0 %v6795_v57 }
  0xbd   : > { %1468 = vmatpush1.bf16.msra.mxu1 %v6799_v58  ;;  %1589 = vmatprep.subr.bf16.mxu0 %v6684_v15 }
  0xbe   : > { %4625 = vmatmul.mubr.msk.bf16.gmra.mrb[16].mxu0 %vm642_vm0, %v560_v61  ;;  %4641 = vmatmul.mubr.msk.bf16.gmra.mrb[16].mxu1 %vm642_vm0, %v560_v61  ;;  %v3184_v61 = vsel %vm3182_vm10, 1, %v6431_v6 }
  0xbf   : > { %773 = vmatprep.mubr.bf16.mxu0 %v6431_v6  ;;  %966 = vmatprep.mubr.bf16.mxu1 %v6431_v6 }
  0xc0   : > { %1632 = vmatprep.subr.bf16.mxu1 %v6688_v18  ;;  %2101 = vperm.xlu0 %5511, %v2098_v8   ;;  %v4843_v8 = vld [vmem:[%s6662_s13 + $0xd0] sm:$0xff] }
  0xc1   : > { %vm3906_vm14 = vcmp.gt.f32.partialorder %v4843_v8, 0.5  ;;  %v4724_v8 = vld [vmem:[%s6662_s13 + $0x38] sm:$0xff] }
  0xc2   : > { %vm2097_vm4 = vcmp.gt.f32.partialorder %v4724_v8, 0.5 }
  0xc3   : > { %v2099_v11 = vsel %vm2097_vm4, 1, %v6431_v6 }
  0xc4   : > { %2282 = vperm.xlu0 %5511, %v2279_v12   ;;  %v3908_v12 = vsel %vm3906_vm14, 1, %v6431_v6 }
  0xc6   : > { %4626 = vmatmul.mubr.msk.bf16.gmra.mrb[20].mxu0 %vm642_vm0, %v561_v5  ;;  %4642 = vmatmul.mubr.msk.bf16.gmra.mrb[20].mxu1 %vm642_vm0, %v561_v5  ;;  %v544_v5 = vld [vmem:[%s6657_s11 + $0xa0] sm:$0xff] }
  0xc7   : > { %783 = vmatprep.mubr.bf16.mxu0 %v6431_v6  ;;  %976 = vmatprep.mubr.bf16.mxu1 %v6431_v6  ;;  %v566_v10 = vpack.c.bf16 %v545_v7, %v544_v5  ;;  %v4712_v5 = vld [vmem:[%s6662_s13 + $0x28] sm:$0xff]  ;;  %v1737_v7 = vsel %vm1735_vm2, 1, %v6431_v6 }
  0xc8   : > { %2463 = vperm.xlu0 %5511, %v2460_v16   ;;  %v4867_v16 = vld [vmem:[%s6662_s13 + $0xf0] sm:$0xff]  ;;  %vm1916_vm3 = vcmp.gt.f32.partialorder %v4712_v5, 0.5 }
  0xc9   : > { %vm4268_vm1 = vcmp.gt.f32.partialorder %v4867_v16, 0.5 }
  0xca   : > { %v4270_v27 = vsel %vm4268_vm1, 1, %v6431_v6 }
  0xcc   : > { %2644 = vperm.xlu0 %5511, %v2641_v32   ;;  %v548_v32 = vld [vmem:[%s6657_s11 + $0xc0] sm:$0xff] }
  0xce   : > { %4627 = vmatmul.mubr.msk.bf16.gmra.mrb[24].mxu0 %vm642_vm0, %v562_v13  ;;  %4643 = vmatmul.mubr.msk.bf16.gmra.mrb[24].mxu1 %vm642_vm0, %v562_v13  ;;  %v546_v13 = vld [vmem:[%s6657_s11 + $0xb0] sm:$0xff] }
  0xcf   : > { %793 = vmatprep.mubr.bf16.mxu0 %v6431_v6  ;;  %986 = vmatprep.mubr.bf16.mxu1 %v6431_v6  ;;  %v567_v22 = vpack.c.bf16 %v547_v14, %v546_v13  ;;  %v4760_v14 = vld [vmem:[%s6662_s13 + $0x68] sm:$0xff] }
  0xd0   : > { %2825 = vperm.xlu0 %5511, %v2822_v43   ;;  %v550_v43 = vld [vmem:[%s6657_s11 + $0xd0] sm:$0xff]  ;;  %vm2640_vm7 = vcmp.gt.f32.partialorder %v4760_v14, 0.5 }
  0xd1   : > { %v569_v49 = vpack.c.bf16 %v551_v44, %v550_v43  ;;  %v4808_v43 = vld [vmem:[%s6662_s13 + $0xa8] sm:$0xff] }
  0xd2   : > { %vm3364_vm11 = vcmp.gt.f32.partialorder %v4808_v43, 0.5 }
  0xd4   : > { %3006 = vperm.xlu0 %5511, %v3003_v55   ;;  %v553_v55 = vld [vmem:[%s6657_s11 + $0xe8] sm:$0xff] }
  0xd6   : > { %4628 = vmatmul.mubr.msk.bf16.gmra.mrb[28].mxu0 %vm642_vm0, %v563_v33  ;;  %4644 = vmatmul.mubr.msk.bf16.gmra.mrb[28].mxu1 %vm642_vm0, %v563_v33  ;;  %v549_v33 = vld [vmem:[%s6657_s11 + $0xc8] sm:$0xff] }
  0xd7   : > { %803 = vmatprep.mubr.bf16.mxu0 %v6431_v6  ;;  %996 = vmatprep.mubr.bf16.mxu1 %v6431_v6  ;;  %v568_v38 = vpack.c.bf16 %v549_v33, %v548_v32  ;;  %v4796_v33 = vld [vmem:[%s6662_s13 + $0x98] sm:$0xff] }
  0xd8   : > { %3187 = vperm.xlu0 %5511, %v3184_v61   ;;  %v555_v61 = vld [vmem:[%s6657_s11 + $0xf8] sm:$0xff]  ;;  %vm3183_vm10 = vcmp.gt.f32.partialorder %v4796_v33, 0.5 }
  0xd9   : > { %v571_v62 = vpack.c.bf16 %v555_v61, %v554_v60  ;;  %v3185_v44 = vsel %vm3183_vm10, 1, %v6431_v6  ;;  %v4844_v60 = vld [vmem:[%s6662_s13 + $0xd8] sm:$0xff] }
  0xda   : > { %vm3907_vm14 = vcmp.gt.f32.partialorder %v4844_v60, 0.5 }
  0xdc   : > { %3368 = vperm.xlu0 %5511, %v3365_v1   ;;  %v1249_v1 = vpack.c.bf16 %v6910_v0, %v6908_v63 }
  0xde   : > { %4629 = vmatmul.mubr.msk.bf16.gmra.mrb[32].mxu0 %vm642_vm0, %v564_v59  ;;  %4645 = vmatmul.mubr.msk.bf16.gmra.mrb[32].mxu1 %vm642_vm0, %v564_v59  ;;  %v570_v59 = vpack.c.bf16 %v553_v55, %v552_v54  ;;  %v3366_v54 = vsel %vm3364_vm11, 1, %v6431_v6  ;;  %v4832_v55 = vld [vmem:[%s6662_s13 + $0xc8] sm:$0xff] }
  0xdf   : > { %813 = vmatprep.mubr.bf16.mxu0 %v6431_v6  ;;  %1006 = vmatprep.mubr.bf16.mxu1 %v6431_v6  ;;  %vm3726_vm13 = vcmp.gt.f32.partialorder %v4832_v55, 0.5 }
  0xe0   : > { %3549 = vperm.xlu0 %5511, %v3546_v4   ;;  %v3728_v61 = vsel %vm3726_vm13, 1, %v6431_v6 }
  0xe4   : > { %3730 = vperm.xlu0 %5511, %v3727_v9   ;;  %v1918_v9 = vsel %vm1916_vm3, 1, %v6431_v6 }
  0xe6   : > { %4630 = vmatmul.mubr.msk.bf16.gmra.mrb[36].mxu0 %vm642_vm0, %v565_v2  ;;  %4646 = vmatmul.mubr.msk.bf16.gmra.mrb[36].mxu1 %vm642_vm0, %v565_v2  ;;  %v4699_v2 = vld [vmem:[%s6662_s13 + $0x10] sm:$0xff] }
  0xe7   : > { %823 = vmatprep.mubr.bf16.mxu0 %v6431_v6  ;;  %1016 = vmatprep.mubr.bf16.mxu1 %v6431_v6 }
  0xe8   : > { %3911 = vperm.xlu0 %5511, %v3908_v12   ;;  %v4748_v12 = vld [vmem:[%s6662_s13 + $0x58] sm:$0xff] }
  0xe9   : > { %vm2459_vm6 = vcmp.gt.f32.partialorder %v4748_v12, 0.5 }
  0xea   : > { %v2461_v16 = vsel %vm2459_vm6, 1, %v6431_v6 }
  0xec   : > { %4092 = vperm.xlu0 %5511, %v4089_v21   ;;  %v4772_v21 = vld [vmem:[%s6662_s13 + $0x78] sm:$0xff] }
  0xed   : > { %vm2821_vm8 = vcmp.gt.f32.partialorder %v4772_v21, 0.5 }
  0xee   : > { %4631 = vmatmul.mubr.msk.bf16.gmra.mrb[40].mxu0 %vm642_vm0, %v566_v10  ;;  %4647 = vmatmul.mubr.msk.bf16.gmra.mrb[40].mxu1 %vm642_vm0, %v566_v10  ;;  %v4736_v10 = vld [vmem:[%s6662_s13 + $0x48] sm:$0xff]  ;;  %v2823_v32 = vsel %vm2821_vm8, 1, %v6431_v6 }
  0xef   : > { %833 = vmatprep.mubr.bf16.mxu0 %v6431_v6  ;;  %1026 = vmatprep.mubr.bf16.mxu1 %v6431_v6  ;;  %vm2278_vm5 = vcmp.gt.f32.partialorder %v4736_v10, 0.5 }
  0xf0   : > { %4273 = vperm.xlu0 %5511, %v4270_v27   ;;  %v2280_v13 = vsel %vm2278_vm5, 1, %v6431_v6  ;;  %v4784_v27 = vld [vmem:[%s6662_s13 + $0x88] sm:$0xff] }
  0xf1   : > { %vm3002_vm9 = vcmp.gt.f32.partialorder %v4784_v27, 0.5 }
  0xf6   : > { %4632 = vmatmul.mubr.msk.bf16.gmra.mrb[44].mxu0 %vm642_vm0, %v567_v22  ;;  %4648 = vmatmul.mubr.msk.bf16.gmra.mrb[44].mxu1 %vm642_vm0, %v567_v22  ;;  %v2642_v22 = vsel %vm2640_vm7, 1, %v6431_v6 }
  0xf7   : > { %843 = vmatprep.mubr.bf16.mxu0 %v6431_v6  ;;  %1036 = vmatprep.mubr.bf16.mxu1 %v6431_v6 }
  0xfe   : > { %4633 = vmatmul.mubr.msk.bf16.gmra.mrb[48].mxu0 %vm642_vm0, %v568_v38  ;;  %4649 = vmatmul.mubr.msk.bf16.gmra.mrb[48].mxu1 %vm642_vm0, %v568_v38  ;;  %v3004_v38 = vsel %vm3002_vm9, 1, %v6431_v6 }
  0xff   : > { %853 = vmatprep.mubr.bf16.mxu0 %v6431_v6  ;;  %1046 = vmatprep.mubr.bf16.mxu1 %v6431_v6 }
 0x106   : > { %4634 = vmatmul.mubr.msk.bf16.gmra.mrb[52].mxu0 %vm642_vm0, %v569_v49  ;;  %4650 = vmatmul.mubr.msk.bf16.gmra.mrb[52].mxu1 %vm642_vm0, %v569_v49  ;;  %v4820_v49 = vld [vmem:[%s6662_s13 + $0xb8] sm:$0xff] }
 0x107   : > { %863 = vmatprep.mubr.bf16.mxu0 %v6431_v6  ;;  %1056 = vmatprep.mubr.bf16.mxu1 %v6431_v6  ;;  %vm3545_vm12 = vcmp.gt.f32.partialorder %v4820_v49, 0.5 }
 0x10e   : > { %4635 = vmatmul.mubr.msk.bf16.gmra.mrb[56].mxu0 %vm642_vm0, %v570_v59  ;;  %4651 = vmatmul.mubr.msk.bf16.gmra.mrb[56].mxu1 %vm642_vm0, %v570_v59  ;;  %v3547_v59 = vsel %vm3545_vm12, 1, %v6431_v6 }
 0x10f   : > { %873 = vmatprep.mubr.bf16.mxu0 %v6431_v6  ;;  %1066 = vmatprep.mubr.bf16.mxu1 %v6431_v6 }
 0x116   : > { %4636 = vmatmul.mubr.msk.bf16.gmra.mrb[60].mxu0 %vm642_vm0, %v571_v62  ;;  %4652 = vmatmul.mubr.msk.bf16.gmra.mrb[60].mxu1 %vm642_vm0, %v571_v62  ;;  %vm1734_vm0 = vcmp.gt.f32.partialorder %v4699_v2, 0.5  ;;  %v4856_v62 = vld [vmem:[%s6662_s13 + $0xe8] sm:$0xff]  ;;  %v4868_v2 = vld [vmem:[%s6662_s13 + $0xf8] sm:$0xff] }
 0x117   : > { %1442 = vmatprep.mubr.bf16.mxu0 %v6431_v6  ;;  %1485 = vmatprep.mubr.bf16.mxu1 %v6431_v6  ;;  %v1736_v4 = vsel %vm1734_vm0, 1, %v6431_v6  ;;  %vm4088_vm15 = vcmp.gt.f32.partialorder %v4856_v62, 0.5  ;;  %vm4269_vm1 = vcmp.gt.f32.partialorder %v4868_v2, 0.5 }
 0x118   : > { %1739 = vperm.xlu1 %5512, %v1736_v4   ;;  %v4090_v3 = vsel %vm4088_vm15, 1, %v6431_v6  ;;  %v582_v4 = vlaneseq  ;;  %v4271_v5 = vsel %vm4269_vm1, 1, %v6431_v6 }
 0x11c   : > { %1742 = vperm.xlu1 %5512, %v1737_v7   ;;  %v583_v7 = vshrl.u32 %v582_v4, 7 }
 0x11e   : > { %1443 = vmatmul.mubr.bf16.vlgmr.msra.gmra.mrb[0].mxu0 %v1249_v1  ;;  %1486 = vmatmul.mubr.bf16.vlgmr.msra.gmra.mrb[0].mxu1 %v1249_v1  ;;  %v3909_v1 = vsel %vm3907_vm14, 1, %v6431_v6  ;;  %v584_v8 = vsub.s32 0, %v583_v7  ;;  %v588_v10 = vsub.s32 1, %v583_v7  ;;  %v592_v14 = vsub.s32 2, %v583_v7 }
 0x11f   : > { %1590 = vmatpush1.bf16.msra.mxu0 %v6686_v17  ;;  %1633 = vmatpush1.bf16.msra.mxu1 %v6694_v20 }
 0x120   : > { %1591 = vmatprep.subr.bf16.mxu0 %v6692_v19  ;;  %1634 = vmatprep.subr.bf16.mxu1 %v6704_v24 }
 0x121   : > { %1621 = vmatprep.mubr.bf16.mxu0 %v6431_v6  ;;  %1664 = vmatprep.mubr.bf16.mxu1 %v6431_v6 }
 0x122   : > { %1923 = vperm.xlu1 %5512, %v1918_v9   ;;  %v580_v9 = vld [vmem:[%s8203_s7] sm:$0xf] }
 0x123   : > { %1592 = vmatpush1.bf16.msra.mxu0 %v6700_v23  ;;  %1635 = vmatpush1.bf16.msra.mxu1 %v6711_v26  ;;  %v6985_v12 = vrot.slane %v580_v9, %v588_v10 }
 0x124   : > { %1593 = vmatprep.subr.bf16.mxu0 %v6709_v25  ;;  %1636 = vmatprep.subr.bf16.mxu1 %v6718_v29 }
 0x126   : > { %2104 = vperm.xlu1 %5512, %v2099_v11   ;;  %v6983_v11 = vrot.slane %v580_v9, %v584_v8 }
 0x127   : > { %1594 = vmatpush1.bf16.msra.mxu0 %v6716_v28  ;;  %1637 = vmatpush1.bf16.msra.mxu1 %v6723_v31 }
 0x128   : > { %1595 = vmatprep.subr.bf16.mxu0 %v6721_v30  ;;  %1638 = vmatprep.subr.bf16.mxu1 %v6731_v34 }
 0x12a   : > { %2285 = vperm.xlu1 %5512, %v2280_v13  }
 0x12b   : > { %1596 = vmatpush1.bf16.msra.mxu0 %v6735_v35  ;;  %1639 = vmatpush1.bf16.msra.mxu1 %v6741_v37 }
 0x12c   : > { %1597 = vmatprep.subr.bf16.mxu0 %v6739_v36  ;;  %1640 = vmatprep.subr.bf16.mxu1 %v6747_v40 }
 0x12e   : > { %2466 = vperm.xlu1 %5512, %v2461_v16  }
 0x12f   : > { %1598 = vmatpush1.bf16.msra.mxu0 %v6745_v39  ;;  %1641 = vmatpush1.bf16.msra.mxu1 %v6753_v42 }
 0x130   : > { %1599 = vmatprep.subr.bf16.mxu0 %v6751_v41  ;;  %1642 = vmatprep.subr.bf16.mxu1 %v6761_v45 }
 0x132   : > { %2647 = vperm.xlu1 %5512, %v2642_v22  }
 0x133   : > { %1600 = vmatpush1.bf16.msra.mxu0 %v6765_v46  ;;  %1643 = vmatpush1.bf16.msra.mxu1 %v6771_v48 }
 0x134   : > { %1601 = vmatprep.subr.bf16.mxu0 %v6769_v47  ;;  %1644 = vmatprep.subr.bf16.mxu1 %v6777_v51 }
 0x136   : > { %2828 = vperm.xlu1 %5512, %v2823_v32  }
 0x137   : > { %1602 = vmatpush1.bf16.msra.mxu0 %v6775_v50  ;;  %1645 = vmatpush1.bf16.msra.mxu1 %v6783_v53 }
 0x138   : > { %1603 = vmatprep.subr.bf16.mxu0 %v6781_v52  ;;  %1646 = vmatprep.subr.bf16.mxu1 %v6791_v56 }
 0x13a   : > { %3009 = vperm.xlu1 %5512, %v3004_v38  }
 0x13b   : > { %1604 = vmatpush1.bf16.msra.mxu0 %v6795_v57  ;;  %1647 = vmatpush1.bf16.msra.mxu1 %v6799_v58 }
 0x13c   : > { %1770 = vmatprep.subr.bf16.mxu0 %v6684_v15  ;;  %1813 = vmatprep.subr.bf16.mxu1 %v6688_v18 }
 0x13e   : > { %3190 = vperm.xlu1 %5512, %v3185_v44   ;;  %v596_v44 = vsub.s32 3, %v583_v7 }
 0x140   : > { %v6993_v2 = vrot.slane %v580_v9, %v596_v44 }
 0x142   : > { %3371 = vperm.xlu1 %5512, %v3366_v54  }
 0x146   : > { %3552 = vperm.xlu1 %5512, %v3547_v59   ;;  %v6990_v59 = vrot.slane %v580_v9, %v592_v14 }
 0x14a   : > { %3733 = vperm.xlu1 %5512, %v3728_v61  }
 0x14e   : > { %3914 = vperm.xlu1 %5512, %v3909_v1  }
 0x152   : > { %4095 = vperm.xlu1 %5512, %v4090_v3  }
 0x156   : > { %4276 = vperm.xlu1 %5512, %v4271_v5  }
 0x1f1   : > { %v1444_v13 = vpop.f32.mrb[0].mxu0  ;;  %v1487_v16 = vpop.f32.mrb[0].mxu1 }
 0x1f2   : > { %v5145_v21 = vadd.f32 %v1444_v13, %v6983_v11  ;;  %v1446_v22 = vpop.f32.mrb[1].mxu0  ;;  %v1489_v27 = vpop.f32.mrb[1].mxu1  ;;  %v5209_v3 = vadd.f32 %v1487_v16, %v6990_v59 }
 0x1f3   : > { %v5146_v32 = vadd.f32 %v1446_v22, %v6985_v12  ;;  %v1448_v33 = vpop.f32.mrb[2].mxu0  ;;  %v1491_v38 = vpop.f32.mrb[2].mxu1  ;;  %v5210_v5 = vadd.f32 %v1489_v27, %v6993_v2 }
 0x1f4   : > { %v4685_v43 = vmul.f32 -1.442695, %v5145_v21  ;;  %v5147_v49 = vadd.f32 %v1448_v33, %v6983_v11  ;;  %v1450_v54 = vpop.f32.mrb[3].mxu0  ;;  %v1493_v55 = vpop.f32.mrb[3].mxu1  ;;  %v5211_v4 = vadd.f32 %v1491_v38, %v6990_v59  ;;  %v4687_v7 = vmul.f32 -1.442695, %v5209_v3 }
 0x1f5   : > { %v4686_v60 = vmul.f32 -1.442695, %v5146_v32  ;;  %v5148_v61 = vadd.f32 %v1450_v54, %v6985_v12  ;;  %v5212_v13 = vadd.f32 %v1493_v55, %v6993_v2  ;;  %v1239_v54 = vld [vmem:[#allocation4] sm:$0xff] }
 0x1f6   : > { %5573 = vpow2.f32 %v4685_v43  ;;  %v4688_v62 = vmul.f32 -1.442695, %v5147_v49  ;;  %v4690_v8 = vmul.f32 -1.442695, %v5211_v4  ;;  %v1560_v49 = vpop.permute.xlu0 %1559  ;;  %v1240_v4 = vld [vmem:[#allocation4 + $0x8] sm:$0xff] }
 0x1f7   : > { %v4689_v1 = vmul.f32 -1.442695, %v5148_v61  ;;  %5575 = vpow2.f32 %v4686_v60  ;;  %vm1564_vm0 = vcmp.eq.s32.totalorder %v1560_v49, 1 }
 0x1f8   : > { %5577 = vpow2.f32 %v4688_v62 }
 0x1f9   : > { %5579 = vpow2.f32 %v4689_v1 }
 0x1fa   : > { %5581 = vtanh.f32 %v5210_v5 }
 0x1fb   : > { %5583 = vpow2.f32 %v4687_v7 }
 0x1fc   : > { %5585 = vpow2.f32 %v4690_v8 }
 0x200   : > { %v5574_v10 = vpop.eup %5573 }
 0x201   : > { %v1522_v14 = vadd.f32 1.0, %v5574_v10  ;;  %v5576_v21 = vpop.eup %5575 }
 0x202   : > { %v5578_v9 = vpop.eup %5577  ;;  %v1523_v22 = vadd.f32 1.0, %v5576_v21 }
 0x203   : > { %5587 = vrcp.f32 %v1522_v14  ;;  %v1525_v16 = vadd.f32 1.0, %v5578_v9  ;;  %v5580_v32 = vpop.eup %5579 }
 0x204   : > { %5589 = vtanh.f32 %v5212_v13  ;;  %v1526_v33 = vadd.f32 1.0, %v5580_v32  ;;  %v5582_v27 = vpop.eup %5581  ;;  %v1563_v13 = vpop.permute.xlu0 %1562 }
 0x205   : > { %5591 = vrcp.f32 %v1523_v22  ;;  %v5584_v38 = vpop.eup %5583  ;;  %vm1565_vm2 = vcmp.eq.s32.totalorder %v1563_v13, 1 }
 0x206   : > { %5593 = vrcp.f32 %v1525_v16  ;;  %v5586_v43 = vpop.eup %5585  ;;  %v1524_v62 = vadd.f32 1.0, %v5584_v38 }
 0x207   : > { %5595 = vrcp.f32 %v1526_v33  ;;  %v1527_v10 = vadd.f32 1.0, %v5586_v43 }
 0x208   : > { %5597 = vrcp.f32 %v1524_v62 }
 0x20d   : > { %v5588_v44 = vpop.eup %5587 }
 0x20e   : > { %v5590_v55 = vpop.eup %5589  ;;  %v1544_v60 = vmul.f32 %v5588_v44, %v5582_v27 }
 0x20f   : > { %v5592_v61 = vpop.eup %5591 }
 0x210   : > { %v5594_v1 = vpop.eup %5593  ;;  %v1542_v3 = vmul.f32 %v5592_v61, %v1239_v54 }
 0x211   : > { %v1545_v5 = vmul.f32 %v5594_v1, %v5590_v55  ;;  %v5596_v7 = vpop.eup %5595 }
 0x212   : > { %v1546_v8 = vadd.f32 %v1544_v60, %v1542_v3  ;;  %v1543_v14 = vmul.f32 %v5596_v7, %v1240_v4  ;;  %v5598_v16 = vpop.eup %5597 }
 0x214   : > { %5599 = vtanh.f32 %v1546_v8  ;;  %v7000_v21 = vsel %vm1564_vm0, %v1546_v8, %v1239_v54  ;;  %v1547_v9 = vadd.f32 %v1545_v5, %v1543_v14  ;;  %v1740_v5 = vpop.permute.xlu1 %1739 }
 0x215   : > { %5601 = vrcp.f32 %v1527_v10  ;;  %vm1744_vm3 = vcmp.eq.s32.totalorder %v1740_v5, 1 }
 0x216   : > { %5603 = vtanh.f32 %v1547_v9  ;;  %v7002_v22 = vsel %vm1565_vm2, %v1547_v9, %v1240_v4 }
 0x21e   : > { %v5600_v32 = vpop.eup %5599 }
 0x21f   : > { %v1550_v33 = vmul.f32 %v5600_v32, %v5598_v16  ;;  %v5602_v27 = vpop.eup %5601 }
 0x220   : > { %v5604_v38 = vpop.eup %5603 }
 0x221   : > { %v1551_v43 = vmul.f32 %v5604_v38, %v5602_v27  ;;  %v7006_v44 = vsel %vm1564_vm0, %v1550_v33, %v6908_v63  ;;  %v1743_v38 = vpop.permute.xlu1 %1742 }
 0x222   : > { %vm1745_vm4 = vcmp.eq.s32.totalorder %v1743_v38, 1 }
 0x223   : > { %v7009_v55 = vsel %vm1565_vm2, %v1551_v43, %v6910_v0 }
 0x224   : > { %v1570_v54 = vpack.c.bf16 %v7009_v55, %v7006_v44 }
 0x226   : > { %4959 = vst [vmem:[%s6664_s23] sm:$0xff] %v1570_v54   ;;  %1622 = vmatmul.mubr.bf16.vlgmr.msra.gmra.mrb[4].mxu0 %v1570_v54  ;;  %1665 = vmatmul.mubr.bf16.vlgmr.msra.gmra.mrb[4].mxu1 %v1570_v54 }
 0x227   : > { %1771 = vmatpush1.bf16.msra.mxu0 %v6686_v17  ;;  %1814 = vmatpush1.bf16.msra.mxu1 %v6694_v20 }
 0x228   : > { %1772 = vmatprep.subr.bf16.mxu0 %v6692_v19  ;;  %1815 = vmatprep.subr.bf16.mxu1 %v6704_v24 }
 0x229   : > { %1802 = vmatprep.mubr.bf16.mxu0 %v6431_v6  ;;  %1845 = vmatprep.mubr.bf16.mxu1 %v6431_v6 }
 0x22b   : > { %1773 = vmatpush1.bf16.msra.mxu0 %v6700_v23  ;;  %1816 = vmatpush1.bf16.msra.mxu1 %v6711_v26 }
 0x22c   : > { %1774 = vmatprep.subr.bf16.mxu0 %v6709_v25  ;;  %1817 = vmatprep.subr.bf16.mxu1 %v6718_v29 }
 0x22f   : > { %1775 = vmatpush1.bf16.msra.mxu0 %v6716_v28  ;;  %1818 = vmatpush1.bf16.msra.mxu1 %v6723_v31 }
 0x230   : > { %1776 = vmatprep.subr.bf16.mxu0 %v6721_v30  ;;  %1819 = vmatprep.subr.bf16.mxu1 %v6731_v34 }
 0x233   : > { %1777 = vmatpush1.bf16.msra.mxu0 %v6735_v35  ;;  %1820 = vmatpush1.bf16.msra.mxu1 %v6741_v37 }
 0x234   : > { %1778 = vmatprep.subr.bf16.mxu0 %v6739_v36  ;;  %1821 = vmatprep.subr.bf16.mxu1 %v6747_v40 }
 0x237   : > { %1779 = vmatpush1.bf16.msra.mxu0 %v6745_v39  ;;  %1822 = vmatpush1.bf16.msra.mxu1 %v6753_v42 }
 0x238   : > { %1780 = vmatprep.subr.bf16.mxu0 %v6751_v41  ;;  %1823 = vmatprep.subr.bf16.mxu1 %v6761_v45 }
 0x23b   : > { %1781 = vmatpush1.bf16.msra.mxu0 %v6765_v46  ;;  %1824 = vmatpush1.bf16.msra.mxu1 %v6771_v48 }
 0x23c   : > { %1782 = vmatprep.subr.bf16.mxu0 %v6769_v47  ;;  %1825 = vmatprep.subr.bf16.mxu1 %v6777_v51 }
 0x23f   : > { %1783 = vmatpush1.bf16.msra.mxu0 %v6775_v50  ;;  %1826 = vmatpush1.bf16.msra.mxu1 %v6783_v53 }
 0x240   : > { %1784 = vmatprep.subr.bf16.mxu0 %v6781_v52  ;;  %1827 = vmatprep.subr.bf16.mxu1 %v6791_v56 }
 0x243   : > { %1785 = vmatpush1.bf16.msra.mxu0 %v6795_v57  ;;  %1828 = vmatpush1.bf16.msra.mxu1 %v6799_v58 }
 0x244   : > { %1951 = vmatprep.subr.bf16.mxu0 %v6684_v15  ;;  %1994 = vmatprep.subr.bf16.mxu1 %v6688_v18 }
 0x2f9   : > { %v1623_v17 = vpop.f32.mrb[4].mxu0  ;;  %v1666_v19 = vpop.f32.mrb[4].mxu1 }
 0x2fa   : > { %v5149_v20 = vadd.f32 %v1623_v17, %v6983_v11  ;;  %v1625_v23 = vpop.f32.mrb[5].mxu0  ;;  %v1668_v24 = vpop.f32.mrb[5].mxu1  ;;  %v5213_v37 = vadd.f32 %v1666_v19, %v6990_v59 }
 0x2fb   : > { %v5150_v25 = vadd.f32 %v1625_v23, %v6985_v12  ;;  %v1627_v26 = vpop.f32.mrb[6].mxu0  ;;  %v1670_v28 = vpop.f32.mrb[6].mxu1  ;;  %v5214_v40 = vadd.f32 %v1668_v24, %v6993_v2 }
 0x2fc   : > { %v4693_v29 = vmul.f32 -1.442695, %v5149_v20  ;;  %v5151_v30 = vadd.f32 %v1627_v26, %v6983_v11  ;;  %v1629_v31 = vpop.f32.mrb[7].mxu0  ;;  %v1672_v34 = vpop.f32.mrb[7].mxu1  ;;  %v5215_v39 = vadd.f32 %v1670_v28, %v6990_v59  ;;  %v4695_v41 = vmul.f32 -1.442695, %v5213_v37 }
 0x2fd   : > { %v4694_v35 = vmul.f32 -1.442695, %v5150_v25  ;;  %v5152_v15 = vadd.f32 %v1629_v31, %v6985_v12  ;;  %v5216_v46 = vadd.f32 %v1672_v34, %v6993_v2  ;;  %v7078_v31 = vld [vmem:[#allocation12 + $0x8] ss:$16 sps:$4 sm:$0xff]   ;;  %v7081_v34 = vld [vmem:[#allocation12 + $0x24] ss:$16 sps:$4 sm:$0xff]  }
 0x2fe   : > { %5605 = vpow2.f32 %v4693_v29  ;;  %v4696_v18 = vmul.f32 -1.442695, %v5151_v30  ;;  %v4698_v42 = vmul.f32 -1.442695, %v5215_v39  ;;  %v7104_v37 = vld [vmem:[#allocation12 + $0x48] ss:$16 sps:$4 sm:$0xff]  }
 0x2ff   : > { %v4697_v36 = vmul.f32 -1.442695, %v5152_v15  ;;  %5607 = vpow2.f32 %v4694_v35  ;;  %v7092_v35 = vld [vmem:[#allocation12 + $0x28] ss:$16 sps:$4 sm:$0xff]   ;;  %v7095_v15 = vld [vmem:[#allocation12 + $0x44] ss:$16 sps:$4 sm:$0xff]  }
 0x300   : > { %5609 = vpow2.f32 %v4696_v18  ;;  %v7098_v18 = vld [vmem:[#allocation12 + $0x4c] ss:$16 sps:$4 sm:$0xff]   ;;  %v7107_v39 = vld [vmem:[#allocation12 + $0x64] ss:$16 sps:$4 sm:$0xff]  }
 0x301   : > { %5611 = vpow2.f32 %v4697_v36  ;;  %v7101_v36 = vld [vmem:[#allocation12 + $0x40] ss:$16 sps:$4 sm:$0xff]  }
 0x302   : > { %5613 = vtanh.f32 %v5214_v40  ;;  %v7110_v40 = vld [vmem:[#allocation12 + $0x6c] ss:$16 sps:$4 sm:$0xff]  }
 0x303   : > { %5615 = vpow2.f32 %v4695_v41  ;;  %v7113_v41 = vld [vmem:[#allocation12 + $0x60] ss:$16 sps:$4 sm:$0xff]  }
 0x304   : > { %5617 = vpow2.f32 %v4698_v42  ;;  %v7116_v42 = vld [vmem:[#allocation12 + $0x68] ss:$16 sps:$4 sm:$0xff]  }
 0x308   : > { %v5606_v45 = vpop.eup %5605 }
 0x309   : > { %v1701_v47 = vadd.f32 1.0, %v5606_v45  ;;  %v5608_v48 = vpop.eup %5607  ;;  %v7119_v45 = vld [vmem:[#allocation12 + $0x84] ss:$16 sps:$4 sm:$0xff]  }
 0x30a   : > { %v5610_v63 = vpop.eup %5609  ;;  %v1702_v0 = vadd.f32 1.0, %v5608_v48  ;;  %v7128_v48 = vld [vmem:[#allocation12 + $0x88] ss:$16 sps:$4 sm:$0xff]  }
 0x30b   : > { %5619 = vrcp.f32 %v1701_v47  ;;  %v1704_v49 = vadd.f32 1.0, %v5610_v63  ;;  %v5612_v60 = vpop.eup %5611  ;;  %v7125_v47 = vld [vmem:[#allocation12 + $0x80] ss:$16 sps:$4 sm:$0xff]   ;;  %v7131_v63 = vld [vmem:[#allocation12 + $0xa4] ss:$16 sps:$4 sm:$0xff]  }
 0x30c   : > { %5621 = vtanh.f32 %v5216_v46  ;;  %v1705_v61 = vadd.f32 1.0, %v5612_v60  ;;  %v5614_v62 = vpop.eup %5613  ;;  %v7122_v46 = vld [vmem:[#allocation12 + $0x8c] ss:$16 sps:$4 sm:$0xff]   ;;  %v7140_v60 = vld [vmem:[#allocation12 + $0xa8] ss:$16 sps:$4 sm:$0xff]  }
 0x30d   : > { %5623 = vrcp.f32 %v1702_v0  ;;  %v5616_v1 = vpop.eup %5615  ;;  %v7134_v0 = vld [vmem:[#allocation12 + $0xac] ss:$16 sps:$4 sm:$0xff]  }
 0x30e   : > { %5625 = vrcp.f32 %v1704_v49  ;;  %v5618_v3 = vpop.eup %5617  ;;  %v1703_v13 = vadd.f32 1.0, %v5616_v1  ;;  %v7137_v49 = vld [vmem:[#allocation12 + $0xa0] ss:$16 sps:$4 sm:$0xff]   ;;  %v7156_v1 = vld [vmem:[#allocation12 + $0xc] ss:$16 sps:$4 sm:$0xff]  }
 0x30f   : > { %5627 = vrcp.f32 %v1705_v61  ;;  %v1706_v27 = vadd.f32 1.0, %v5618_v3  ;;  %v7143_v61 = vld [vmem:[#allocation12 + $0xc4] ss:$16 sps:$4 sm:$0xff]  }
 0x310   : > { %5629 = vrcp.f32 %v1703_v13 }
 0x315   : > { %v5620_v4 = vpop.eup %5619 }
 0x316   : > { %v5622_v7 = vpop.eup %5621  ;;  %v1723_v8 = vmul.f32 %v5620_v4, %v5614_v62  ;;  %v7153_v62 = vld [vmem:[#allocation12 + $0x4] ss:$16 sps:$4 sm:$0xff]  }
 0x317   : > { %v5624_v10 = vpop.eup %5623 }
 0x318   : > { %v5626_v14 = vpop.eup %5625  ;;  %v1721_v9 = vmul.f32 %v5624_v10, %v7000_v21 }
 0x319   : > { %v1724_v16 = vmul.f32 %v5626_v14, %v5622_v7  ;;  %v5628_v32 = vpop.eup %5627 }
 0x31a   : > { %v1725_v33 = vadd.f32 %v1723_v8, %v1721_v9  ;;  %v1722_v43 = vmul.f32 %v5628_v32, %v7002_v22  ;;  %v5630_v20 = vpop.eup %5629 }
 0x31c   : > { %5631 = vtanh.f32 %v1725_v33  ;;  %v7060_v54 = vsel %vm1744_vm3, %v1725_v33, %v7000_v21  ;;  %v1726_v17 = vadd.f32 %v1724_v16, %v1722_v43 }
 0x31d   : > { %5633 = vrcp.f32 %v1706_v27 }
 0x31e   : > { %5635 = vtanh.f32 %v1726_v17  ;;  %v7063_v19 = vsel %vm1745_vm4, %v1726_v17, %v7002_v22  ;;  %v7075_v22 = vld [vmem:[#allocation12] ss:$16 sps:$4 sm:$0xff]  }
 0x326   : > { %v5632_v23 = vpop.eup %5631 }
 0x327   : > { %v1729_v24 = vmul.f32 %v5632_v23, %v5630_v20  ;;  %v5634_v25 = vpop.eup %5633 }
 0x328   : > { %v5636_v26 = vpop.eup %5635 }
 0x329   : > { %v1730_v28 = vmul.f32 %v5636_v26, %v5634_v25  ;;  %v7067_v29 = vsel %vm1744_vm3, %v1729_v24, %v7006_v44  ;;  %v7084_v44 = vld [vmem:[#allocation12 + $0x2c] ss:$16 sps:$4 sm:$0xff]  }
 0x32b   : > { %v7070_v30 = vsel %vm1745_vm4, %v1730_v28, %v7009_v55  ;;  %v7089_v55 = vld [vmem:[#allocation12 + $0x20] ss:$16 sps:$4 sm:$0xff]  }
 0x32c   : > { %v1750_v21 = vpack.c.bf16 %v7070_v30, %v7067_v29 }
 0x32e   : > { %5115 = vst [vmem:[%s6664_s23 + $0x8] sm:$0xff] %v1750_v21   ;;  %1803 = vmatmul.mubr.bf16.vlgmr.msra.gmra.mrb[8].mxu0 %v1750_v21  ;;  %1846 = vmatmul.mubr.bf16.vlgmr.msra.gmra.mrb[8].mxu1 %v1750_v21 }
 0x32f   : > { %1952 = vmatpush1.bf16.msra.mxu0 %v7075_v22  ;;  %1995 = vmatpush1.bf16.msra.mxu1 %v7078_v31 }
 0x330   : > { %1953 = vmatprep.subr.bf16.mxu0 %v7081_v34  ;;  %1996 = vmatprep.subr.bf16.mxu1 %v7084_v44 }
 0x331   : > { %1983 = vmatprep.mubr.bf16.mxu0 %v6431_v6  ;;  %2026 = vmatprep.mubr.bf16.mxu1 %v6431_v6 }
 0x333   : > { %1954 = vmatpush1.bf16.msra.mxu0 %v7089_v55  ;;  %1997 = vmatpush1.bf16.msra.mxu1 %v7092_v35 }
 0x334   : > { %1955 = vmatprep.subr.bf16.mxu0 %v7095_v15  ;;  %1998 = vmatprep.subr.bf16.mxu1 %v7098_v18 }
 0x337   : > { %1956 = vmatpush1.bf16.msra.mxu0 %v7101_v36  ;;  %1999 = vmatpush1.bf16.msra.mxu1 %v7104_v37 }
 0x338   : > { %1957 = vmatprep.subr.bf16.mxu0 %v7107_v39  ;;  %2000 = vmatprep.subr.bf16.mxu1 %v7110_v40 }
 0x33b   : > { %1958 = vmatpush1.bf16.msra.mxu0 %v7113_v41  ;;  %2001 = vmatpush1.bf16.msra.mxu1 %v7116_v42 }
 0x33c   : > { %1959 = vmatprep.subr.bf16.mxu0 %v7119_v45  ;;  %2002 = vmatprep.subr.bf16.mxu1 %v7122_v46 }
 0x33f   : > { %1960 = vmatpush1.bf16.msra.mxu0 %v7125_v47  ;;  %2003 = vmatpush1.bf16.msra.mxu1 %v7128_v48 }
 0x340   : > { %1961 = vmatprep.subr.bf16.mxu0 %v7131_v63  ;;  %2004 = vmatprep.subr.bf16.mxu1 %v7134_v0 }
 0x343   : > { %1962 = vmatpush1.bf16.msra.mxu0 %v7137_v49  ;;  %2005 = vmatpush1.bf16.msra.mxu1 %v7140_v60 }
 0x344   : > { %1963 = vmatprep.subr.bf16.mxu0 %v7143_v61  ;;  %2006 = vmatprep.subr.bf16.mxu1 %v6777_v51 }
 0x347   : > { %1964 = vmatpush1.bf16.msra.mxu0 %v6775_v50  ;;  %2007 = vmatpush1.bf16.msra.mxu1 %v6783_v53 }
 0x348   : > { %1965 = vmatprep.subr.bf16.mxu0 %v6781_v52  ;;  %2008 = vmatprep.subr.bf16.mxu1 %v6791_v56 }
 0x34b   : > { %1966 = vmatpush1.bf16.msra.mxu0 %v6795_v57  ;;  %2009 = vmatpush1.bf16.msra.mxu1 %v6799_v58 }
 0x34c   : > { %2132 = vmatprep.subr.bf16.mxu0 %v7153_v62  ;;  %2175 = vmatprep.subr.bf16.mxu1 %v7156_v1 }
 0x401   : > { %v1804_v51 = vpop.f32.mrb[8].mxu0  ;;  %v1847_v50 = vpop.f32.mrb[8].mxu1 }
 0x402   : > { %v5153_v53 = vadd.f32 %v1804_v51, %v6983_v11  ;;  %v1806_v3 = vpop.f32.mrb[9].mxu0  ;;  %v1849_v52 = vpop.f32.mrb[9].mxu1  ;;  %v5217_v16 = vadd.f32 %v1847_v50, %v6990_v59 }
 0x403   : > { %v5154_v56 = vadd.f32 %v1806_v3, %v6985_v12  ;;  %v1808_v4 = vpop.f32.mrb[10].mxu0  ;;  %v1851_v57 = vpop.f32.mrb[10].mxu1  ;;  %v5218_v33 = vadd.f32 %v1849_v52, %v6993_v2 }
 0x404   : > { %v4705_v5 = vmul.f32 -1.442695, %v5153_v53  ;;  %v5155_v58 = vadd.f32 %v1808_v4, %v6983_v11  ;;  %v1810_v7 = vpop.f32.mrb[11].mxu0  ;;  %v1853_v8 = vpop.f32.mrb[11].mxu1  ;;  %v5219_v32 = vadd.f32 %v1851_v57, %v6990_v59  ;;  %v4707_v27 = vmul.f32 -1.442695, %v5217_v16 }
 0x405   : > { %v4706_v10 = vmul.f32 -1.442695, %v5154_v56  ;;  %v5156_v13 = vadd.f32 %v1810_v7, %v6985_v12  ;;  %v5220_v17 = vadd.f32 %v1853_v8, %v6993_v2 }
 0x406   : > { %5637 = vpow2.f32 %v4705_v5  ;;  %v4708_v14 = vmul.f32 -1.442695, %v5155_v58  ;;  %v4710_v38 = vmul.f32 -1.442695, %v5219_v32  ;;  %v1924_v32 = vpop.permute.xlu1 %1923 }
 0x407   : > { %v4709_v9 = vmul.f32 -1.442695, %v5156_v13  ;;  %5639 = vpow2.f32 %v4706_v10  ;;  %v1921_v10 = vpop.permute.xlu0 %1920  ;;  %vm1926_vm6 = vcmp.eq.s32.totalorder %v1924_v32, 1 }
 0x408   : > { %5641 = vpow2.f32 %v4708_v14  ;;  %vm1925_vm5 = vcmp.eq.s32.totalorder %v1921_v10, 1 }
 0x409   : > { %5643 = vpow2.f32 %v4709_v9 }
 0x40a   : > { %5645 = vtanh.f32 %v5218_v33 }
 0x40b   : > { %5647 = vpow2.f32 %v4707_v27 }
 0x40c   : > { %5649 = vpow2.f32 %v4710_v38 }
 0x410   : > { %v5638_v43 = vpop.eup %5637 }
 0x411   : > { %v1882_v20 = vadd.f32 1.0, %v5638_v43  ;;  %v5640_v23 = vpop.eup %5639 }
 0x412   : > { %v5642_v24 = vpop.eup %5641  ;;  %v1883_v25 = vadd.f32 1.0, %v5640_v23 }
 0x413   : > { %5651 = vrcp.f32 %v1882_v20  ;;  %v1885_v26 = vadd.f32 1.0, %v5642_v24  ;;  %v5644_v28 = vpop.eup %5643 }
 0x414   : > { %5653 = vtanh.f32 %v5220_v17  ;;  %v1886_v21 = vadd.f32 1.0, %v5644_v28  ;;  %v5646_v51 = vpop.eup %5645  ;;  %v7220_v28 = vld [vmem:[#allocation12 + $0xe4] ss:$16 sps:$4 sm:$0xff]  }
 0x415   : > { %5655 = vrcp.f32 %v1883_v25  ;;  %v5648_v50 = vpop.eup %5647 }
 0x416   : > { %5657 = vrcp.f32 %v1885_v26  ;;  %v5650_v53 = vpop.eup %5649  ;;  %v1884_v57 = vadd.f32 1.0, %v5648_v50  ;;  %v7229_v50 = vld [vmem:[#allocation12 + $0xe8] ss:$16 sps:$4 sm:$0xff]  }
 0x417   : > { %5659 = vrcp.f32 %v1886_v21  ;;  %v1887_v14 = vadd.f32 1.0, %v5650_v53  ;;  %v7223_v21 = vld [vmem:[#allocation12 + $0xec] ss:$16 sps:$4 sm:$0xff]  }
 0x418   : > { %5661 = vrcp.f32 %v1884_v57 }
 0x41d   : > { %v5652_v3 = vpop.eup %5651 }
 0x41e   : > { %v5654_v52 = vpop.eup %5653  ;;  %v1904_v56 = vmul.f32 %v5652_v3, %v5646_v51  ;;  %v7226_v51 = vld [vmem:[#allocation12 + $0xe0] ss:$16 sps:$4 sm:$0xff]  }
 0x41f   : > { %v5656_v4 = vpop.eup %5655 }
 0x420   : > { %v5658_v5 = vpop.eup %5657  ;;  %v1902_v58 = vmul.f32 %v5656_v4, %v7060_v54 }
 0x421   : > { %v1905_v7 = vmul.f32 %v5658_v5, %v5654_v52  ;;  %v5660_v8 = vpop.eup %5659 }
 0x422   : > { %v1906_v13 = vadd.f32 %v1904_v56, %v1902_v58  ;;  %v1903_v9 = vmul.f32 %v5660_v8, %v7063_v19  ;;  %v5662_v38 = vpop.eup %5661 }
 0x424   : > { %5663 = vtanh.f32 %v1906_v13  ;;  %v7171_v16 = vsel %vm1925_vm5, %v1906_v13, %v7060_v54  ;;  %v1907_v33 = vadd.f32 %v1905_v7, %v1903_v9 }
 0x425   : > { %5665 = vrcp.f32 %v1887_v14 }
 0x426   : > { %5667 = vtanh.f32 %v1907_v33  ;;  %v7174_v27 = vsel %vm1926_vm6, %v1907_v33, %v7063_v19  ;;  %v7211_v19 = vld [vmem:[#allocation12 + $0xcc] ss:$16 sps:$4 sm:$0xff]  }
 0x42e   : > { %v5664_v43 = vpop.eup %5663 }
 0x42f   : > { %v1910_v17 = vmul.f32 %v5664_v43, %v5662_v38  ;;  %v5666_v20 = vpop.eup %5665 }
 0x430   : > { %v5668_v23 = vpop.eup %5667 }
 0x431   : > { %v1911_v24 = vmul.f32 %v5668_v23, %v5666_v20  ;;  %v7178_v25 = vsel %vm1925_vm5, %v1910_v17, %v7067_v29  ;;  %v7214_v29 = vld [vmem:[#allocation12 + $0xc0] ss:$16 sps:$4 sm:$0xff]  }
 0x433   : > { %v7181_v54 = vsel %vm1926_vm6, %v1911_v24, %v7070_v30  ;;  %v7217_v30 = vld [vmem:[#allocation12 + $0xc8] ss:$16 sps:$4 sm:$0xff]  }
 0x434   : > { %v1931_v26 = vpack.c.bf16 %v7181_v54, %v7178_v25 }
 0x436   : > { %5116 = vst [vmem:[%s6664_s23 + $0x10] sm:$0xff] %v1931_v26   ;;  %1984 = vmatmul.mubr.bf16.vlgmr.msra.gmra.mrb[12].mxu0 %v1931_v26  ;;  %2027 = vmatmul.mubr.bf16.vlgmr.msra.gmra.mrb[12].mxu1 %v1931_v26 }
 0x437   : > { %2133 = vmatpush1.bf16.msra.mxu0 %v7075_v22  ;;  %2176 = vmatpush1.bf16.msra.mxu1 %v7078_v31 }
 0x438   : > { %2134 = vmatprep.subr.bf16.mxu0 %v7081_v34  ;;  %2177 = vmatprep.subr.bf16.mxu1 %v7084_v44 }
 0x439   : > { %2164 = vmatprep.mubr.bf16.mxu0 %v6431_v6  ;;  %2207 = vmatprep.mubr.bf16.mxu1 %v6431_v6 }
 0x43b   : > { %2135 = vmatpush1.bf16.msra.mxu0 %v7089_v55  ;;  %2178 = vmatpush1.bf16.msra.mxu1 %v7092_v35 }
 0x43c   : > { %2136 = vmatprep.subr.bf16.mxu0 %v7095_v15  ;;  %2179 = vmatprep.subr.bf16.mxu1 %v7098_v18 }
 0x43f   : > { %2137 = vmatpush1.bf16.msra.mxu0 %v7101_v36  ;;  %2180 = vmatpush1.bf16.msra.mxu1 %v7104_v37 }
 0x440   : > { %2138 = vmatprep.subr.bf16.mxu0 %v7107_v39  ;;  %2181 = vmatprep.subr.bf16.mxu1 %v7110_v40 }
 0x443   : > { %2139 = vmatpush1.bf16.msra.mxu0 %v7113_v41  ;;  %2182 = vmatpush1.bf16.msra.mxu1 %v7116_v42 }
 0x444   : > { %2140 = vmatprep.subr.bf16.mxu0 %v7119_v45  ;;  %2183 = vmatprep.subr.bf16.mxu1 %v7122_v46 }
 0x447   : > { %2141 = vmatpush1.bf16.msra.mxu0 %v7125_v47  ;;  %2184 = vmatpush1.bf16.msra.mxu1 %v7128_v48 }
 0x448   : > { %2142 = vmatprep.subr.bf16.mxu0 %v7131_v63  ;;  %2185 = vmatprep.subr.bf16.mxu1 %v7134_v0 }
 0x44b   : > { %2143 = vmatpush1.bf16.msra.mxu0 %v7137_v49  ;;  %2186 = vmatpush1.bf16.msra.mxu1 %v7140_v60 }
 0x44c   : > { %2144 = vmatprep.subr.bf16.mxu0 %v7143_v61  ;;  %2187 = vmatprep.subr.bf16.mxu1 %v7211_v19 }
 0x44f   : > { %2145 = vmatpush1.bf16.msra.mxu0 %v7214_v29  ;;  %2188 = vmatpush1.bf16.msra.mxu1 %v7217_v30 }
 0x450   : > { %2146 = vmatprep.subr.bf16.mxu0 %v7220_v28  ;;  %2189 = vmatprep.subr.bf16.mxu1 %v7223_v21 }
 0x453   : > { %2147 = vmatpush1.bf16.msra.mxu0 %v7226_v51  ;;  %2190 = vmatpush1.bf16.msra.mxu1 %v7229_v50 }
 0x454   : > { %2313 = vmatprep.subr.bf16.mxu0 %v7153_v62  ;;  %2356 = vmatprep.subr.bf16.mxu1 %v7156_v1 }
 0x509   : > { %v1985_v53 = vpop.f32.mrb[12].mxu0  ;;  %v2028_v3 = vpop.f32.mrb[12].mxu1 }
 0x50a   : > { %v5157_v52 = vadd.f32 %v1985_v53, %v6983_v11  ;;  %v1987_v56 = vpop.f32.mrb[13].mxu0  ;;  %v2030_v4 = vpop.f32.mrb[13].mxu1  ;;  %v5221_v38 = vadd.f32 %v2028_v3, %v6990_v59 }
 0x50b   : > { %v5158_v57 = vadd.f32 %v1987_v56, %v6985_v12  ;;  %v1989_v5 = vpop.f32.mrb[14].mxu0  ;;  %v2032_v58 = vpop.f32.mrb[14].mxu1  ;;  %v5222_v17 = vadd.f32 %v2030_v4, %v6993_v2 }
 0x50c   : > { %v4717_v7 = vmul.f32 -1.442695, %v5157_v52  ;;  %v5159_v8 = vadd.f32 %v1989_v5, %v6983_v11  ;;  %v1991_v10 = vpop.f32.mrb[15].mxu0  ;;  %v2034_v13 = vpop.f32.mrb[15].mxu1  ;;  %v5223_v43 = vadd.f32 %v2032_v58, %v6990_v59  ;;  %v4719_v20 = vmul.f32 -1.442695, %v5221_v38 }
 0x50d   : > { %v4718_v14 = vmul.f32 -1.442695, %v5158_v57  ;;  %v5160_v9 = vadd.f32 %v1991_v10, %v6985_v12  ;;  %v5224_v26 = vadd.f32 %v2034_v13, %v6993_v2 }
 0x50e   : > { %5669 = vpow2.f32 %v4717_v7  ;;  %v4720_v32 = vmul.f32 -1.442695, %v5159_v8  ;;  %v4722_v23 = vmul.f32 -1.442695, %v5223_v43 }
 0x50f   : > { %v4721_v33 = vmul.f32 -1.442695, %v5160_v9  ;;  %5671 = vpow2.f32 %v4718_v14 }
 0x510   : > { %5673 = vpow2.f32 %v4720_v32 }
 0x511   : > { %5675 = vpow2.f32 %v4721_v33 }
 0x512   : > { %5677 = vtanh.f32 %v5222_v17 }
 0x513   : > { %5679 = vpow2.f32 %v4719_v20  ;;  %v2102_v20 = vpop.permute.xlu0 %2101 }
 0x514   : > { %5681 = vpow2.f32 %v4722_v23  ;;  %vm2106_vm7 = vcmp.eq.s32.totalorder %v2102_v20, 1 }
 0x518   : > { %v5670_v24 = vpop.eup %5669 }
 0x519   : > { %v2063_v53 = vadd.f32 1.0, %v5670_v24  ;;  %v5672_v52 = vpop.eup %5671 }
 0x51a   : > { %v5674_v56 = vpop.eup %5673  ;;  %v2064_v57 = vadd.f32 1.0, %v5672_v52  ;;  %v2105_v52 = vpop.permute.xlu1 %2104 }
 0x51b   : > { %5683 = vrcp.f32 %v2063_v53  ;;  %v2066_v3 = vadd.f32 1.0, %v5674_v56  ;;  %v5676_v5 = vpop.eup %5675  ;;  %vm2107_vm8 = vcmp.eq.s32.totalorder %v2105_v52, 1 }
 0x51c   : > { %5685 = vtanh.f32 %v5224_v26  ;;  %v2067_v58 = vadd.f32 1.0, %v5676_v5  ;;  %v5678_v4 = vpop.eup %5677 }
 0x51d   : > { %5687 = vrcp.f32 %v2064_v57  ;;  %v5680_v7 = vpop.eup %5679 }
 0x51e   : > { %5689 = vrcp.f32 %v2066_v3  ;;  %v5682_v8 = vpop.eup %5681  ;;  %v2065_v32 = vadd.f32 1.0, %v5680_v7 }
 0x51f   : > { %5691 = vrcp.f32 %v2067_v58  ;;  %v2068_v24 = vadd.f32 1.0, %v5682_v8 }
 0x520   : > { %5693 = vrcp.f32 %v2065_v32 }
 0x525   : > { %v5684_v10 = vpop.eup %5683 }
 0x526   : > { %v5686_v14 = vpop.eup %5685  ;;  %v2085_v13 = vmul.f32 %v5684_v10, %v5678_v4 }
 0x527   : > { %v5688_v9 = vpop.eup %5687 }
 0x528   : > { %v5690_v33 = vpop.eup %5689  ;;  %v2083_v38 = vmul.f32 %v5688_v9, %v7171_v16 }
 0x529   : > { %v2086_v43 = vmul.f32 %v5690_v33, %v5686_v14  ;;  %v5692_v17 = vpop.eup %5691 }
 0x52a   : > { %v2087_v23 = vadd.f32 %v2085_v13, %v2083_v38  ;;  %v2084_v26 = vmul.f32 %v5692_v17, %v7174_v27  ;;  %v5694_v3 = vpop.eup %5693 }
 0x52c   : > { %5695 = vtanh.f32 %v2087_v23  ;;  %v7246_v53 = vsel %vm2106_vm7, %v2087_v23, %v7171_v16  ;;  %v2088_v56 = vadd.f32 %v2086_v43, %v2084_v26 }
 0x52d   : > { %5697 = vrcp.f32 %v2068_v24 }
 0x52e   : > { %5699 = vtanh.f32 %v2088_v56  ;;  %v7249_v57 = vsel %vm2107_vm8, %v2088_v56, %v7174_v27 }
 0x536   : > { %v5696_v5 = vpop.eup %5695 }
 0x537   : > { %v2091_v58 = vmul.f32 %v5696_v5, %v5694_v3  ;;  %v5698_v4 = vpop.eup %5697 }
 0x538   : > { %v5700_v7 = vpop.eup %5699 }
 0x539   : > { %v2092_v8 = vmul.f32 %v5700_v7, %v5698_v4  ;;  %v7253_v10 = vsel %vm2106_vm7, %v2091_v58, %v7178_v25 }
 0x53b   : > { %v7256_v16 = vsel %vm2107_vm8, %v2092_v8, %v7181_v54 }
 0x53c   : > { %v2112_v14 = vpack.c.bf16 %v7256_v16, %v7253_v10 }
 0x53e   : > { %5117 = vst [vmem:[%s6664_s23 + $0x18] sm:$0xff] %v2112_v14   ;;  %2165 = vmatmul.mubr.bf16.vlgmr.msra.gmra.mrb[16].mxu0 %v2112_v14  ;;  %2208 = vmatmul.mubr.bf16.vlgmr.msra.gmra.mrb[16].mxu1 %v2112_v14 }
 0x53f   : > { %2314 = vmatpush1.bf16.msra.mxu0 %v7075_v22  ;;  %2357 = vmatpush1.bf16.msra.mxu1 %v7078_v31 }
 0x540   : > { %2315 = vmatprep.subr.bf16.mxu0 %v7081_v34  ;;  %2358 = vmatprep.subr.bf16.mxu1 %v7084_v44 }
 0x541   : > { %2345 = vmatprep.mubr.bf16.mxu0 %v6431_v6  ;;  %2388 = vmatprep.mubr.bf16.mxu1 %v6431_v6 }
 0x543   : > { %2316 = vmatpush1.bf16.msra.mxu0 %v7089_v55  ;;  %2359 = vmatpush1.bf16.msra.mxu1 %v7092_v35 }
 0x544   : > { %2317 = vmatprep.subr.bf16.mxu0 %v7095_v15  ;;  %2360 = vmatprep.subr.bf16.mxu1 %v7098_v18 }
 0x547   : > { %2318 = vmatpush1.bf16.msra.mxu0 %v7101_v36  ;;  %2361 = vmatpush1.bf16.msra.mxu1 %v7104_v37 }
 0x548   : > { %2319 = vmatprep.subr.bf16.mxu0 %v7107_v39  ;;  %2362 = vmatprep.subr.bf16.mxu1 %v7110_v40 }
 0x54b   : > { %2320 = vmatpush1.bf16.msra.mxu0 %v7113_v41  ;;  %2363 = vmatpush1.bf16.msra.mxu1 %v7116_v42 }
 0x54c   : > { %2321 = vmatprep.subr.bf16.mxu0 %v7119_v45  ;;  %2364 = vmatprep.subr.bf16.mxu1 %v7122_v46 }
 0x54f   : > { %2322 = vmatpush1.bf16.msra.mxu0 %v7125_v47  ;;  %2365 = vmatpush1.bf16.msra.mxu1 %v7128_v48 }
 0x550   : > { %2323 = vmatprep.subr.bf16.mxu0 %v7131_v63  ;;  %2366 = vmatprep.subr.bf16.mxu1 %v7134_v0 }
 0x553   : > { %2324 = vmatpush1.bf16.msra.mxu0 %v7137_v49  ;;  %2367 = vmatpush1.bf16.msra.mxu1 %v7140_v60 }
 0x554   : > { %2325 = vmatprep.subr.bf16.mxu0 %v7143_v61  ;;  %2368 = vmatprep.subr.bf16.mxu1 %v7211_v19 }
 0x557   : > { %2326 = vmatpush1.bf16.msra.mxu0 %v7214_v29  ;;  %2369 = vmatpush1.bf16.msra.mxu1 %v7217_v30 }
 0x558   : > { %2327 = vmatprep.subr.bf16.mxu0 %v7220_v28  ;;  %2370 = vmatprep.subr.bf16.mxu1 %v7223_v21 }
 0x55b   : > { %2328 = vmatpush1.bf16.msra.mxu0 %v7226_v51  ;;  %2371 = vmatpush1.bf16.msra.mxu1 %v7229_v50 }
 0x55c   : > { %2494 = vmatprep.subr.bf16.mxu0 %v7153_v62  ;;  %2537 = vmatprep.subr.bf16.mxu1 %v7156_v1 }
 0x611   : > { %v2166_v27 = vpop.f32.mrb[16].mxu0  ;;  %v2209_v25 = vpop.f32.mrb[16].mxu1 }
 0x612   : > { %v5161_v54 = vadd.f32 %v2166_v27, %v6983_v11  ;;  %v2168_v13 = vpop.f32.mrb[17].mxu0  ;;  %v2211_v9 = vpop.f32.mrb[17].mxu1  ;;  %v5225_v3 = vadd.f32 %v2209_v25, %v6990_v59 }
 0x613   : > { %v5162_v32 = vadd.f32 %v2168_v13, %v6985_v12  ;;  %v2170_v33 = vpop.f32.mrb[18].mxu0  ;;  %v2213_v38 = vpop.f32.mrb[18].mxu1  ;;  %v5226_v58 = vadd.f32 %v2211_v9, %v6993_v2 }
 0x614   : > { %v4729_v43 = vmul.f32 -1.442695, %v5161_v54  ;;  %v5163_v17 = vadd.f32 %v2170_v33, %v6983_v11  ;;  %v2172_v20 = vpop.f32.mrb[19].mxu0  ;;  %v2215_v23 = vpop.f32.mrb[19].mxu1  ;;  %v5227_v5 = vadd.f32 %v2213_v38, %v6990_v59  ;;  %v4731_v4 = vmul.f32 -1.442695, %v5225_v3 }
 0x615   : > { %v4730_v24 = vmul.f32 -1.442695, %v5162_v32  ;;  %v5164_v26 = vadd.f32 %v2172_v20, %v6985_v12  ;;  %v5228_v14 = vadd.f32 %v2215_v23, %v6993_v2 }
 0x616   : > { %5701 = vpow2.f32 %v4729_v43  ;;  %v4732_v52 = vmul.f32 -1.442695, %v5163_v17  ;;  %v4734_v7 = vmul.f32 -1.442695, %v5227_v5 }
 0x617   : > { %v4733_v56 = vmul.f32 -1.442695, %v5164_v26  ;;  %5703 = vpow2.f32 %v4730_v24 }
 0x618   : > { %5705 = vpow2.f32 %v4732_v52 }
 0x619   : > { %5707 = vpow2.f32 %v4733_v56 }
 0x61a   : > { %5709 = vtanh.f32 %v5226_v58 }
 0x61b   : > { %5711 = vpow2.f32 %v4731_v4  ;;  %v2283_v4 = vpop.permute.xlu0 %2282 }
 0x61c   : > { %5713 = vpow2.f32 %v4734_v7  ;;  %vm2287_vm9 = vcmp.eq.s32.totalorder %v2283_v4, 1 }
 0x620   : > { %v5702_v8 = vpop.eup %5701 }
 0x621   : > { %v2244_v27 = vadd.f32 1.0, %v5702_v8  ;;  %v5704_v54 = vpop.eup %5703 }
 0x622   : > { %v5706_v13 = vpop.eup %5705  ;;  %v2245_v32 = vadd.f32 1.0, %v5704_v54  ;;  %v2286_v54 = vpop.permute.xlu1 %2285 }
 0x623   : > { %5715 = vrcp.f32 %v2244_v27  ;;  %v2247_v25 = vadd.f32 1.0, %v5706_v13  ;;  %v5708_v33 = vpop.eup %5707  ;;  %vm2288_vm10 = vcmp.eq.s32.totalorder %v2286_v54, 1 }
 0x624   : > { %5717 = vtanh.f32 %v5228_v14  ;;  %v2248_v38 = vadd.f32 1.0, %v5708_v33  ;;  %v5710_v9 = vpop.eup %5709 }
 0x625   : > { %5719 = vrcp.f32 %v2245_v32  ;;  %v5712_v43 = vpop.eup %5711 }
 0x626   : > { %5721 = vrcp.f32 %v2247_v25  ;;  %v5714_v17 = vpop.eup %5713  ;;  %v2246_v52 = vadd.f32 1.0, %v5712_v43 }
 0x627   : > { %5723 = vrcp.f32 %v2248_v38  ;;  %v2249_v8 = vadd.f32 1.0, %v5714_v17 }
 0x628   : > { %5725 = vrcp.f32 %v2246_v52 }
 0x62d   : > { %v5716_v20 = vpop.eup %5715 }
 0x62e   : > { %v5718_v24 = vpop.eup %5717  ;;  %v2266_v23 = vmul.f32 %v5716_v20, %v5710_v9 }
 0x62f   : > { %v5720_v26 = vpop.eup %5719 }
 0x630   : > { %v5722_v56 = vpop.eup %5721  ;;  %v2264_v3 = vmul.f32 %v5720_v26, %v7246_v53 }
 0x631   : > { %v2267_v5 = vmul.f32 %v5722_v56, %v5718_v24  ;;  %v5724_v58 = vpop.eup %5723 }
 0x632   : > { %v2268_v7 = vadd.f32 %v2266_v23, %v2264_v3  ;;  %v2265_v14 = vmul.f32 %v5724_v58, %v7249_v57  ;;  %v5726_v25 = vpop.eup %5725 }
 0x634   : > { %5727 = vtanh.f32 %v2268_v7  ;;  %v7307_v27 = vsel %vm2287_vm9, %v2268_v7, %v7246_v53  ;;  %v2269_v13 = vadd.f32 %v2267_v5, %v2265_v14 }
 0x635   : > { %5729 = vrcp.f32 %v2249_v8 }
 0x636   : > { %5731 = vtanh.f32 %v2269_v13  ;;  %v7310_v32 = vsel %vm2288_vm10, %v2269_v13, %v7249_v57 }
 0x63e   : > { %v5728_v33 = vpop.eup %5727 }
 0x63f   : > { %v2272_v38 = vmul.f32 %v5728_v33, %v5726_v25  ;;  %v5730_v9 = vpop.eup %5729 }
 0x640   : > { %v5732_v43 = vpop.eup %5731 }
 0x641   : > { %v2273_v17 = vmul.f32 %v5732_v43, %v5730_v9  ;;  %v7314_v20 = vsel %vm2287_vm9, %v2272_v38, %v7253_v10 }
 0x643   : > { %v7317_v53 = vsel %vm2288_vm10, %v2273_v17, %v7256_v16 }
 0x644   : > { %v2293_v24 = vpack.c.bf16 %v7317_v53, %v7314_v20 }
 0x646   : > { %5118 = vst [vmem:[%s6664_s23 + $0x20] sm:$0xff] %v2293_v24   ;;  %2346 = vmatmul.mubr.bf16.vlgmr.msra.gmra.mrb[20].mxu0 %v2293_v24  ;;  %2389 = vmatmul.mubr.bf16.vlgmr.msra.gmra.mrb[20].mxu1 %v2293_v24 }
 0x647   : > { %2495 = vmatpush1.bf16.msra.mxu0 %v7075_v22  ;;  %2538 = vmatpush1.bf16.msra.mxu1 %v7078_v31 }
 0x648   : > { %2496 = vmatprep.subr.bf16.mxu0 %v7081_v34  ;;  %2539 = vmatprep.subr.bf16.mxu1 %v7084_v44 }
 0x649   : > { %2526 = vmatprep.mubr.bf16.mxu0 %v6431_v6  ;;  %2569 = vmatprep.mubr.bf16.mxu1 %v6431_v6 }
 0x64b   : > { %2497 = vmatpush1.bf16.msra.mxu0 %v7089_v55  ;;  %2540 = vmatpush1.bf16.msra.mxu1 %v7092_v35 }
 0x64c   : > { %2498 = vmatprep.subr.bf16.mxu0 %v7095_v15  ;;  %2541 = vmatprep.subr.bf16.mxu1 %v7098_v18 }
 0x64f   : > { %2499 = vmatpush1.bf16.msra.mxu0 %v7101_v36  ;;  %2542 = vmatpush1.bf16.msra.mxu1 %v7104_v37 }
 0x650   : > { %2500 = vmatprep.subr.bf16.mxu0 %v7107_v39  ;;  %2543 = vmatprep.subr.bf16.mxu1 %v7110_v40 }
 0x653   : > { %2501 = vmatpush1.bf16.msra.mxu0 %v7113_v41  ;;  %2544 = vmatpush1.bf16.msra.mxu1 %v7116_v42 }
 0x654   : > { %2502 = vmatprep.subr.bf16.mxu0 %v7119_v45  ;;  %2545 = vmatprep.subr.bf16.mxu1 %v7122_v46 }
 0x657   : > { %2503 = vmatpush1.bf16.msra.mxu0 %v7125_v47  ;;  %2546 = vmatpush1.bf16.msra.mxu1 %v7128_v48 }
 0x658   : > { %2504 = vmatprep.subr.bf16.mxu0 %v7131_v63  ;;  %2547 = vmatprep.subr.bf16.mxu1 %v7134_v0 }
 0x65b   : > { %2505 = vmatpush1.bf16.msra.mxu0 %v7137_v49  ;;  %2548 = vmatpush1.bf16.msra.mxu1 %v7140_v60 }
 0x65c   : > { %2506 = vmatprep.subr.bf16.mxu0 %v7143_v61  ;;  %2549 = vmatprep.subr.bf16.mxu1 %v7211_v19 }
 0x65f   : > { %2507 = vmatpush1.bf16.msra.mxu0 %v7214_v29  ;;  %2550 = vmatpush1.bf16.msra.mxu1 %v7217_v30 }
 0x660   : > { %2508 = vmatprep.subr.bf16.mxu0 %v7220_v28  ;;  %2551 = vmatprep.subr.bf16.mxu1 %v7223_v21 }
 0x663   : > { %2509 = vmatpush1.bf16.msra.mxu0 %v7226_v51  ;;  %2552 = vmatpush1.bf16.msra.mxu1 %v7229_v50 }
 0x664   : > { %2675 = vmatprep.subr.bf16.mxu0 %v7153_v62  ;;  %2718 = vmatprep.subr.bf16.mxu1 %v7156_v1 }
 0x719   : > { %v2347_v57 = vpop.f32.mrb[20].mxu0  ;;  %v2390_v10 = vpop.f32.mrb[20].mxu1 }
 0x71a   : > { %v5165_v16 = vadd.f32 %v2347_v57, %v6983_v11  ;;  %v2349_v23 = vpop.f32.mrb[21].mxu0  ;;  %v2392_v26 = vpop.f32.mrb[21].mxu1  ;;  %v5229_v25 = vadd.f32 %v2390_v10, %v6990_v59 }
 0x71b   : > { %v5166_v52 = vadd.f32 %v2349_v23, %v6985_v12  ;;  %v2351_v56 = vpop.f32.mrb[22].mxu0  ;;  %v2394_v3 = vpop.f32.mrb[22].mxu1  ;;  %v5230_v38 = vadd.f32 %v2392_v26, %v6993_v2 }
 0x71c   : > { %v4741_v5 = vmul.f32 -1.442695, %v5165_v16  ;;  %v5167_v58 = vadd.f32 %v2351_v56, %v6983_v11  ;;  %v2353_v4 = vpop.f32.mrb[23].mxu0  ;;  %v2396_v7 = vpop.f32.mrb[23].mxu1  ;;  %v5231_v33 = vadd.f32 %v2394_v3, %v6990_v59  ;;  %v4743_v9 = vmul.f32 -1.442695, %v5229_v25 }
 0x71d   : > { %v4742_v8 = vmul.f32 -1.442695, %v5166_v52  ;;  %v5168_v14 = vadd.f32 %v2353_v4, %v6985_v12  ;;  %v5232_v24 = vadd.f32 %v2396_v7, %v6993_v2 }
 0x71e   : > { %5733 = vpow2.f32 %v4741_v5  ;;  %v4744_v54 = vmul.f32 -1.442695, %v5167_v58  ;;  %v4746_v43 = vmul.f32 -1.442695, %v5231_v33 }
 0x71f   : > { %v4745_v13 = vmul.f32 -1.442695, %v5168_v14  ;;  %5735 = vpow2.f32 %v4742_v8 }
 0x720   : > { %5737 = vpow2.f32 %v4744_v54 }
 0x721   : > { %5739 = vpow2.f32 %v4745_v13 }
 0x722   : > { %5741 = vtanh.f32 %v5230_v38 }
 0x723   : > { %5743 = vpow2.f32 %v4743_v9  ;;  %v2464_v9 = vpop.permute.xlu0 %2463 }
 0x724   : > { %5745 = vpow2.f32 %v4746_v43  ;;  %vm2468_vm11 = vcmp.eq.s32.totalorder %v2464_v9, 1 }
 0x728   : > { %v5734_v17 = vpop.eup %5733 }
 0x729   : > { %v2425_v57 = vadd.f32 1.0, %v5734_v17  ;;  %v5736_v16 = vpop.eup %5735 }
 0x72a   : > { %v5738_v23 = vpop.eup %5737  ;;  %v2426_v52 = vadd.f32 1.0, %v5736_v16  ;;  %v2467_v16 = vpop.permute.xlu1 %2466 }
 0x72b   : > { %5747 = vrcp.f32 %v2425_v57  ;;  %v2428_v10 = vadd.f32 1.0, %v5738_v23  ;;  %v5740_v56 = vpop.eup %5739  ;;  %vm2469_vm12 = vcmp.eq.s32.totalorder %v2467_v16, 1 }
 0x72c   : > { %5749 = vtanh.f32 %v5232_v24  ;;  %v2429_v3 = vadd.f32 1.0, %v5740_v56  ;;  %v5742_v26 = vpop.eup %5741 }
 0x72d   : > { %5751 = vrcp.f32 %v2426_v52  ;;  %v5744_v5 = vpop.eup %5743 }
 0x72e   : > { %5753 = vrcp.f32 %v2428_v10  ;;  %v5746_v58 = vpop.eup %5745  ;;  %v2427_v54 = vadd.f32 1.0, %v5744_v5 }
 0x72f   : > { %5755 = vrcp.f32 %v2429_v3  ;;  %v2430_v17 = vadd.f32 1.0, %v5746_v58 }
 0x730   : > { %5757 = vrcp.f32 %v2427_v54 }
 0x735   : > { %v5748_v4 = vpop.eup %5747 }
 0x736   : > { %v5750_v8 = vpop.eup %5749  ;;  %v2447_v7 = vmul.f32 %v5748_v4, %v5742_v26 }
 0x737   : > { %v5752_v14 = vpop.eup %5751 }
 0x738   : > { %v5754_v13 = vpop.eup %5753  ;;  %v2445_v25 = vmul.f32 %v5752_v14, %v7307_v27 }
 0x739   : > { %v2448_v33 = vmul.f32 %v5754_v13, %v5750_v8  ;;  %v5756_v38 = vpop.eup %5755 }
 0x73a   : > { %v2449_v43 = vadd.f32 %v2447_v7, %v2445_v25  ;;  %v2446_v24 = vmul.f32 %v5756_v38, %v7310_v32  ;;  %v5758_v10 = vpop.eup %5757 }
 0x73c   : > { %5759 = vtanh.f32 %v2449_v43  ;;  %v7368_v57 = vsel %vm2468_vm11, %v2449_v43, %v7307_v27  ;;  %v2450_v23 = vadd.f32 %v2448_v33, %v2446_v24 }
 0x73d   : > { %5761 = vrcp.f32 %v2430_v17 }
 0x73e   : > { %5763 = vtanh.f32 %v2450_v23  ;;  %v7371_v52 = vsel %vm2469_vm12, %v2450_v23, %v7310_v32 }
 0x746   : > { %v5760_v56 = vpop.eup %5759 }
 0x747   : > { %v2453_v3 = vmul.f32 %v5760_v56, %v5758_v10  ;;  %v5762_v26 = vpop.eup %5761  ;;  %v2645_v56 = vpop.permute.xlu0 %2644 }
 0x748   : > { %v5764_v5 = vpop.eup %5763  ;;  %vm2649_vm13 = vcmp.eq.s32.totalorder %v2645_v56, 1 }
 0x749   : > { %v2454_v58 = vmul.f32 %v5764_v5, %v5762_v26  ;;  %v7375_v4 = vsel %vm2468_vm11, %v2453_v3, %v7314_v20 }
 0x74b   : > { %v7378_v27 = vsel %vm2469_vm12, %v2454_v58, %v7317_v53 }
 0x74c   : > { %v2474_v8 = vpack.c.bf16 %v7378_v27, %v7375_v4 }
 0x74e   : > { %5119 = vst [vmem:[%s6664_s23 + $0x28] sm:$0xff] %v2474_v8   ;;  %2527 = vmatmul.mubr.bf16.vlgmr.msra.gmra.mrb[24].mxu0 %v2474_v8  ;;  %2570 = vmatmul.mubr.bf16.vlgmr.msra.gmra.mrb[24].mxu1 %v2474_v8  ;;  %v2648_v8 = vpop.permute.xlu1 %2647 }
 0x74f   : > { %2676 = vmatpush1.bf16.msra.mxu0 %v7075_v22  ;;  %2719 = vmatpush1.bf16.msra.mxu1 %v7078_v31  ;;  %vm2650_vm14 = vcmp.eq.s32.totalorder %v2648_v8, 1 }
 0x750   : > { %2677 = vmatprep.subr.bf16.mxu0 %v7081_v34  ;;  %2720 = vmatprep.subr.bf16.mxu1 %v7084_v44 }
 0x751   : > { %2707 = vmatprep.mubr.bf16.mxu0 %v6431_v6  ;;  %2750 = vmatprep.mubr.bf16.mxu1 %v6431_v6 }
 0x753   : > { %2678 = vmatpush1.bf16.msra.mxu0 %v7089_v55  ;;  %2721 = vmatpush1.bf16.msra.mxu1 %v7092_v35 }
 0x754   : > { %2679 = vmatprep.subr.bf16.mxu0 %v7095_v15  ;;  %2722 = vmatprep.subr.bf16.mxu1 %v7098_v18 }
 0x757   : > { %2680 = vmatpush1.bf16.msra.mxu0 %v7101_v36  ;;  %2723 = vmatpush1.bf16.msra.mxu1 %v7104_v37 }
 0x758   : > { %2681 = vmatprep.subr.bf16.mxu0 %v7107_v39  ;;  %2724 = vmatprep.subr.bf16.mxu1 %v7110_v40 }
 0x75b   : > { %2682 = vmatpush1.bf16.msra.mxu0 %v7113_v41  ;;  %2725 = vmatpush1.bf16.msra.mxu1 %v7116_v42 }
 0x75c   : > { %2683 = vmatprep.subr.bf16.mxu0 %v7119_v45  ;;  %2726 = vmatprep.subr.bf16.mxu1 %v7122_v46 }
 0x75f   : > { %2684 = vmatpush1.bf16.msra.mxu0 %v7125_v47  ;;  %2727 = vmatpush1.bf16.msra.mxu1 %v7128_v48 }
 0x760   : > { %2685 = vmatprep.subr.bf16.mxu0 %v7131_v63  ;;  %2728 = vmatprep.subr.bf16.mxu1 %v7134_v0 }
 0x763   : > { %2686 = vmatpush1.bf16.msra.mxu0 %v7137_v49  ;;  %2729 = vmatpush1.bf16.msra.mxu1 %v7140_v60 }
 0x764   : > { %2687 = vmatprep.subr.bf16.mxu0 %v7143_v61  ;;  %2730 = vmatprep.subr.bf16.mxu1 %v7211_v19 }
 0x767   : > { %2688 = vmatpush1.bf16.msra.mxu0 %v7214_v29  ;;  %2731 = vmatpush1.bf16.msra.mxu1 %v7217_v30 }
 0x768   : > { %2689 = vmatprep.subr.bf16.mxu0 %v7220_v28  ;;  %2732 = vmatprep.subr.bf16.mxu1 %v7223_v21 }
 0x76b   : > { %2690 = vmatpush1.bf16.msra.mxu0 %v7226_v51  ;;  %2733 = vmatpush1.bf16.msra.mxu1 %v7229_v50 }
 0x76c   : > { %2856 = vmatprep.subr.bf16.mxu0 %v7153_v62  ;;  %2899 = vmatprep.subr.bf16.mxu1 %v7156_v1 }
 0x821   : > { %v2528_v22 = vpop.f32.mrb[24].mxu0  ;;  %v2571_v31 = vpop.f32.mrb[24].mxu1 }
 0x822   : > { %v5169_v34 = vadd.f32 %v2528_v22, %v6983_v11  ;;  %v2530_v44 = vpop.f32.mrb[25].mxu0  ;;  %v2573_v55 = vpop.f32.mrb[25].mxu1  ;;  %v5233_v47 = vadd.f32 %v2571_v31, %v6990_v59 }
 0x823   : > { %v5170_v35 = vadd.f32 %v2530_v44, %v6985_v12  ;;  %v2532_v15 = vpop.f32.mrb[26].mxu0  ;;  %v2575_v18 = vpop.f32.mrb[26].mxu1  ;;  %v5234_v63 = vadd.f32 %v2573_v55, %v6993_v2 }
 0x824   : > { %v4753_v36 = vmul.f32 -1.442695, %v5169_v34  ;;  %v5171_v37 = vadd.f32 %v2532_v15, %v6983_v11  ;;  %v2534_v39 = vpop.f32.mrb[27].mxu0  ;;  %v2577_v40 = vpop.f32.mrb[27].mxu1  ;;  %v5235_v48 = vadd.f32 %v2575_v18, %v6990_v59  ;;  %v4755_v0 = vmul.f32 -1.442695, %v5233_v47 }
 0x825   : > { %v4754_v41 = vmul.f32 -1.442695, %v5170_v35  ;;  %v5172_v42 = vadd.f32 %v2534_v39, %v6985_v12  ;;  %v5236_v61 = vadd.f32 %v2577_v40, %v6993_v2  ;;  %v7447_v39 = vld [vmem:[#allocation12 + $0x8] ss:$16 sps:$4 sm:$0xff]   ;;  %v7450_v40 = vld [vmem:[#allocation12 + $0x24] ss:$16 sps:$4 sm:$0xff]  }
 0x826   : > { %5765 = vpow2.f32 %v4753_v36  ;;  %v4756_v45 = vmul.f32 -1.442695, %v5171_v37  ;;  %v4758_v49 = vmul.f32 -1.442695, %v5235_v48  ;;  %v7473_v47 = vld [vmem:[#allocation12 + $0x48] ss:$16 sps:$4 sm:$0xff]  }
 0x827   : > { %v4757_v46 = vmul.f32 -1.442695, %v5172_v42  ;;  %5767 = vpow2.f32 %v4754_v41  ;;  %v7461_v41 = vld [vmem:[#allocation12 + $0x28] ss:$16 sps:$4 sm:$0xff]   ;;  %v7464_v42 = vld [vmem:[#allocation12 + $0x44] ss:$16 sps:$4 sm:$0xff]  }
 0x828   : > { %5769 = vpow2.f32 %v4756_v45  ;;  %v7467_v45 = vld [vmem:[#allocation12 + $0x4c] ss:$16 sps:$4 sm:$0xff]   ;;  %v7476_v48 = vld [vmem:[#allocation12 + $0x64] ss:$16 sps:$4 sm:$0xff]  }
 0x829   : > { %5771 = vpow2.f32 %v4757_v46  ;;  %v7470_v46 = vld [vmem:[#allocation12 + $0x40] ss:$16 sps:$4 sm:$0xff]  }
 0x82a   : > { %5773 = vtanh.f32 %v5234_v63  ;;  %v7479_v63 = vld [vmem:[#allocation12 + $0x6c] ss:$16 sps:$4 sm:$0xff]  }
 0x82b   : > { %5775 = vpow2.f32 %v4755_v0  ;;  %v7482_v0 = vld [vmem:[#allocation12 + $0x60] ss:$16 sps:$4 sm:$0xff]  }
 0x82c   : > { %5777 = vpow2.f32 %v4758_v49  ;;  %v7485_v49 = vld [vmem:[#allocation12 + $0x68] ss:$16 sps:$4 sm:$0xff]  }
 0x830   : > { %v5766_v60 = vpop.eup %5765 }
 0x831   : > { %v2606_v62 = vadd.f32 1.0, %v5766_v60  ;;  %v5768_v1 = vpop.eup %5767  ;;  %v7488_v60 = vld [vmem:[#allocation12 + $0x84] ss:$16 sps:$4 sm:$0xff]  }
 0x832   : > { %v5770_v32 = vpop.eup %5769  ;;  %v2607_v20 = vadd.f32 1.0, %v5768_v1  ;;  %v7497_v1 = vld [vmem:[#allocation12 + $0x88] ss:$16 sps:$4 sm:$0xff]  }
 0x833   : > { %5779 = vrcp.f32 %v2606_v62  ;;  %v2609_v53 = vadd.f32 1.0, %v5770_v32  ;;  %v5772_v7 = vpop.eup %5771  ;;  %v7494_v62 = vld [vmem:[#allocation12 + $0x80] ss:$16 sps:$4 sm:$0xff]   ;;  %v7500_v32 = vld [vmem:[#allocation12 + $0xa4] ss:$16 sps:$4 sm:$0xff]  }
 0x834   : > { %5781 = vtanh.f32 %v5236_v61  ;;  %v2610_v14 = vadd.f32 1.0, %v5772_v7  ;;  %v5774_v54 = vpop.eup %5773  ;;  %v7491_v61 = vld [vmem:[#allocation12 + $0x8c] ss:$16 sps:$4 sm:$0xff]   ;;  %v7509_v7 = vld [vmem:[#allocation12 + $0xa8] ss:$16 sps:$4 sm:$0xff]  }
 0x835   : > { %5783 = vrcp.f32 %v2607_v20  ;;  %v5776_v13 = vpop.eup %5775  ;;  %v7503_v20 = vld [vmem:[#allocation12 + $0xac] ss:$16 sps:$4 sm:$0xff]  }
 0x836   : > { %5785 = vrcp.f32 %v2609_v53  ;;  %v5778_v25 = vpop.eup %5777  ;;  %v2608_v17 = vadd.f32 1.0, %v5776_v13  ;;  %v7506_v53 = vld [vmem:[#allocation12 + $0xa0] ss:$16 sps:$4 sm:$0xff]   ;;  %v7525_v13 = vld [vmem:[#allocation12 + $0xc] ss:$16 sps:$4 sm:$0xff]  }
 0x837   : > { %5787 = vrcp.f32 %v2610_v14  ;;  %v2611_v26 = vadd.f32 1.0, %v5778_v25  ;;  %v7512_v14 = vld [vmem:[#allocation12 + $0xc4] ss:$16 sps:$4 sm:$0xff]  }
 0x838   : > { %5789 = vrcp.f32 %v2608_v17 }
 0x83d   : > { %v5780_v33 = vpop.eup %5779 }
 0x83e   : > { %v5782_v38 = vpop.eup %5781  ;;  %v2628_v9 = vmul.f32 %v5780_v33, %v5774_v54  ;;  %v7522_v54 = vld [vmem:[#allocation12 + $0x4] ss:$16 sps:$4 sm:$0xff]  }
 0x83f   : > { %v5784_v43 = vpop.eup %5783 }
 0x840   : > { %v5786_v24 = vpop.eup %5785  ;;  %v2626_v16 = vmul.f32 %v5784_v43, %v7368_v57 }
 0x841   : > { %v2629_v23 = vmul.f32 %v5786_v24, %v5782_v38  ;;  %v5788_v10 = vpop.eup %5787 }
 0x842   : > { %v2630_v3 = vadd.f32 %v2628_v9, %v2626_v16  ;;  %v2627_v5 = vmul.f32 %v5788_v10, %v7371_v52  ;;  %v5790_v34 = vpop.eup %5789 }
 0x844   : > { %5791 = vtanh.f32 %v2630_v3  ;;  %v7429_v58 = vsel %vm2649_vm13, %v2630_v3, %v7368_v57  ;;  %v2631_v22 = vadd.f32 %v2629_v23, %v2627_v5 }
 0x845   : > { %5793 = vrcp.f32 %v2611_v26 }
 0x846   : > { %5795 = vtanh.f32 %v2631_v22  ;;  %v7432_v31 = vsel %vm2650_vm14, %v2631_v22, %v7371_v52  ;;  %v7444_v52 = vld [vmem:[#allocation12] ss:$16 sps:$4 sm:$0xff]  }
 0x84e   : > { %v5792_v44 = vpop.eup %5791 }
 0x84f   : > { %v2634_v55 = vmul.f32 %v5792_v44, %v5790_v34  ;;  %v5794_v35 = vpop.eup %5793 }
 0x850   : > { %v5796_v15 = vpop.eup %5795 }
 0x851   : > { %v2635_v18 = vmul.f32 %v5796_v15, %v5794_v35  ;;  %v7436_v36 = vsel %vm2649_vm13, %v2634_v55, %v7375_v4  ;;  %v7453_v4 = vld [vmem:[#allocation12 + $0x2c] ss:$16 sps:$4 sm:$0xff]  }
 0x853   : > { %v7439_v57 = vsel %vm2650_vm14, %v2635_v18, %v7378_v27  ;;  %v7458_v27 = vld [vmem:[#allocation12 + $0x20] ss:$16 sps:$4 sm:$0xff]  }
 0x854   : > { %v2655_v37 = vpack.c.bf16 %v7439_v57, %v7436_v36 }
 0x856   : > { %5120 = vst [vmem:[%s6664_s23 + $0x30] sm:$0xff] %v2655_v37   ;;  %2708 = vmatmul.mubr.bf16.vlgmr.msra.gmra.mrb[28].mxu0 %v2655_v37  ;;  %2751 = vmatmul.mubr.bf16.vlgmr.msra.gmra.mrb[28].mxu1 %v2655_v37 }
 0x857   : > { %2857 = vmatpush1.bf16.msra.mxu0 %v7444_v52  ;;  %2900 = vmatpush1.bf16.msra.mxu1 %v7447_v39 }
 0x858   : > { %2858 = vmatprep.subr.bf16.mxu0 %v7450_v40  ;;  %2901 = vmatprep.subr.bf16.mxu1 %v7453_v4 }
 0x859   : > { %2888 = vmatprep.mubr.bf16.mxu0 %v6431_v6  ;;  %2931 = vmatprep.mubr.bf16.mxu1 %v6431_v6 }
 0x85b   : > { %2859 = vmatpush1.bf16.msra.mxu0 %v7458_v27  ;;  %2902 = vmatpush1.bf16.msra.mxu1 %v7461_v41 }
 0x85c   : > { %2860 = vmatprep.subr.bf16.mxu0 %v7464_v42  ;;  %2903 = vmatprep.subr.bf16.mxu1 %v7467_v45 }
 0x85f   : > { %2861 = vmatpush1.bf16.msra.mxu0 %v7470_v46  ;;  %2904 = vmatpush1.bf16.msra.mxu1 %v7473_v47 }
 0x860   : > { %2862 = vmatprep.subr.bf16.mxu0 %v7476_v48  ;;  %2905 = vmatprep.subr.bf16.mxu1 %v7479_v63 }
 0x863   : > { %2863 = vmatpush1.bf16.msra.mxu0 %v7482_v0  ;;  %2906 = vmatpush1.bf16.msra.mxu1 %v7485_v49 }
 0x864   : > { %2864 = vmatprep.subr.bf16.mxu0 %v7488_v60  ;;  %2907 = vmatprep.subr.bf16.mxu1 %v7491_v61 }
 0x867   : > { %2865 = vmatpush1.bf16.msra.mxu0 %v7494_v62  ;;  %2908 = vmatpush1.bf16.msra.mxu1 %v7497_v1 }
 0x868   : > { %2866 = vmatprep.subr.bf16.mxu0 %v7500_v32  ;;  %2909 = vmatprep.subr.bf16.mxu1 %v7503_v20 }
 0x86b   : > { %2867 = vmatpush1.bf16.msra.mxu0 %v7506_v53  ;;  %2910 = vmatpush1.bf16.msra.mxu1 %v7509_v7 }
 0x86c   : > { %2868 = vmatprep.subr.bf16.mxu0 %v7512_v14  ;;  %2911 = vmatprep.subr.bf16.mxu1 %v7211_v19 }
 0x86f   : > { %2869 = vmatpush1.bf16.msra.mxu0 %v7214_v29  ;;  %2912 = vmatpush1.bf16.msra.mxu1 %v7217_v30 }
 0x870   : > { %2870 = vmatprep.subr.bf16.mxu0 %v7220_v28  ;;  %2913 = vmatprep.subr.bf16.mxu1 %v7223_v21 }
 0x873   : > { %2871 = vmatpush1.bf16.msra.mxu0 %v7226_v51  ;;  %2914 = vmatpush1.bf16.msra.mxu1 %v7229_v50 }
 0x874   : > { %3037 = vmatprep.subr.bf16.mxu0 %v7522_v54  ;;  %3080 = vmatprep.subr.bf16.mxu1 %v7525_v13 }
 0x929   : > { %v2709_v19 = vpop.f32.mrb[28].mxu0  ;;  %v2752_v29 = vpop.f32.mrb[28].mxu1 }
 0x92a   : > { %v5173_v30 = vadd.f32 %v2709_v19, %v6983_v11  ;;  %v2711_v25 = vpop.f32.mrb[29].mxu0  ;;  %v2754_v28 = vpop.f32.mrb[29].mxu1  ;;  %v5237_v10 = vadd.f32 %v2752_v29, %v6990_v59 }
 0x92b   : > { %v5174_v21 = vadd.f32 %v2711_v25, %v6985_v12  ;;  %v2713_v33 = vpop.f32.mrb[30].mxu0  ;;  %v2756_v51 = vpop.f32.mrb[30].mxu1  ;;  %v5238_v3 = vadd.f32 %v2754_v28, %v6993_v2 }
 0x92c   : > { %v4765_v38 = vmul.f32 -1.442695, %v5173_v30  ;;  %v5175_v50 = vadd.f32 %v2713_v33, %v6983_v11  ;;  %v2715_v9 = vpop.f32.mrb[31].mxu0  ;;  %v2758_v43 = vpop.f32.mrb[31].mxu1  ;;  %v5239_v56 = vadd.f32 %v2756_v51, %v6990_v59  ;;  %v4767_v26 = vmul.f32 -1.442695, %v5237_v10 }
 0x92d   : > { %v4766_v17 = vmul.f32 -1.442695, %v5174_v21  ;;  %v5176_v24 = vadd.f32 %v2715_v9, %v6985_v12  ;;  %v5240_v22 = vadd.f32 %v2758_v43, %v6993_v2 }
 0x92e   : > { %5797 = vpow2.f32 %v4765_v38  ;;  %v4768_v16 = vmul.f32 -1.442695, %v5175_v50  ;;  %v4770_v5 = vmul.f32 -1.442695, %v5239_v56  ;;  %v2829_v56 = vpop.permute.xlu1 %2828 }
 0x92f   : > { %v4769_v23 = vmul.f32 -1.442695, %v5176_v24  ;;  %5799 = vpow2.f32 %v4766_v17  ;;  %v2826_v17 = vpop.permute.xlu0 %2825  ;;  %vm2831_vm1 = vcmp.eq.s32.totalorder %v2829_v56, 1 }
 0x930   : > { %5801 = vpow2.f32 %v4768_v16  ;;  %vm2830_vm15 = vcmp.eq.s32.totalorder %v2826_v17, 1 }
 0x931   : > { %5803 = vpow2.f32 %v4769_v23 }
 0x932   : > { %5805 = vtanh.f32 %v5238_v3 }
 0x933   : > { %5807 = vpow2.f32 %v4767_v26 }
 0x934   : > { %5809 = vpow2.f32 %v4770_v5 }
 0x938   : > { %v5798_v8 = vpop.eup %5797 }
 0x939   : > { %v2787_v34 = vadd.f32 1.0, %v5798_v8  ;;  %v5800_v44 = vpop.eup %5799 }
 0x93a   : > { %v5802_v55 = vpop.eup %5801  ;;  %v2788_v35 = vadd.f32 1.0, %v5800_v44 }
 0x93b   : > { %5811 = vrcp.f32 %v2787_v34  ;;  %v2790_v15 = vadd.f32 1.0, %v5802_v55  ;;  %v5804_v18 = vpop.eup %5803 }
 0x93c   : > { %5813 = vtanh.f32 %v5240_v22  ;;  %v2791_v37 = vadd.f32 1.0, %v5804_v18  ;;  %v5806_v19 = vpop.eup %5805  ;;  %v7589_v18 = vld [vmem:[#allocation12 + $0xe4] ss:$16 sps:$4 sm:$0xff]  }
 0x93d   : > { %5815 = vrcp.f32 %v2788_v35  ;;  %v5808_v29 = vpop.eup %5807 }
 0x93e   : > { %5817 = vrcp.f32 %v2790_v15  ;;  %v5810_v30 = vpop.eup %5809  ;;  %v2789_v51 = vadd.f32 1.0, %v5808_v29  ;;  %v7598_v29 = vld [vmem:[#allocation12 + $0xe8] ss:$16 sps:$4 sm:$0xff]  }
 0x93f   : > { %5819 = vrcp.f32 %v2791_v37  ;;  %v2792_v16 = vadd.f32 1.0, %v5810_v30  ;;  %v7592_v37 = vld [vmem:[#allocation12 + $0xec] ss:$16 sps:$4 sm:$0xff]  }
 0x940   : > { %5821 = vrcp.f32 %v2789_v51 }
 0x945   : > { %v5812_v25 = vpop.eup %5811 }
 0x946   : > { %v5814_v28 = vpop.eup %5813  ;;  %v2809_v21 = vmul.f32 %v5812_v25, %v5806_v19  ;;  %v7595_v19 = vld [vmem:[#allocation12 + $0xe0] ss:$16 sps:$4 sm:$0xff]  }
 0x947   : > { %v5816_v33 = vpop.eup %5815 }
 0x948   : > { %v5818_v38 = vpop.eup %5817  ;;  %v2807_v50 = vmul.f32 %v5816_v33, %v7429_v58 }
 0x949   : > { %v2810_v9 = vmul.f32 %v5818_v38, %v5814_v28  ;;  %v5820_v43 = vpop.eup %5819 }
 0x94a   : > { %v2811_v24 = vadd.f32 %v2809_v21, %v2807_v50  ;;  %v2808_v23 = vmul.f32 %v5820_v43, %v7432_v31  ;;  %v5822_v5 = vpop.eup %5821 }
 0x94c   : > { %5823 = vtanh.f32 %v2811_v24  ;;  %v7540_v10 = vsel %vm2830_vm15, %v2811_v24, %v7429_v58  ;;  %v2812_v3 = vadd.f32 %v2810_v9, %v2808_v23 }
 0x94d   : > { %5825 = vrcp.f32 %v2792_v16 }
 0x94e   : > { %5827 = vtanh.f32 %v2812_v3  ;;  %v7543_v26 = vsel %vm2831_vm1, %v2812_v3, %v7432_v31  ;;  %v7580_v31 = vld [vmem:[#allocation12 + $0xcc] ss:$16 sps:$4 sm:$0xff]  }
 0x956   : > { %v5824_v8 = vpop.eup %5823 }
 0x957   : > { %v2815_v22 = vmul.f32 %v5824_v8, %v5822_v5  ;;  %v5826_v34 = vpop.eup %5825 }
 0x958   : > { %v5828_v44 = vpop.eup %5827 }
 0x959   : > { %v2816_v55 = vmul.f32 %v5828_v44, %v5826_v34  ;;  %v7547_v35 = vsel %vm2830_vm15, %v2815_v22, %v7436_v36  ;;  %v7583_v36 = vld [vmem:[#allocation12 + $0xc0] ss:$16 sps:$4 sm:$0xff]  }
 0x95b   : > { %v7550_v58 = vsel %vm2831_vm1, %v2816_v55, %v7439_v57  ;;  %v7586_v57 = vld [vmem:[#allocation12 + $0xc8] ss:$16 sps:$4 sm:$0xff]  }
 0x95c   : > { %v2836_v15 = vpack.c.bf16 %v7550_v58, %v7547_v35 }
 0x95e   : > { %5121 = vst [vmem:[%s6664_s23 + $0x38] sm:$0xff] %v2836_v15   ;;  %2889 = vmatmul.mubr.bf16.vlgmr.msra.gmra.mrb[32].mxu0 %v2836_v15  ;;  %2932 = vmatmul.mubr.bf16.vlgmr.msra.gmra.mrb[32].mxu1 %v2836_v15 }
 0x95f   : > { %3038 = vmatpush1.bf16.msra.mxu0 %v7444_v52  ;;  %3081 = vmatpush1.bf16.msra.mxu1 %v7447_v39 }
 0x960   : > { %3039 = vmatprep.subr.bf16.mxu0 %v7450_v40  ;;  %3082 = vmatprep.subr.bf16.mxu1 %v7453_v4 }
 0x961   : > { %3069 = vmatprep.mubr.bf16.mxu0 %v6431_v6  ;;  %3112 = vmatprep.mubr.bf16.mxu1 %v6431_v6 }
 0x963   : > { %3040 = vmatpush1.bf16.msra.mxu0 %v7458_v27  ;;  %3083 = vmatpush1.bf16.msra.mxu1 %v7461_v41 }
 0x964   : > { %3041 = vmatprep.subr.bf16.mxu0 %v7464_v42  ;;  %3084 = vmatprep.subr.bf16.mxu1 %v7467_v45 }
 0x967   : > { %3042 = vmatpush1.bf16.msra.mxu0 %v7470_v46  ;;  %3085 = vmatpush1.bf16.msra.mxu1 %v7473_v47 }
 0x968   : > { %3043 = vmatprep.subr.bf16.mxu0 %v7476_v48  ;;  %3086 = vmatprep.subr.bf16.mxu1 %v7479_v63 }
 0x96b   : > { %3044 = vmatpush1.bf16.msra.mxu0 %v7482_v0  ;;  %3087 = vmatpush1.bf16.msra.mxu1 %v7485_v49 }
 0x96c   : > { %3045 = vmatprep.subr.bf16.mxu0 %v7488_v60  ;;  %3088 = vmatprep.subr.bf16.mxu1 %v7491_v61 }
 0x96f   : > { %3046 = vmatpush1.bf16.msra.mxu0 %v7494_v62  ;;  %3089 = vmatpush1.bf16.msra.mxu1 %v7497_v1 }
 0x970   : > { %3047 = vmatprep.subr.bf16.mxu0 %v7500_v32  ;;  %3090 = vmatprep.subr.bf16.mxu1 %v7503_v20 }
 0x973   : > { %3048 = vmatpush1.bf16.msra.mxu0 %v7506_v53  ;;  %3091 = vmatpush1.bf16.msra.mxu1 %v7509_v7 }
 0x974   : > { %3049 = vmatprep.subr.bf16.mxu0 %v7512_v14  ;;  %3092 = vmatprep.subr.bf16.mxu1 %v7580_v31 }
 0x977   : > { %3050 = vmatpush1.bf16.msra.mxu0 %v7583_v36  ;;  %3093 = vmatpush1.bf16.msra.mxu1 %v7586_v57 }
 0x978   : > { %3051 = vmatprep.subr.bf16.mxu0 %v7589_v18  ;;  %3094 = vmatprep.subr.bf16.mxu1 %v7592_v37 }
 0x97b   : > { %3052 = vmatpush1.bf16.msra.mxu0 %v7595_v19  ;;  %3095 = vmatpush1.bf16.msra.mxu1 %v7598_v29 }
 0x97c   : > { %3218 = vmatprep.subr.bf16.mxu0 %v7522_v54  ;;  %3261 = vmatprep.subr.bf16.mxu1 %v7525_v13 }
 0xa31   : > { %v2890_v30 = vpop.f32.mrb[32].mxu0  ;;  %v2933_v25 = vpop.f32.mrb[32].mxu1 }
 0xa32   : > { %v5177_v28 = vadd.f32 %v2890_v30, %v6983_v11  ;;  %v2892_v21 = vpop.f32.mrb[33].mxu0  ;;  %v2935_v33 = vpop.f32.mrb[33].mxu1  ;;  %v5241_v5 = vadd.f32 %v2933_v25, %v6990_v59 }
 0xa33   : > { %v5178_v51 = vadd.f32 %v2892_v21, %v6985_v12  ;;  %v2894_v38 = vpop.f32.mrb[34].mxu0  ;;  %v2937_v50 = vpop.f32.mrb[34].mxu1  ;;  %v5242_v22 = vadd.f32 %v2935_v33, %v6993_v2 }
 0xa34   : > { %v4777_v9 = vmul.f32 -1.442695, %v5177_v28  ;;  %v5179_v43 = vadd.f32 %v2894_v38, %v6983_v11  ;;  %v2896_v17 = vpop.f32.mrb[35].mxu0  ;;  %v2939_v24 = vpop.f32.mrb[35].mxu1  ;;  %v5243_v8 = vadd.f32 %v2937_v50, %v6990_v59  ;;  %v4779_v34 = vmul.f32 -1.442695, %v5241_v5 }
 0xa35   : > { %v4778_v16 = vmul.f32 -1.442695, %v5178_v51  ;;  %v5180_v23 = vadd.f32 %v2896_v17, %v6985_v12  ;;  %v5244_v15 = vadd.f32 %v2939_v24, %v6993_v2 }
 0xa36   : > { %5829 = vpow2.f32 %v4777_v9  ;;  %v4780_v56 = vmul.f32 -1.442695, %v5179_v43  ;;  %v4782_v44 = vmul.f32 -1.442695, %v5243_v8 }
 0xa37   : > { %v4781_v3 = vmul.f32 -1.442695, %v5180_v23  ;;  %5831 = vpow2.f32 %v4778_v16 }
 0xa38   : > { %5833 = vpow2.f32 %v4780_v56 }
 0xa39   : > { %5835 = vpow2.f32 %v4781_v3 }
 0xa3a   : > { %5837 = vtanh.f32 %v5242_v22 }
 0xa3b   : > { %5839 = vpow2.f32 %v4779_v34  ;;  %v3007_v34 = vpop.permute.xlu0 %3006 }
 0xa3c   : > { %5841 = vpow2.f32 %v4782_v44  ;;  %vm3011_vm0 = vcmp.eq.s32.totalorder %v3007_v34, 1 }
 0xa40   : > { %v5830_v55 = vpop.eup %5829 }
 0xa41   : > { %v2968_v30 = vadd.f32 1.0, %v5830_v55  ;;  %v5832_v28 = vpop.eup %5831 }
 0xa42   : > { %v5834_v21 = vpop.eup %5833  ;;  %v2969_v51 = vadd.f32 1.0, %v5832_v28  ;;  %v3010_v28 = vpop.permute.xlu1 %3009 }
 0xa43   : > { %5843 = vrcp.f32 %v2968_v30  ;;  %v2971_v25 = vadd.f32 1.0, %v5834_v21  ;;  %v5836_v38 = vpop.eup %5835  ;;  %vm3012_vm2 = vcmp.eq.s32.totalorder %v3010_v28, 1 }
 0xa44   : > { %5845 = vtanh.f32 %v5244_v15  ;;  %v2972_v50 = vadd.f32 1.0, %v5836_v38  ;;  %v5838_v33 = vpop.eup %5837 }
 0xa45   : > { %5847 = vrcp.f32 %v2969_v51  ;;  %v5840_v9 = vpop.eup %5839 }
 0xa46   : > { %5849 = vrcp.f32 %v2971_v25  ;;  %v5842_v43 = vpop.eup %5841  ;;  %v2970_v56 = vadd.f32 1.0, %v5840_v9 }
 0xa47   : > { %5851 = vrcp.f32 %v2972_v50  ;;  %v2973_v55 = vadd.f32 1.0, %v5842_v43 }
 0xa48   : > { %5853 = vrcp.f32 %v2970_v56 }
 0xa4d   : > { %v5844_v17 = vpop.eup %5843 }
 0xa4e   : > { %v5846_v16 = vpop.eup %5845  ;;  %v2990_v24 = vmul.f32 %v5844_v17, %v5838_v33 }
 0xa4f   : > { %v5848_v23 = vpop.eup %5847 }
 0xa50   : > { %v5850_v3 = vpop.eup %5849  ;;  %v2988_v5 = vmul.f32 %v5848_v23, %v7540_v10 }
 0xa51   : > { %v2991_v8 = vmul.f32 %v5850_v3, %v5846_v16  ;;  %v5852_v22 = vpop.eup %5851 }
 0xa52   : > { %v2992_v44 = vadd.f32 %v2990_v24, %v2988_v5  ;;  %v2989_v15 = vmul.f32 %v5852_v22, %v7543_v26  ;;  %v5854_v25 = vpop.eup %5853 }
 0xa54   : > { %5855 = vtanh.f32 %v2992_v44  ;;  %v7615_v30 = vsel %vm3011_vm0, %v2992_v44, %v7540_v10  ;;  %v2993_v21 = vadd.f32 %v2991_v8, %v2989_v15 }
 0xa55   : > { %5857 = vrcp.f32 %v2973_v55 }
 0xa56   : > { %5859 = vtanh.f32 %v2993_v21  ;;  %v7618_v51 = vsel %vm3012_vm2, %v2993_v21, %v7543_v26 }
 0xa5e   : > { %v5856_v38 = vpop.eup %5855 }
 0xa5f   : > { %v2996_v50 = vmul.f32 %v5856_v38, %v5854_v25  ;;  %v5858_v33 = vpop.eup %5857 }
 0xa60   : > { %v5860_v9 = vpop.eup %5859 }
 0xa61   : > { %v2997_v43 = vmul.f32 %v5860_v9, %v5858_v33  ;;  %v7622_v17 = vsel %vm3011_vm0, %v2996_v50, %v7547_v35 }
 0xa63   : > { %v7625_v10 = vsel %vm3012_vm2, %v2997_v43, %v7550_v58 }
 0xa64   : > { %v3017_v16 = vpack.c.bf16 %v7625_v10, %v7622_v17 }
 0xa66   : > { %5122 = vst [vmem:[%s6664_s23 + $0x40] sm:$0xff] %v3017_v16   ;;  %3070 = vmatmul.mubr.bf16.vlgmr.msra.gmra.mrb[36].mxu0 %v3017_v16  ;;  %3113 = vmatmul.mubr.bf16.vlgmr.msra.gmra.mrb[36].mxu1 %v3017_v16 }
 0xa67   : > { %3219 = vmatpush1.bf16.msra.mxu0 %v7444_v52  ;;  %3262 = vmatpush1.bf16.msra.mxu1 %v7447_v39 }
 0xa68   : > { %3220 = vmatprep.subr.bf16.mxu0 %v7450_v40  ;;  %3263 = vmatprep.subr.bf16.mxu1 %v7453_v4 }
 0xa69   : > { %3250 = vmatprep.mubr.bf16.mxu0 %v6431_v6  ;;  %3293 = vmatprep.mubr.bf16.mxu1 %v6431_v6 }
 0xa6b   : > { %3221 = vmatpush1.bf16.msra.mxu0 %v7458_v27  ;;  %3264 = vmatpush1.bf16.msra.mxu1 %v7461_v41 }
 0xa6c   : > { %3222 = vmatprep.subr.bf16.mxu0 %v7464_v42  ;;  %3265 = vmatprep.subr.bf16.mxu1 %v7467_v45 }
 0xa6f   : > { %3223 = vmatpush1.bf16.msra.mxu0 %v7470_v46  ;;  %3266 = vmatpush1.bf16.msra.mxu1 %v7473_v47 }
 0xa70   : > { %3224 = vmatprep.subr.bf16.mxu0 %v7476_v48  ;;  %3267 = vmatprep.subr.bf16.mxu1 %v7479_v63 }
 0xa73   : > { %3225 = vmatpush1.bf16.msra.mxu0 %v7482_v0  ;;  %3268 = vmatpush1.bf16.msra.mxu1 %v7485_v49 }
 0xa74   : > { %3226 = vmatprep.subr.bf16.mxu0 %v7488_v60  ;;  %3269 = vmatprep.subr.bf16.mxu1 %v7491_v61 }
 0xa77   : > { %3227 = vmatpush1.bf16.msra.mxu0 %v7494_v62  ;;  %3270 = vmatpush1.bf16.msra.mxu1 %v7497_v1 }
 0xa78   : > { %3228 = vmatprep.subr.bf16.mxu0 %v7500_v32  ;;  %3271 = vmatprep.subr.bf16.mxu1 %v7503_v20 }
 0xa7b   : > { %3229 = vmatpush1.bf16.msra.mxu0 %v7506_v53  ;;  %3272 = vmatpush1.bf16.msra.mxu1 %v7509_v7 }
 0xa7c   : > { %3230 = vmatprep.subr.bf16.mxu0 %v7512_v14  ;;  %3273 = vmatprep.subr.bf16.mxu1 %v7580_v31 }
 0xa7f   : > { %3231 = vmatpush1.bf16.msra.mxu0 %v7583_v36  ;;  %3274 = vmatpush1.bf16.msra.mxu1 %v7586_v57 }
 0xa80   : > { %3232 = vmatprep.subr.bf16.mxu0 %v7589_v18  ;;  %3275 = vmatprep.subr.bf16.mxu1 %v7592_v37 }
 0xa83   : > { %3233 = vmatpush1.bf16.msra.mxu0 %v7595_v19  ;;  %3276 = vmatpush1.bf16.msra.mxu1 %v7598_v29 }
 0xa84   : > { %3399 = vmatprep.subr.bf16.mxu0 %v7522_v54  ;;  %3442 = vmatprep.subr.bf16.mxu1 %v7525_v13 }
 0xb39   : > { %v3071_v26 = vpop.f32.mrb[36].mxu0  ;;  %v3114_v35 = vpop.f32.mrb[36].mxu1 }
 0xb3a   : > { %v5181_v58 = vadd.f32 %v3071_v26, %v6983_v11  ;;  %v3073_v24 = vpop.f32.mrb[37].mxu0  ;;  %v3116_v23 = vpop.f32.mrb[37].mxu1  ;;  %v5245_v25 = vadd.f32 %v3114_v35, %v6990_v59 }
 0xb3b   : > { %v5182_v56 = vadd.f32 %v3073_v24, %v6985_v12  ;;  %v3075_v3 = vpop.f32.mrb[38].mxu0  ;;  %v3118_v5 = vpop.f32.mrb[38].mxu1  ;;  %v5246_v50 = vadd.f32 %v3116_v23, %v6993_v2 }
 0xb3c   : > { %v4789_v8 = vmul.f32 -1.442695, %v5181_v58  ;;  %v5183_v22 = vadd.f32 %v3075_v3, %v6983_v11  ;;  %v3077_v34 = vpop.f32.mrb[39].mxu0  ;;  %v3120_v44 = vpop.f32.mrb[39].mxu1  ;;  %v5247_v38 = vadd.f32 %v3118_v5, %v6990_v59  ;;  %v4791_v33 = vmul.f32 -1.442695, %v5245_v25 }
 0xb3d   : > { %v4790_v55 = vmul.f32 -1.442695, %v5182_v56  ;;  %v5184_v15 = vadd.f32 %v3077_v34, %v6985_v12  ;;  %v5248_v16 = vadd.f32 %v3120_v44, %v6993_v2 }
 0xb3e   : > { %5861 = vpow2.f32 %v4789_v8  ;;  %v4792_v28 = vmul.f32 -1.442695, %v5183_v22  ;;  %v4794_v9 = vmul.f32 -1.442695, %v5247_v38 }
 0xb3f   : > { %v4793_v21 = vmul.f32 -1.442695, %v5184_v15  ;;  %5863 = vpow2.f32 %v4790_v55 }
 0xb40   : > { %5865 = vpow2.f32 %v4792_v28 }
 0xb41   : > { %5867 = vpow2.f32 %v4793_v21 }
 0xb42   : > { %5869 = vtanh.f32 %v5246_v50 }
 0xb43   : > { %5871 = vpow2.f32 %v4791_v33  ;;  %v3188_v33 = vpop.permute.xlu0 %3187 }
 0xb44   : > { %5873 = vpow2.f32 %v4794_v9  ;;  %vm3192_vm3 = vcmp.eq.s32.totalorder %v3188_v33, 1 }
 0xb48   : > { %v5862_v43 = vpop.eup %5861 }
 0xb49   : > { %v3149_v26 = vadd.f32 1.0, %v5862_v43  ;;  %v5864_v58 = vpop.eup %5863 }
 0xb4a   : > { %v5866_v24 = vpop.eup %5865  ;;  %v3150_v56 = vadd.f32 1.0, %v5864_v58  ;;  %v3191_v58 = vpop.permute.xlu1 %3190 }
 0xb4b   : > { %5875 = vrcp.f32 %v3149_v26  ;;  %v3152_v35 = vadd.f32 1.0, %v5866_v24  ;;  %v5868_v3 = vpop.eup %5867  ;;  %vm3193_vm4 = vcmp.eq.s32.totalorder %v3191_v58, 1 }
 0xb4c   : > { %5877 = vtanh.f32 %v5248_v16  ;;  %v3153_v5 = vadd.f32 1.0, %v5868_v3  ;;  %v5870_v23 = vpop.eup %5869 }
 0xb4d   : > { %5879 = vrcp.f32 %v3150_v56  ;;  %v5872_v8 = vpop.eup %5871 }
 0xb4e   : > { %5881 = vrcp.f32 %v3152_v35  ;;  %v5874_v22 = vpop.eup %5873  ;;  %v3151_v28 = vadd.f32 1.0, %v5872_v8 }
 0xb4f   : > { %5883 = vrcp.f32 %v3153_v5  ;;  %v3154_v43 = vadd.f32 1.0, %v5874_v22 }
 0xb50   : > { %5885 = vrcp.f32 %v3151_v28 }
 0xb55   : > { %v5876_v34 = vpop.eup %5875 }
 0xb56   : > { %v5878_v55 = vpop.eup %5877  ;;  %v3171_v44 = vmul.f32 %v5876_v34, %v5870_v23 }
 0xb57   : > { %v5880_v15 = vpop.eup %5879 }
 0xb58   : > { %v5882_v21 = vpop.eup %5881  ;;  %v3169_v25 = vmul.f32 %v5880_v15, %v7615_v30 }
 0xb59   : > { %v3172_v38 = vmul.f32 %v5882_v21, %v5878_v55  ;;  %v5884_v50 = vpop.eup %5883 }
 0xb5a   : > { %v3173_v9 = vadd.f32 %v3171_v44, %v3169_v25  ;;  %v3170_v16 = vmul.f32 %v5884_v50, %v7618_v51  ;;  %v5886_v35 = vpop.eup %5885 }
 0xb5c   : > { %5887 = vtanh.f32 %v3173_v9  ;;  %v7676_v26 = vsel %vm3192_vm3, %v3173_v9, %v7615_v30  ;;  %v3174_v24 = vadd.f32 %v3172_v38, %v3170_v16 }
 0xb5d   : > { %5889 = vrcp.f32 %v3154_v43 }
 0xb5e   : > { %5891 = vtanh.f32 %v3174_v24  ;;  %v7679_v56 = vsel %vm3193_vm4, %v3174_v24, %v7618_v51 }
 0xb66   : > { %v5888_v3 = vpop.eup %5887 }
 0xb67   : > { %v3177_v5 = vmul.f32 %v5888_v3, %v5886_v35  ;;  %v5890_v23 = vpop.eup %5889 }
 0xb68   : > { %v5892_v8 = vpop.eup %5891 }
 0xb69   : > { %v3178_v22 = vmul.f32 %v5892_v8, %v5890_v23  ;;  %v7683_v34 = vsel %vm3192_vm3, %v3177_v5, %v7622_v17 }
 0xb6b   : > { %v7686_v30 = vsel %vm3193_vm4, %v3178_v22, %v7625_v10 }
 0xb6c   : > { %v3198_v55 = vpack.c.bf16 %v7686_v30, %v7683_v34 }
 0xb6e   : > { %5123 = vst [vmem:[%s6664_s23 + $0x48] sm:$0xff] %v3198_v55   ;;  %3251 = vmatmul.mubr.bf16.vlgmr.msra.gmra.mrb[40].mxu0 %v3198_v55  ;;  %3294 = vmatmul.mubr.bf16.vlgmr.msra.gmra.mrb[40].mxu1 %v3198_v55 }
 0xb6f   : > { %3400 = vmatpush1.bf16.msra.mxu0 %v7444_v52  ;;  %3443 = vmatpush1.bf16.msra.mxu1 %v7447_v39 }
 0xb70   : > { %3401 = vmatprep.subr.bf16.mxu0 %v7450_v40  ;;  %3444 = vmatprep.subr.bf16.mxu1 %v7453_v4 }
 0xb71   : > { %3431 = vmatprep.mubr.bf16.mxu0 %v6431_v6  ;;  %3474 = vmatprep.mubr.bf16.mxu1 %v6431_v6 }
 0xb73   : > { %3402 = vmatpush1.bf16.msra.mxu0 %v7458_v27  ;;  %3445 = vmatpush1.bf16.msra.mxu1 %v7461_v41 }
 0xb74   : > { %3403 = vmatprep.subr.bf16.mxu0 %v7464_v42  ;;  %3446 = vmatprep.subr.bf16.mxu1 %v7467_v45 }
 0xb77   : > { %3404 = vmatpush1.bf16.msra.mxu0 %v7470_v46  ;;  %3447 = vmatpush1.bf16.msra.mxu1 %v7473_v47 }
 0xb78   : > { %3405 = vmatprep.subr.bf16.mxu0 %v7476_v48  ;;  %3448 = vmatprep.subr.bf16.mxu1 %v7479_v63 }
 0xb7b   : > { %3406 = vmatpush1.bf16.msra.mxu0 %v7482_v0  ;;  %3449 = vmatpush1.bf16.msra.mxu1 %v7485_v49 }
 0xb7c   : > { %3407 = vmatprep.subr.bf16.mxu0 %v7488_v60  ;;  %3450 = vmatprep.subr.bf16.mxu1 %v7491_v61 }
 0xb7f   : > { %3408 = vmatpush1.bf16.msra.mxu0 %v7494_v62  ;;  %3451 = vmatpush1.bf16.msra.mxu1 %v7497_v1 }
 0xb80   : > { %3409 = vmatprep.subr.bf16.mxu0 %v7500_v32  ;;  %3452 = vmatprep.subr.bf16.mxu1 %v7503_v20 }
 0xb83   : > { %3410 = vmatpush1.bf16.msra.mxu0 %v7506_v53  ;;  %3453 = vmatpush1.bf16.msra.mxu1 %v7509_v7 }
 0xb84   : > { %3411 = vmatprep.subr.bf16.mxu0 %v7512_v14  ;;  %3454 = vmatprep.subr.bf16.mxu1 %v7580_v31 }
 0xb87   : > { %3412 = vmatpush1.bf16.msra.mxu0 %v7583_v36  ;;  %3455 = vmatpush1.bf16.msra.mxu1 %v7586_v57 }
 0xb88   : > { %3413 = vmatprep.subr.bf16.mxu0 %v7589_v18  ;;  %3456 = vmatprep.subr.bf16.mxu1 %v7592_v37 }
 0xb8b   : > { %3414 = vmatpush1.bf16.msra.mxu0 %v7595_v19  ;;  %3457 = vmatpush1.bf16.msra.mxu1 %v7598_v29 }
 0xb8c   : > { %3580 = vmatprep.subr.bf16.mxu0 %v7522_v54  ;;  %3623 = vmatprep.subr.bf16.mxu1 %v7525_v13 }
 0xc41   : > { %v3252_v51 = vpop.f32.mrb[40].mxu0  ;;  %v3295_v17 = vpop.f32.mrb[40].mxu1 }
 0xc42   : > { %v5185_v10 = vadd.f32 %v3252_v51, %v6983_v11  ;;  %v3254_v44 = vpop.f32.mrb[41].mxu0  ;;  %v3297_v15 = vpop.f32.mrb[41].mxu1  ;;  %v5249_v35 = vadd.f32 %v3295_v17, %v6990_v59 }
 0xc43   : > { %v5186_v28 = vadd.f32 %v3254_v44, %v6985_v12  ;;  %v3256_v21 = vpop.f32.mrb[42].mxu0  ;;  %v3299_v25 = vpop.f32.mrb[42].mxu1  ;;  %v5250_v5 = vadd.f32 %v3297_v15, %v6993_v2 }
 0xc44   : > { %v4801_v38 = vmul.f32 -1.442695, %v5185_v10  ;;  %v5187_v50 = vadd.f32 %v3256_v21, %v6983_v11  ;;  %v3258_v33 = vpop.f32.mrb[43].mxu0  ;;  %v3301_v9 = vpop.f32.mrb[43].mxu1  ;;  %v5251_v3 = vadd.f32 %v3299_v25, %v6990_v59  ;;  %v4803_v23 = vmul.f32 -1.442695, %v5249_v35 }
 0xc45   : > { %v4802_v43 = vmul.f32 -1.442695, %v5186_v28  ;;  %v5188_v16 = vadd.f32 %v3258_v33, %v6985_v12  ;;  %v5252_v55 = vadd.f32 %v3301_v9, %v6993_v2 }
 0xc46   : > { %5893 = vpow2.f32 %v4801_v38  ;;  %v4804_v58 = vmul.f32 -1.442695, %v5187_v50  ;;  %v4806_v8 = vmul.f32 -1.442695, %v5251_v3 }
 0xc47   : > { %v4805_v24 = vmul.f32 -1.442695, %v5188_v16  ;;  %5895 = vpow2.f32 %v4802_v43 }
 0xc48   : > { %5897 = vpow2.f32 %v4804_v58 }
 0xc49   : > { %5899 = vpow2.f32 %v4805_v24 }
 0xc4a   : > { %5901 = vtanh.f32 %v5250_v5 }
 0xc4b   : > { %5903 = vpow2.f32 %v4803_v23  ;;  %v3369_v23 = vpop.permute.xlu0 %3368 }
 0xc4c   : > { %5905 = vpow2.f32 %v4806_v8  ;;  %vm3373_vm5 = vcmp.eq.s32.totalorder %v3369_v23, 1 }
 0xc50   : > { %v5894_v22 = vpop.eup %5893 }
 0xc51   : > { %v3330_v51 = vadd.f32 1.0, %v5894_v22  ;;  %v5896_v10 = vpop.eup %5895 }
 0xc52   : > { %v5898_v44 = vpop.eup %5897  ;;  %v3331_v28 = vadd.f32 1.0, %v5896_v10  ;;  %v3372_v10 = vpop.permute.xlu1 %3371 }
 0xc53   : > { %5907 = vrcp.f32 %v3330_v51  ;;  %v3333_v17 = vadd.f32 1.0, %v5898_v44  ;;  %v5900_v21 = vpop.eup %5899  ;;  %vm3374_vm6 = vcmp.eq.s32.totalorder %v3372_v10, 1 }
 0xc54   : > { %5909 = vtanh.f32 %v5252_v55  ;;  %v3334_v25 = vadd.f32 1.0, %v5900_v21  ;;  %v5902_v15 = vpop.eup %5901 }
 0xc55   : > { %5911 = vrcp.f32 %v3331_v28  ;;  %v5904_v38 = vpop.eup %5903 }
 0xc56   : > { %5913 = vrcp.f32 %v3333_v17  ;;  %v5906_v50 = vpop.eup %5905  ;;  %v3332_v58 = vadd.f32 1.0, %v5904_v38 }
 0xc57   : > { %5915 = vrcp.f32 %v3334_v25  ;;  %v3335_v22 = vadd.f32 1.0, %v5906_v50 }
 0xc58   : > { %5917 = vrcp.f32 %v3332_v58 }
 0xc5d   : > { %v5908_v33 = vpop.eup %5907 }
 0xc5e   : > { %v5910_v43 = vpop.eup %5909  ;;  %v3352_v9 = vmul.f32 %v5908_v33, %v5902_v15 }
 0xc5f   : > { %v5912_v16 = vpop.eup %5911 }
 0xc60   : > { %v5914_v24 = vpop.eup %5913  ;;  %v3350_v35 = vmul.f32 %v5912_v16, %v7676_v26 }
 0xc61   : > { %v3353_v3 = vmul.f32 %v5914_v24, %v5910_v43  ;;  %v5916_v5 = vpop.eup %5915 }
 0xc62   : > { %v3354_v8 = vadd.f32 %v3352_v9, %v3350_v35  ;;  %v3351_v55 = vmul.f32 %v5916_v5, %v7679_v56  ;;  %v5918_v17 = vpop.eup %5917 }
 0xc64   : > { %5919 = vtanh.f32 %v3354_v8  ;;  %v7737_v51 = vsel %vm3373_vm5, %v3354_v8, %v7676_v26  ;;  %v3355_v44 = vadd.f32 %v3353_v3, %v3351_v55 }
 0xc65   : > { %5921 = vrcp.f32 %v3335_v22 }
 0xc66   : > { %5923 = vtanh.f32 %v3355_v44  ;;  %v7740_v28 = vsel %vm3374_vm6, %v3355_v44, %v7679_v56 }
 0xc6e   : > { %v5920_v21 = vpop.eup %5919 }
 0xc6f   : > { %v3358_v25 = vmul.f32 %v5920_v21, %v5918_v17  ;;  %v5922_v15 = vpop.eup %5921  ;;  %v3550_v21 = vpop.permute.xlu0 %3549 }
 0xc70   : > { %v5924_v38 = vpop.eup %5923  ;;  %vm3554_vm7 = vcmp.eq.s32.totalorder %v3550_v21, 1 }
 0xc71   : > { %v3359_v50 = vmul.f32 %v5924_v38, %v5922_v15  ;;  %v7744_v33 = vsel %vm3373_vm5, %v3358_v25, %v7683_v34 }
 0xc73   : > { %v7747_v26 = vsel %vm3374_vm6, %v3359_v50, %v7686_v30 }
 0xc74   : > { %v3379_v43 = vpack.c.bf16 %v7747_v26, %v7744_v33 }
 0xc76   : > { %5124 = vst [vmem:[%s6664_s23 + $0x50] sm:$0xff] %v3379_v43   ;;  %3432 = vmatmul.mubr.bf16.vlgmr.msra.gmra.mrb[44].mxu0 %v3379_v43  ;;  %3475 = vmatmul.mubr.bf16.vlgmr.msra.gmra.mrb[44].mxu1 %v3379_v43  ;;  %v3553_v43 = vpop.permute.xlu1 %3552 }
 0xc77   : > { %3581 = vmatpush1.bf16.msra.mxu0 %v7444_v52  ;;  %3624 = vmatpush1.bf16.msra.mxu1 %v7447_v39  ;;  %vm3555_vm8 = vcmp.eq.s32.totalorder %v3553_v43, 1 }
 0xc78   : > { %3582 = vmatprep.subr.bf16.mxu0 %v7450_v40  ;;  %3625 = vmatprep.subr.bf16.mxu1 %v7453_v4 }
 0xc79   : > { %3612 = vmatprep.mubr.bf16.mxu0 %v6431_v6  ;;  %3655 = vmatprep.mubr.bf16.mxu1 %v6431_v6 }
 0xc7b   : > { %3583 = vmatpush1.bf16.msra.mxu0 %v7458_v27  ;;  %3626 = vmatpush1.bf16.msra.mxu1 %v7461_v41 }
 0xc7c   : > { %3584 = vmatprep.subr.bf16.mxu0 %v7464_v42  ;;  %3627 = vmatprep.subr.bf16.mxu1 %v7467_v45 }
 0xc7f   : > { %3585 = vmatpush1.bf16.msra.mxu0 %v7470_v46  ;;  %3628 = vmatpush1.bf16.msra.mxu1 %v7473_v47 }
 0xc80   : > { %3586 = vmatprep.subr.bf16.mxu0 %v7476_v48  ;;  %3629 = vmatprep.subr.bf16.mxu1 %v7479_v63 }
 0xc83   : > { %3587 = vmatpush1.bf16.msra.mxu0 %v7482_v0  ;;  %3630 = vmatpush1.bf16.msra.mxu1 %v7485_v49 }
 0xc84   : > { %3588 = vmatprep.subr.bf16.mxu0 %v7488_v60  ;;  %3631 = vmatprep.subr.bf16.mxu1 %v7491_v61 }
 0xc87   : > { %3589 = vmatpush1.bf16.msra.mxu0 %v7494_v62  ;;  %3632 = vmatpush1.bf16.msra.mxu1 %v7497_v1 }
 0xc88   : > { %3590 = vmatprep.subr.bf16.mxu0 %v7500_v32  ;;  %3633 = vmatprep.subr.bf16.mxu1 %v7503_v20 }
 0xc8b   : > { %3591 = vmatpush1.bf16.msra.mxu0 %v7506_v53  ;;  %3634 = vmatpush1.bf16.msra.mxu1 %v7509_v7 }
 0xc8c   : > { %3592 = vmatprep.subr.bf16.mxu0 %v7512_v14  ;;  %3635 = vmatprep.subr.bf16.mxu1 %v7580_v31 }
 0xc8f   : > { %3593 = vmatpush1.bf16.msra.mxu0 %v7583_v36  ;;  %3636 = vmatpush1.bf16.msra.mxu1 %v7586_v57 }
 0xc90   : > { %3594 = vmatprep.subr.bf16.mxu0 %v7589_v18  ;;  %3637 = vmatprep.subr.bf16.mxu1 %v7592_v37 }
 0xc93   : > { %3595 = vmatpush1.bf16.msra.mxu0 %v7595_v19  ;;  %3638 = vmatpush1.bf16.msra.mxu1 %v7598_v29 }
 0xc94   : > { %3761 = vmatprep.subr.bf16.mxu0 %v7522_v54  ;;  %3804 = vmatprep.subr.bf16.mxu1 %v7525_v13 }
 0xd49   : > { %v3433_v52 = vpop.f32.mrb[44].mxu0  ;;  %v3476_v39 = vpop.f32.mrb[44].mxu1 }
 0xd4a   : > { %v5189_v40 = vadd.f32 %v3433_v52, %v6983_v11  ;;  %v3435_v4 = vpop.f32.mrb[45].mxu0  ;;  %v3478_v27 = vpop.f32.mrb[45].mxu1  ;;  %v5253_v62 = vadd.f32 %v3476_v39, %v6990_v59 }
 0xd4b   : > { %v5190_v41 = vadd.f32 %v3435_v4, %v6985_v12  ;;  %v3437_v42 = vpop.f32.mrb[46].mxu0  ;;  %v3480_v45 = vpop.f32.mrb[46].mxu1  ;;  %v5254_v32 = vadd.f32 %v3478_v27, %v6993_v2 }
 0xd4c   : > { %v4813_v46 = vmul.f32 -1.442695, %v5189_v40  ;;  %v5191_v47 = vadd.f32 %v3437_v42, %v6983_v11  ;;  %v3439_v48 = vpop.f32.mrb[47].mxu0  ;;  %v3482_v63 = vpop.f32.mrb[47].mxu1  ;;  %v5255_v1 = vadd.f32 %v3480_v45, %v6990_v59  ;;  %v4815_v20 = vmul.f32 -1.442695, %v5253_v62 }
 0xd4d   : > { %v4814_v0 = vmul.f32 -1.442695, %v5190_v41  ;;  %v5192_v49 = vadd.f32 %v3439_v48, %v6985_v12  ;;  %v5256_v14 = vadd.f32 %v3482_v63, %v6993_v2  ;;  %v7816_v48 = vld [vmem:[#allocation12 + $0x8] ss:$16 sps:$4 sm:$0xff]   ;;  %v7819_v63 = vld [vmem:[#allocation12 + $0x24] ss:$16 sps:$4 sm:$0xff]  }
 0xd4e   : > { %5925 = vpow2.f32 %v4813_v46  ;;  %v4816_v60 = vmul.f32 -1.442695, %v5191_v47  ;;  %v4818_v53 = vmul.f32 -1.442695, %v5255_v1  ;;  %v7842_v62 = vld [vmem:[#allocation12 + $0x48] ss:$16 sps:$4 sm:$0xff]  }
 0xd4f   : > { %v4817_v61 = vmul.f32 -1.442695, %v5192_v49  ;;  %5927 = vpow2.f32 %v4814_v0  ;;  %v7830_v0 = vld [vmem:[#allocation12 + $0x28] ss:$16 sps:$4 sm:$0xff]   ;;  %v7833_v49 = vld [vmem:[#allocation12 + $0x44] ss:$16 sps:$4 sm:$0xff]  }
 0xd50   : > { %5929 = vpow2.f32 %v4816_v60  ;;  %v7836_v60 = vld [vmem:[#allocation12 + $0x4c] ss:$16 sps:$4 sm:$0xff]   ;;  %v7845_v1 = vld [vmem:[#allocation12 + $0x64] ss:$16 sps:$4 sm:$0xff]  }
 0xd51   : > { %5931 = vpow2.f32 %v4817_v61  ;;  %v7839_v61 = vld [vmem:[#allocation12 + $0x40] ss:$16 sps:$4 sm:$0xff]  }
 0xd52   : > { %5933 = vtanh.f32 %v5254_v32  ;;  %v7848_v32 = vld [vmem:[#allocation12 + $0x6c] ss:$16 sps:$4 sm:$0xff]  }
 0xd53   : > { %5935 = vpow2.f32 %v4815_v20  ;;  %v7851_v20 = vld [vmem:[#allocation12 + $0x60] ss:$16 sps:$4 sm:$0xff]  }
 0xd54   : > { %5937 = vpow2.f32 %v4818_v53  ;;  %v7854_v53 = vld [vmem:[#allocation12 + $0x68] ss:$16 sps:$4 sm:$0xff]  }
 0xd58   : > { %v5926_v7 = vpop.eup %5925 }
 0xd59   : > { %v3511_v54 = vadd.f32 1.0, %v5926_v7  ;;  %v5928_v13 = vpop.eup %5927  ;;  %v7857_v7 = vld [vmem:[#allocation12 + $0x84] ss:$16 sps:$4 sm:$0xff]  }
 0xd5a   : > { %v5930_v56 = vpop.eup %5929  ;;  %v3512_v34 = vadd.f32 1.0, %v5928_v13  ;;  %v7866_v13 = vld [vmem:[#allocation12 + $0x88] ss:$16 sps:$4 sm:$0xff]  }
 0xd5b   : > { %5939 = vrcp.f32 %v3511_v54  ;;  %v3514_v30 = vadd.f32 1.0, %v5930_v56  ;;  %v5932_v9 = vpop.eup %5931  ;;  %v7863_v54 = vld [vmem:[#allocation12 + $0x80] ss:$16 sps:$4 sm:$0xff]   ;;  %v7869_v56 = vld [vmem:[#allocation12 + $0xa4] ss:$16 sps:$4 sm:$0xff]  }
 0xd5c   : > { %5941 = vtanh.f32 %v5256_v14  ;;  %v3515_v16 = vadd.f32 1.0, %v5932_v9  ;;  %v5934_v58 = vpop.eup %5933  ;;  %v7860_v14 = vld [vmem:[#allocation12 + $0x8c] ss:$16 sps:$4 sm:$0xff]   ;;  %v7878_v9 = vld [vmem:[#allocation12 + $0xa8] ss:$16 sps:$4 sm:$0xff]  }
 0xd5d   : > { %5943 = vrcp.f32 %v3512_v34  ;;  %v5936_v24 = vpop.eup %5935  ;;  %v7872_v34 = vld [vmem:[#allocation12 + $0xac] ss:$16 sps:$4 sm:$0xff]  }
 0xd5e   : > { %5945 = vrcp.f32 %v3514_v30  ;;  %v5938_v35 = vpop.eup %5937  ;;  %v3513_v22 = vadd.f32 1.0, %v5936_v24  ;;  %v7875_v30 = vld [vmem:[#allocation12 + $0xa0] ss:$16 sps:$4 sm:$0xff]   ;;  %v7894_v24 = vld [vmem:[#allocation12 + $0xc] ss:$16 sps:$4 sm:$0xff]  }
 0xd5f   : > { %5947 = vrcp.f32 %v3515_v16  ;;  %v3516_v15 = vadd.f32 1.0, %v5938_v35  ;;  %v7881_v16 = vld [vmem:[#allocation12 + $0xc4] ss:$16 sps:$4 sm:$0xff]  }
 0xd60   : > { %5949 = vrcp.f32 %v3513_v22 }
 0xd65   : > { %v5940_v3 = vpop.eup %5939 }
 0xd66   : > { %v5942_v5 = vpop.eup %5941  ;;  %v3533_v23 = vmul.f32 %v5940_v3, %v5934_v58  ;;  %v7891_v58 = vld [vmem:[#allocation12 + $0x4] ss:$16 sps:$4 sm:$0xff]  }
 0xd67   : > { %v5944_v8 = vpop.eup %5943 }
 0xd68   : > { %v5946_v55 = vpop.eup %5945  ;;  %v3531_v10 = vmul.f32 %v5944_v8, %v7737_v51 }
 0xd69   : > { %v3534_v44 = vmul.f32 %v5946_v55, %v5942_v5  ;;  %v5948_v17 = vpop.eup %5947 }
 0xd6a   : > { %v3535_v25 = vadd.f32 %v3533_v23, %v3531_v10  ;;  %v3532_v38 = vmul.f32 %v5948_v17, %v7740_v28  ;;  %v5950_v40 = vpop.eup %5949 }
 0xd6c   : > { %5951 = vtanh.f32 %v3535_v25  ;;  %v7798_v50 = vsel %vm3554_vm7, %v3535_v25, %v7737_v51  ;;  %v3536_v52 = vadd.f32 %v3534_v44, %v3532_v38 }
 0xd6d   : > { %5953 = vrcp.f32 %v3516_v15 }
 0xd6e   : > { %5955 = vtanh.f32 %v3536_v52  ;;  %v7801_v39 = vsel %vm3555_vm8, %v3536_v52, %v7740_v28  ;;  %v7813_v28 = vld [vmem:[#allocation12] ss:$16 sps:$4 sm:$0xff]  }
 0xd76   : > { %v5952_v4 = vpop.eup %5951 }
 0xd77   : > { %v3539_v27 = vmul.f32 %v5952_v4, %v5950_v40  ;;  %v5954_v41 = vpop.eup %5953 }
 0xd78   : > { %v5956_v42 = vpop.eup %5955 }
 0xd79   : > { %v3540_v45 = vmul.f32 %v5956_v42, %v5954_v41  ;;  %v7805_v46 = vsel %vm3554_vm7, %v3539_v27, %v7744_v33  ;;  %v7822_v33 = vld [vmem:[#allocation12 + $0x2c] ss:$16 sps:$4 sm:$0xff]  }
 0xd7b   : > { %v7808_v51 = vsel %vm3555_vm8, %v3540_v45, %v7747_v26  ;;  %v7827_v26 = vld [vmem:[#allocation12 + $0x20] ss:$16 sps:$4 sm:$0xff]  }
 0xd7c   : > { %v3560_v47 = vpack.c.bf16 %v7808_v51, %v7805_v46 }
 0xd7e   : > { %5125 = vst [vmem:[%s6664_s23 + $0x58] sm:$0xff] %v3560_v47   ;;  %3613 = vmatmul.mubr.bf16.vlgmr.msra.gmra.mrb[48].mxu0 %v3560_v47  ;;  %3656 = vmatmul.mubr.bf16.vlgmr.msra.gmra.mrb[48].mxu1 %v3560_v47 }
 0xd7f   : > { %3762 = vmatpush1.bf16.msra.mxu0 %v7813_v28  ;;  %3805 = vmatpush1.bf16.msra.mxu1 %v7816_v48 }
 0xd80   : > { %3763 = vmatprep.subr.bf16.mxu0 %v7819_v63  ;;  %3806 = vmatprep.subr.bf16.mxu1 %v7822_v33 }
 0xd81   : > { %3793 = vmatprep.mubr.bf16.mxu0 %v6431_v6  ;;  %3836 = vmatprep.mubr.bf16.mxu1 %v6431_v6 }
 0xd83   : > { %3764 = vmatpush1.bf16.msra.mxu0 %v7827_v26  ;;  %3807 = vmatpush1.bf16.msra.mxu1 %v7830_v0 }
 0xd84   : > { %3765 = vmatprep.subr.bf16.mxu0 %v7833_v49  ;;  %3808 = vmatprep.subr.bf16.mxu1 %v7836_v60 }
 0xd87   : > { %3766 = vmatpush1.bf16.msra.mxu0 %v7839_v61  ;;  %3809 = vmatpush1.bf16.msra.mxu1 %v7842_v62 }
 0xd88   : > { %3767 = vmatprep.subr.bf16.mxu0 %v7845_v1  ;;  %3810 = vmatprep.subr.bf16.mxu1 %v7848_v32 }
 0xd8b   : > { %3768 = vmatpush1.bf16.msra.mxu0 %v7851_v20  ;;  %3811 = vmatpush1.bf16.msra.mxu1 %v7854_v53 }
 0xd8c   : > { %3769 = vmatprep.subr.bf16.mxu0 %v7857_v7  ;;  %3812 = vmatprep.subr.bf16.mxu1 %v7860_v14 }
 0xd8f   : > { %3770 = vmatpush1.bf16.msra.mxu0 %v7863_v54  ;;  %3813 = vmatpush1.bf16.msra.mxu1 %v7866_v13 }
 0xd90   : > { %3771 = vmatprep.subr.bf16.mxu0 %v7869_v56  ;;  %3814 = vmatprep.subr.bf16.mxu1 %v7872_v34 }
 0xd93   : > { %3772 = vmatpush1.bf16.msra.mxu0 %v7875_v30  ;;  %3815 = vmatpush1.bf16.msra.mxu1 %v7878_v9 }
 0xd94   : > { %3773 = vmatprep.subr.bf16.mxu0 %v7881_v16  ;;  %3816 = vmatprep.subr.bf16.mxu1 %v7580_v31 }
 0xd97   : > { %3774 = vmatpush1.bf16.msra.mxu0 %v7583_v36  ;;  %3817 = vmatpush1.bf16.msra.mxu1 %v7586_v57 }
 0xd98   : > { %3775 = vmatprep.subr.bf16.mxu0 %v7589_v18  ;;  %3818 = vmatprep.subr.bf16.mxu1 %v7592_v37 }
 0xd9b   : > { %3776 = vmatpush1.bf16.msra.mxu0 %v7595_v19  ;;  %3819 = vmatpush1.bf16.msra.mxu1 %v7598_v29 }
 0xd9c   : > { %3942 = vmatprep.subr.bf16.mxu0 %v7891_v58  ;;  %3985 = vmatprep.subr.bf16.mxu1 %v7894_v24 }
 0xe51   : > { %v3614_v31 = vpop.f32.mrb[48].mxu0  ;;  %v3657_v36 = vpop.f32.mrb[48].mxu1 }
 0xe52   : > { %v5193_v57 = vadd.f32 %v3614_v31, %v6983_v11  ;;  %v3616_v35 = vpop.f32.mrb[49].mxu0  ;;  %v3659_v18 = vpop.f32.mrb[49].mxu1  ;;  %v5257_v17 = vadd.f32 %v3657_v36, %v6990_v59 }
 0xe53   : > { %v5194_v37 = vadd.f32 %v3616_v35, %v6985_v12  ;;  %v3618_v3 = vpop.f32.mrb[50].mxu0  ;;  %v3661_v19 = vpop.f32.mrb[50].mxu1  ;;  %v5258_v25 = vadd.f32 %v3659_v18, %v6993_v2 }
 0xe54   : > { %v4825_v5 = vmul.f32 -1.442695, %v5193_v57  ;;  %v5195_v29 = vadd.f32 %v3618_v3, %v6983_v11  ;;  %v3620_v23 = vpop.f32.mrb[51].mxu0  ;;  %v3663_v8 = vpop.f32.mrb[51].mxu1  ;;  %v5259_v21 = vadd.f32 %v3661_v19, %v6990_v59  ;;  %v4827_v15 = vmul.f32 -1.442695, %v5257_v17 }
 0xe55   : > { %v4826_v22 = vmul.f32 -1.442695, %v5194_v37  ;;  %v5196_v55 = vadd.f32 %v3620_v23, %v6985_v12  ;;  %v5260_v52 = vadd.f32 %v3663_v8, %v6993_v2 }
 0xe56   : > { %5957 = vpow2.f32 %v4825_v5  ;;  %v4828_v10 = vmul.f32 -1.442695, %v5195_v29  ;;  %v4830_v38 = vmul.f32 -1.442695, %v5259_v21  ;;  %v3734_v21 = vpop.permute.xlu1 %3733 }
 0xe57   : > { %v4829_v44 = vmul.f32 -1.442695, %v5196_v55  ;;  %5959 = vpow2.f32 %v4826_v22  ;;  %v3731_v22 = vpop.permute.xlu0 %3730  ;;  %vm3736_vm10 = vcmp.eq.s32.totalorder %v3734_v21, 1 }
 0xe58   : > { %5961 = vpow2.f32 %v4828_v10  ;;  %vm3735_vm9 = vcmp.eq.s32.totalorder %v3731_v22, 1 }
 0xe59   : > { %5963 = vpow2.f32 %v4829_v44 }
 0xe5a   : > { %5965 = vtanh.f32 %v5258_v25 }
 0xe5b   : > { %5967 = vpow2.f32 %v4827_v15 }
 0xe5c   : > { %5969 = vpow2.f32 %v4830_v38 }
 0xe60   : > { %v5958_v43 = vpop.eup %5957 }
 0xe61   : > { %v3692_v40 = vadd.f32 1.0, %v5958_v43  ;;  %v5960_v4 = vpop.eup %5959 }
 0xe62   : > { %v5962_v27 = vpop.eup %5961  ;;  %v3693_v41 = vadd.f32 1.0, %v5960_v4 }
 0xe63   : > { %5971 = vrcp.f32 %v3692_v40  ;;  %v3695_v42 = vadd.f32 1.0, %v5962_v27  ;;  %v5964_v45 = vpop.eup %5963 }
 0xe64   : > { %5973 = vtanh.f32 %v5260_v52  ;;  %v3696_v47 = vadd.f32 1.0, %v5964_v45  ;;  %v5966_v31 = vpop.eup %5965  ;;  %v7958_v45 = vld [vmem:[#allocation12 + $0xe4] ss:$16 sps:$4 sm:$0xff]  }
 0xe65   : > { %5975 = vrcp.f32 %v3693_v41  ;;  %v5968_v36 = vpop.eup %5967 }
 0xe66   : > { %5977 = vrcp.f32 %v3695_v42  ;;  %v5970_v57 = vpop.eup %5969  ;;  %v3694_v19 = vadd.f32 1.0, %v5968_v36  ;;  %v7967_v36 = vld [vmem:[#allocation12 + $0xe8] ss:$16 sps:$4 sm:$0xff]  }
 0xe67   : > { %5979 = vrcp.f32 %v3696_v47  ;;  %v3697_v10 = vadd.f32 1.0, %v5970_v57  ;;  %v7961_v47 = vld [vmem:[#allocation12 + $0xec] ss:$16 sps:$4 sm:$0xff]  }
 0xe68   : > { %5981 = vrcp.f32 %v3694_v19 }
 0xe6d   : > { %v5972_v35 = vpop.eup %5971 }
 0xe6e   : > { %v5974_v18 = vpop.eup %5973  ;;  %v3714_v37 = vmul.f32 %v5972_v35, %v5966_v31  ;;  %v7964_v31 = vld [vmem:[#allocation12 + $0xe0] ss:$16 sps:$4 sm:$0xff]  }
 0xe6f   : > { %v5976_v3 = vpop.eup %5975 }
 0xe70   : > { %v5978_v5 = vpop.eup %5977  ;;  %v3712_v29 = vmul.f32 %v5976_v3, %v7798_v50 }
 0xe71   : > { %v3715_v23 = vmul.f32 %v5978_v5, %v5974_v18  ;;  %v5980_v8 = vpop.eup %5979 }
 0xe72   : > { %v3716_v55 = vadd.f32 %v3714_v37, %v3712_v29  ;;  %v3713_v44 = vmul.f32 %v5980_v8, %v7801_v39  ;;  %v5982_v38 = vpop.eup %5981 }
 0xe74   : > { %5983 = vtanh.f32 %v3716_v55  ;;  %v7909_v17 = vsel %vm3735_vm9, %v3716_v55, %v7798_v50  ;;  %v3717_v25 = vadd.f32 %v3715_v23, %v3713_v44 }
 0xe75   : > { %5985 = vrcp.f32 %v3697_v10 }
 0xe76   : > { %5987 = vtanh.f32 %v3717_v25  ;;  %v7912_v15 = vsel %vm3736_vm10, %v3717_v25, %v7801_v39  ;;  %v7949_v39 = vld [vmem:[#allocation12 + $0xcc] ss:$16 sps:$4 sm:$0xff]  }
 0xe7e   : > { %v5984_v43 = vpop.eup %5983 }
 0xe7f   : > { %v3720_v52 = vmul.f32 %v5984_v43, %v5982_v38  ;;  %v5986_v40 = vpop.eup %5985 }
 0xe80   : > { %v5988_v4 = vpop.eup %5987 }
 0xe81   : > { %v3721_v27 = vmul.f32 %v5988_v4, %v5986_v40  ;;  %v7916_v41 = vsel %vm3735_vm9, %v3720_v52, %v7805_v46  ;;  %v7952_v46 = vld [vmem:[#allocation12 + $0xc0] ss:$16 sps:$4 sm:$0xff]  }
 0xe83   : > { %v7919_v50 = vsel %vm3736_vm10, %v3721_v27, %v7808_v51  ;;  %v7955_v51 = vld [vmem:[#allocation12 + $0xc8] ss:$16 sps:$4 sm:$0xff]  }
 0xe84   : > { %v3741_v42 = vpack.c.bf16 %v7919_v50, %v7916_v41 }
 0xe86   : > { %5126 = vst [vmem:[%s6664_s23 + $0x60] sm:$0xff] %v3741_v42   ;;  %3794 = vmatmul.mubr.bf16.vlgmr.msra.gmra.mrb[52].mxu0 %v3741_v42  ;;  %3837 = vmatmul.mubr.bf16.vlgmr.msra.gmra.mrb[52].mxu1 %v3741_v42 }
 0xe87   : > { %3943 = vmatpush1.bf16.msra.mxu0 %v7813_v28  ;;  %3986 = vmatpush1.bf16.msra.mxu1 %v7816_v48 }
 0xe88   : > { %3944 = vmatprep.subr.bf16.mxu0 %v7819_v63  ;;  %3987 = vmatprep.subr.bf16.mxu1 %v7822_v33 }
 0xe89   : > { %3974 = vmatprep.mubr.bf16.mxu0 %v6431_v6  ;;  %4017 = vmatprep.mubr.bf16.mxu1 %v6431_v6 }
 0xe8b   : > { %3945 = vmatpush1.bf16.msra.mxu0 %v7827_v26  ;;  %3988 = vmatpush1.bf16.msra.mxu1 %v7830_v0 }
 0xe8c   : > { %3946 = vmatprep.subr.bf16.mxu0 %v7833_v49  ;;  %3989 = vmatprep.subr.bf16.mxu1 %v7836_v60 }
 0xe8f   : > { %3947 = vmatpush1.bf16.msra.mxu0 %v7839_v61  ;;  %3990 = vmatpush1.bf16.msra.mxu1 %v7842_v62 }
 0xe90   : > { %3948 = vmatprep.subr.bf16.mxu0 %v7845_v1  ;;  %3991 = vmatprep.subr.bf16.mxu1 %v7848_v32 }
 0xe93   : > { %3949 = vmatpush1.bf16.msra.mxu0 %v7851_v20  ;;  %3992 = vmatpush1.bf16.msra.mxu1 %v7854_v53 }
 0xe94   : > { %3950 = vmatprep.subr.bf16.mxu0 %v7857_v7  ;;  %3993 = vmatprep.subr.bf16.mxu1 %v7860_v14 }
 0xe97   : > { %3951 = vmatpush1.bf16.msra.mxu0 %v7863_v54  ;;  %3994 = vmatpush1.bf16.msra.mxu1 %v7866_v13 }
 0xe98   : > { %3952 = vmatprep.subr.bf16.mxu0 %v7869_v56  ;;  %3995 = vmatprep.subr.bf16.mxu1 %v7872_v34 }
 0xe9b   : > { %3953 = vmatpush1.bf16.msra.mxu0 %v7875_v30  ;;  %3996 = vmatpush1.bf16.msra.mxu1 %v7878_v9 }
 0xe9c   : > { %3954 = vmatprep.subr.bf16.mxu0 %v7881_v16  ;;  %3997 = vmatprep.subr.bf16.mxu1 %v7949_v39 }
 0xe9f   : > { %3955 = vmatpush1.bf16.msra.mxu0 %v7952_v46  ;;  %3998 = vmatpush1.bf16.msra.mxu1 %v7955_v51 }
 0xea0   : > { %3956 = vmatprep.subr.bf16.mxu0 %v7958_v45  ;;  %3999 = vmatprep.subr.bf16.mxu1 %v7961_v47 }
 0xea3   : > { %3957 = vmatpush1.bf16.msra.mxu0 %v7964_v31  ;;  %4000 = vmatpush1.bf16.msra.mxu1 %v7967_v36 }
 0xea4   : > { %4123 = vmatprep.subr.bf16.mxu0 %v7891_v58  ;;  %4166 = vmatprep.subr.bf16.mxu1 %v7894_v24 }
 0xf59   : > { %v3795_v57 = vpop.f32.mrb[52].mxu0  ;;  %v3838_v35 = vpop.f32.mrb[52].mxu1 }
 0xf5a   : > { %v5197_v18 = vadd.f32 %v3795_v57, %v6983_v11  ;;  %v3797_v37 = vpop.f32.mrb[53].mxu0  ;;  %v3840_v3 = vpop.f32.mrb[53].mxu1  ;;  %v5261_v21 = vadd.f32 %v3838_v35, %v6990_v59 }
 0xf5b   : > { %v5198_v19 = vadd.f32 %v3797_v37, %v6985_v12  ;;  %v3799_v5 = vpop.f32.mrb[54].mxu0  ;;  %v3842_v29 = vpop.f32.mrb[54].mxu1  ;;  %v5262_v38 = vadd.f32 %v3840_v3, %v6993_v2 }
 0xf5c   : > { %v4837_v23 = vmul.f32 -1.442695, %v5197_v18  ;;  %v5199_v8 = vadd.f32 %v3799_v5, %v6983_v11  ;;  %v3801_v22 = vpop.f32.mrb[55].mxu0  ;;  %v3844_v55 = vpop.f32.mrb[55].mxu1  ;;  %v5263_v25 = vadd.f32 %v3842_v29, %v6990_v59  ;;  %v4839_v43 = vmul.f32 -1.442695, %v5261_v21 }
 0xf5d   : > { %v4838_v10 = vmul.f32 -1.442695, %v5198_v19  ;;  %v5200_v58 = vadd.f32 %v3801_v22, %v6985_v12  ;;  %v5264_v4 = vadd.f32 %v3844_v55, %v6993_v2 }
 0xf5e   : > { %5989 = vpow2.f32 %v4837_v23  ;;  %v4840_v24 = vmul.f32 -1.442695, %v5199_v8  ;;  %v4842_v52 = vmul.f32 -1.442695, %v5263_v25  ;;  %v3912_v25 = vpop.permute.xlu0 %3911 }
 0xf5f   : > { %v4841_v44 = vmul.f32 -1.442695, %v5200_v58  ;;  %5991 = vpow2.f32 %v4838_v10  ;;  %vm3916_vm11 = vcmp.eq.s32.totalorder %v3912_v25, 1 }
 0xf60   : > { %5993 = vpow2.f32 %v4840_v24 }
 0xf61   : > { %5995 = vpow2.f32 %v4841_v44 }
 0xf62   : > { %5997 = vtanh.f32 %v5262_v38 }
 0xf63   : > { %5999 = vpow2.f32 %v4839_v43 }
 0xf64   : > { %6001 = vpow2.f32 %v4842_v52 }
 0xf68   : > { %v5990_v40 = vpop.eup %5989 }
 0xf69   : > { %v3873_v27 = vadd.f32 1.0, %v5990_v40  ;;  %v5992_v42 = vpop.eup %5991 }
 0xf6a   : > { %v5994_v57 = vpop.eup %5993  ;;  %v3874_v18 = vadd.f32 1.0, %v5992_v42 }
 0xf6b   : > { %6003 = vrcp.f32 %v3873_v27  ;;  %v3876_v35 = vadd.f32 1.0, %v5994_v57  ;;  %v5996_v37 = vpop.eup %5995 }
 0xf6c   : > { %6005 = vtanh.f32 %v5264_v4  ;;  %v3877_v19 = vadd.f32 1.0, %v5996_v37  ;;  %v5998_v3 = vpop.eup %5997  ;;  %v3915_v4 = vpop.permute.xlu1 %3914 }
 0xf6d   : > { %6007 = vrcp.f32 %v3874_v18  ;;  %v6000_v5 = vpop.eup %5999  ;;  %vm3917_vm12 = vcmp.eq.s32.totalorder %v3915_v4, 1 }
 0xf6e   : > { %6009 = vrcp.f32 %v3876_v35  ;;  %v6002_v29 = vpop.eup %6001  ;;  %v3875_v10 = vadd.f32 1.0, %v6000_v5 }
 0xf6f   : > { %6011 = vrcp.f32 %v3877_v19  ;;  %v3878_v43 = vadd.f32 1.0, %v6002_v29 }
 0xf70   : > { %6013 = vrcp.f32 %v3875_v10  ;;  %v4096_v4 = vpop.permute.xlu1 %4095 }
 0xf71   : > { %vm4098_vm14 = vcmp.eq.s32.totalorder %v4096_v4, 1 }
 0xf75   : > { %v6004_v23 = vpop.eup %6003 }
 0xf76   : > { %v6006_v8 = vpop.eup %6005  ;;  %v3895_v22 = vmul.f32 %v6004_v23, %v5998_v3 }
 0xf77   : > { %v6008_v55 = vpop.eup %6007 }
 0xf78   : > { %v6010_v58 = vpop.eup %6009  ;;  %v3893_v24 = vmul.f32 %v6008_v55, %v7909_v17 }
 0xf79   : > { %v3896_v44 = vmul.f32 %v6010_v58, %v6006_v8  ;;  %v6012_v21 = vpop.eup %6011 }
 0xf7a   : > { %v3897_v38 = vadd.f32 %v3895_v22, %v3893_v24  ;;  %v3894_v52 = vmul.f32 %v6012_v21, %v7912_v15  ;;  %v6014_v57 = vpop.eup %6013  ;;  %v4093_v21 = vpop.permute.xlu0 %4092 }
 0xf7b   : > { %vm4097_vm13 = vcmp.eq.s32.totalorder %v4093_v21, 1 }
 0xf7c   : > { %6015 = vtanh.f32 %v3897_v38  ;;  %v7984_v40 = vsel %vm3916_vm11, %v3897_v38, %v7909_v17  ;;  %v3898_v27 = vadd.f32 %v3896_v44, %v3894_v52 }
 0xf7d   : > { %6017 = vrcp.f32 %v3878_v43 }
 0xf7e   : > { %6019 = vtanh.f32 %v3898_v27  ;;  %v7987_v42 = vsel %vm3917_vm12, %v3898_v27, %v7912_v15 }
 0xf86   : > { %v6016_v18 = vpop.eup %6015 }
 0xf87   : > { %v3901_v35 = vmul.f32 %v6016_v18, %v6014_v57  ;;  %v6018_v37 = vpop.eup %6017 }
 0xf88   : > { %v6020_v19 = vpop.eup %6019 }
 0xf89   : > { %v3902_v3 = vmul.f32 %v6020_v19, %v6018_v37  ;;  %v7991_v5 = vsel %vm3916_vm11, %v3901_v35, %v7916_v41 }
 0xf8b   : > { %v7994_v17 = vsel %vm3917_vm12, %v3902_v3, %v7919_v50 }
 0xf8c   : > { %v3922_v29 = vpack.c.bf16 %v7994_v17, %v7991_v5 }
 0xf8e   : > { %5127 = vst [vmem:[%s6664_s23 + $0x68] sm:$0xff] %v3922_v29   ;;  %3975 = vmatmul.mubr.bf16.vlgmr.msra.gmra.mrb[56].mxu0 %v3922_v29  ;;  %4018 = vmatmul.mubr.bf16.vlgmr.msra.gmra.mrb[56].mxu1 %v3922_v29 }
 0xf8f   : > { %4124 = vmatpush1.bf16.msra.mxu0 %v7813_v28  ;;  %4167 = vmatpush1.bf16.msra.mxu1 %v7816_v48 }
 0xf90   : > { %4125 = vmatprep.subr.bf16.mxu0 %v7819_v63  ;;  %4168 = vmatprep.subr.bf16.mxu1 %v7822_v33 }
 0xf91   : > { %4155 = vmatprep.mubr.bf16.mxu0 %v6431_v6  ;;  %4198 = vmatprep.mubr.bf16.mxu1 %v6431_v6 }
 0xf93   : > { %4126 = vmatpush1.bf16.msra.mxu0 %v7827_v26  ;;  %4169 = vmatpush1.bf16.msra.mxu1 %v7830_v0 }
 0xf94   : > { %4127 = vmatprep.subr.bf16.mxu0 %v7833_v49  ;;  %4170 = vmatprep.subr.bf16.mxu1 %v7836_v60 }
 0xf97   : > { %4128 = vmatpush1.bf16.msra.mxu0 %v7839_v61  ;;  %4171 = vmatpush1.bf16.msra.mxu1 %v7842_v62 }
 0xf98   : > { %4129 = vmatprep.subr.bf16.mxu0 %v7845_v1  ;;  %4172 = vmatprep.subr.bf16.mxu1 %v7848_v32 }
 0xf9b   : > { %4130 = vmatpush1.bf16.msra.mxu0 %v7851_v20  ;;  %4173 = vmatpush1.bf16.msra.mxu1 %v7854_v53 }
 0xf9c   : > { %4131 = vmatprep.subr.bf16.mxu0 %v7857_v7  ;;  %4174 = vmatprep.subr.bf16.mxu1 %v7860_v14 }
 0xf9f   : > { %4132 = vmatpush1.bf16.msra.mxu0 %v7863_v54  ;;  %4175 = vmatpush1.bf16.msra.mxu1 %v7866_v13 }
 0xfa0   : > { %4133 = vmatprep.subr.bf16.mxu0 %v7869_v56  ;;  %4176 = vmatprep.subr.bf16.mxu1 %v7872_v34 }
 0xfa3   : > { %4134 = vmatpush1.bf16.msra.mxu0 %v7875_v30  ;;  %4177 = vmatpush1.bf16.msra.mxu1 %v7878_v9 }
 0xfa4   : > { %4135 = vmatprep.subr.bf16.mxu0 %v7881_v16  ;;  %4178 = vmatprep.subr.bf16.mxu1 %v7949_v39 }
 0xfa7   : > { %4136 = vmatpush1.bf16.msra.mxu0 %v7952_v46  ;;  %4179 = vmatpush1.bf16.msra.mxu1 %v7955_v51 }
 0xfa8   : > { %4137 = vmatprep.subr.bf16.mxu0 %v7958_v45  ;;  %4180 = vmatprep.subr.bf16.mxu1 %v7961_v47 }
 0xfab   : > { %4138 = vmatpush1.bf16.msra.mxu0 %v7964_v31  ;;  %4181 = vmatpush1.bf16.msra.mxu1 %v7967_v36 }
0x1061   : > { %v3976_v6 = vpop.f32.mrb[56].mxu0  ;;  %v4019_v28 = vpop.f32.mrb[56].mxu1 }
0x1062   : > { %v5201_v48 = vadd.f32 %v3976_v6, %v6983_v11  ;;  %v3978_v63 = vpop.f32.mrb[57].mxu0  ;;  %v4021_v33 = vpop.f32.mrb[57].mxu1  ;;  %v5265_v14 = vadd.f32 %v4019_v28, %v6990_v59 }
0x1063   : > { %v5202_v26 = vadd.f32 %v3978_v63, %v6985_v12  ;;  %v3980_v0 = vpop.f32.mrb[58].mxu0  ;;  %v4023_v49 = vpop.f32.mrb[58].mxu1  ;;  %v5266_v13 = vadd.f32 %v4021_v33, %v6993_v2 }
0x1064   : > { %v4849_v60 = vmul.f32 -1.442695, %v5201_v48  ;;  %v5203_v61 = vadd.f32 %v3980_v0, %v6983_v11  ;;  %v3982_v62 = vpop.f32.mrb[59].mxu0  ;;  %v4025_v1 = vpop.f32.mrb[59].mxu1  ;;  %v5267_v54 = vadd.f32 %v4023_v49, %v6990_v59  ;;  %v4851_v56 = vmul.f32 -1.442695, %v5265_v14 }
0x1065   : > { %v4850_v32 = vmul.f32 -1.442695, %v5202_v26  ;;  %v5204_v20 = vadd.f32 %v3982_v62, %v6985_v12  ;;  %v5268_v9 = vadd.f32 %v4025_v1, %v6993_v2 }
0x1066   : > { %6021 = vpow2.f32 %v4849_v60  ;;  %v4852_v53 = vmul.f32 -1.442695, %v5203_v61  ;;  %v4854_v34 = vmul.f32 -1.442695, %v5267_v54 }
0x1067   : > { %v4853_v7 = vmul.f32 -1.442695, %v5204_v20  ;;  %6023 = vpow2.f32 %v4850_v32 }
0x1068   : > { %6025 = vpow2.f32 %v4852_v53 }
0x1069   : > { %6027 = vpow2.f32 %v4853_v7 }
0x106a   : > { %6029 = vtanh.f32 %v5266_v13 }
0x106b   : > { %6031 = vpow2.f32 %v4851_v56 }
0x106c   : > { %6033 = vpow2.f32 %v4854_v34 }
0x1070   : > { %v6022_v30 = vpop.eup %6021 }
0x1071   : > { %v4054_v16 = vadd.f32 1.0, %v6022_v30  ;;  %v6024_v15 = vpop.eup %6023 }
0x1072   : > { %v6026_v41 = vpop.eup %6025  ;;  %v4055_v50 = vadd.f32 1.0, %v6024_v15 }
0x1073   : > { %6035 = vrcp.f32 %v4054_v16  ;;  %v4057_v39 = vadd.f32 1.0, %v6026_v41  ;;  %v6028_v46 = vpop.eup %6027 }
0x1074   : > { %6037 = vtanh.f32 %v5268_v9  ;;  %v4058_v51 = vadd.f32 1.0, %v6028_v46  ;;  %v6030_v45 = vpop.eup %6029 }
0x1075   : > { %6039 = vrcp.f32 %v4055_v50  ;;  %v6032_v47 = vpop.eup %6031 }
0x1076   : > { %6041 = vrcp.f32 %v4057_v39  ;;  %v6034_v31 = vpop.eup %6033  ;;  %v4056_v55 = vadd.f32 1.0, %v6032_v47 }
0x1077   : > { %6043 = vrcp.f32 %v4058_v51  ;;  %v4059_v38 = vadd.f32 1.0, %v6034_v31 }
0x1078   : > { %6045 = vrcp.f32 %v4056_v55 }
0x107d   : > { %v6036_v36 = vpop.eup %6035 }
0x107e   : > { %v6038_v23 = vpop.eup %6037  ;;  %v4076_v8 = vmul.f32 %v6036_v36, %v6030_v45 }
0x107f   : > { %v6040_v22 = vpop.eup %6039 }
0x1080   : > { %v6042_v10 = vpop.eup %6041  ;;  %v4074_v58 = vmul.f32 %v6040_v22, %v7984_v40 }
0x1081   : > { %v4077_v24 = vmul.f32 %v6042_v10, %v6038_v23  ;;  %v6044_v44 = vpop.eup %6043  ;;  %v4274_v23 = vpop.permute.xlu0 %4273 }
0x1082   : > { %v4078_v25 = vadd.f32 %v4076_v8, %v4074_v58  ;;  %v4075_v43 = vmul.f32 %v6044_v44, %v7987_v42  ;;  %v6046_v18 = vpop.eup %6045  ;;  %vm4278_vm15 = vcmp.eq.s32.totalorder %v4274_v23, 1 }
0x1084   : > { %6047 = vtanh.f32 %v4078_v25  ;;  %v8043_v52 = vsel %vm4097_vm13, %v4078_v25, %v7984_v40  ;;  %v4079_v27 = vadd.f32 %v4077_v24, %v4075_v43  ;;  %v4277_v24 = vpop.permute.xlu1 %4276 }
0x1085   : > { %6049 = vrcp.f32 %v4059_v38  ;;  %vm4279_vm1 = vcmp.eq.s32.totalorder %v4277_v24, 1 }
0x1086   : > { %6051 = vtanh.f32 %v4079_v27  ;;  %v8046_v57 = vsel %vm4098_vm14, %v4079_v27, %v7987_v42 }
0x108e   : > { %v6048_v35 = vpop.eup %6047 }
0x108f   : > { %v4082_v37 = vmul.f32 %v6048_v35, %v6046_v18  ;;  %v6050_v19 = vpop.eup %6049 }
0x1090   : > { %v6052_v3 = vpop.eup %6051 }
0x1091   : > { %v4083_v29 = vmul.f32 %v6052_v3, %v6050_v19  ;;  %v8050_v6 = vsel %vm4097_vm13, %v4082_v37, %v7991_v5 }
0x1093   : > { %v8053_v40 = vsel %vm4098_vm14, %v4083_v29, %v7994_v17 }
0x1094   : > { %v4103_v28 = vpack.c.bf16 %v8053_v40, %v8050_v6 }
0x1096   : > { %5128 = vst [vmem:[%s6664_s23 + $0x70] sm:$0xff] %v4103_v28   ;;  %4156 = vmatmul.mubr.bf16.vlgmr.msra.gmra.mrb[60].mxu0 %v4103_v28  ;;  %4199 = vmatmul.mubr.bf16.vlgmr.msra.gmra.mrb[60].mxu1 %v4103_v28 }
0x1169   : > { %v4157_v42 = vpop.f32.mrb[60].mxu0  ;;  %v4200_v48 = vpop.f32.mrb[60].mxu1 }
0x116a   : > { %v5205_v63 = vadd.f32 %v4157_v42, %v6983_v11  ;;  %v4159_v33 = vpop.f32.mrb[61].mxu0  ;;  %v4202_v26 = vpop.f32.mrb[61].mxu1  ;;  %v5269_v7 = vadd.f32 %v4200_v48, %v6990_v59 }
0x116b   : > { %v5206_v0 = vadd.f32 %v4159_v33, %v6985_v12  ;;  %v4161_v49 = vpop.f32.mrb[62].mxu0  ;;  %v4204_v5 = vpop.f32.mrb[62].mxu1  ;;  %v5270_v54 = vadd.f32 %v4202_v26, %v6993_v2 }
0x116c   : > { %v4861_v60 = vmul.f32 -1.442695, %v5205_v63  ;;  %v5207_v17 = vadd.f32 %v4161_v49, %v6983_v11  ;;  %v4163_v61 = vpop.f32.mrb[63].mxu0  ;;  %v4206_v62 = vpop.f32.mrb[63].mxu1  ;;  %v5271_v14 = vadd.f32 %v4204_v5, %v6990_v59  ;;  %v4863_v13 = vmul.f32 -1.442695, %v5269_v7 }
0x116d   : > { %v4862_v1 = vmul.f32 -1.442695, %v5206_v0  ;;  %v5208_v32 = vadd.f32 %v4163_v61, %v6985_v12  ;;  %v5272_v34 = vadd.f32 %v4206_v62, %v6993_v2 }
0x116e   : > { %6053 = vpow2.f32 %v4861_v60  ;;  %v4864_v20 = vmul.f32 -1.442695, %v5207_v17  ;;  %v4866_v56 = vmul.f32 -1.442695, %v5271_v14 }
0x116f   : > { %v4865_v53 = vmul.f32 -1.442695, %v5208_v32  ;;  %6055 = vpow2.f32 %v4862_v1 }
0x1170   : > { %6057 = vpow2.f32 %v4864_v20 }
0x1171   : > { %6059 = vpow2.f32 %v4865_v53 }
0x1172   : > { %6061 = vtanh.f32 %v5270_v54 }
0x1173   : > { %6063 = vpow2.f32 %v4863_v13 }
0x1174   : > { %6065 = vpow2.f32 %v4866_v56 }
0x1178   : > { %v6054_v11 = vpop.eup %6053 }
0x1179   : > { %v4235_v30 = vadd.f32 1.0, %v6054_v11  ;;  %v6056_v12 = vpop.eup %6055 }
0x117a   : > { %v6058_v9 = vpop.eup %6057  ;;  %v4236_v16 = vadd.f32 1.0, %v6056_v12 }
0x117b   : > { %6067 = vrcp.f32 %v4235_v30  ;;  %v4238_v15 = vadd.f32 1.0, %v6058_v9  ;;  %v6060_v41 = vpop.eup %6059 }
0x117c   : > { %6069 = vtanh.f32 %v5272_v34  ;;  %v4239_v59 = vadd.f32 1.0, %v6060_v41  ;;  %v6062_v50 = vpop.eup %6061 }
0x117d   : > { %6071 = vrcp.f32 %v4236_v16  ;;  %v6064_v39 = vpop.eup %6063 }
0x117e   : > { %6073 = vrcp.f32 %v4238_v15  ;;  %v6066_v46 = vpop.eup %6065  ;;  %v4237_v31 = vadd.f32 1.0, %v6064_v39 }
0x117f   : > { %6075 = vrcp.f32 %v4239_v59  ;;  %v4240_v58 = vadd.f32 1.0, %v6066_v46 }
0x1180   : > { %6077 = vrcp.f32 %v4237_v31 }
0x1185   : > { %v6068_v51 = vpop.eup %6067 }
0x1186   : > { %v6070_v45 = vpop.eup %6069  ;;  %v4257_v2 = vmul.f32 %v6068_v51, %v6062_v50 }
0x1187   : > { %v6072_v47 = vpop.eup %6071 }
0x1188   : > { %v6074_v36 = vpop.eup %6073  ;;  %v4255_v8 = vmul.f32 %v6072_v47, %v8043_v52 }
0x1189   : > { %v4258_v22 = vmul.f32 %v6074_v36, %v6070_v45  ;;  %v6076_v55 = vpop.eup %6075 }
0x118a   : > { %v4259_v10 = vadd.f32 %v4257_v2, %v4255_v8  ;;  %v4256_v44 = vmul.f32 %v6076_v55, %v8046_v57  ;;  %v6078_v43 = vpop.eup %6077 }
0x118c   : > { %6079 = vtanh.f32 %v4259_v10  ;;  %v4282_v21 = vsel %vm4278_vm15, %v4259_v10, %v8043_v52  ;;  %v4260_v25 = vadd.f32 %v4258_v22, %v4256_v44 }
0x118d   : > { %4297 = vst [vmem:[#allocation4] sm:$0xff] %v4282_v21  ;;  %6081 = vrcp.f32 %v4240_v58 }
0x118e   : > { %6083 = vtanh.f32 %v4260_v25  ;;  %v4283_v38 = vsel %vm4279_vm1, %v4260_v25, %v8046_v57 }
0x118f   : > { %4298 = vst [vmem:[#allocation4 + $0x8] sm:$0xff] %v4283_v38 }
0x1196   : > { %v6080_v4 = vpop.eup %6079 }
0x1197   : > { %v4263_v27 = vmul.f32 %v6080_v4, %v6078_v43  ;;  %v6082_v18 = vpop.eup %6081 }
0x1198   : > { %v6084_v35 = vpop.eup %6083 }
0x1199   : > { %v4280_v37 = vsel %vm4278_vm15, %v4263_v27, %v8050_v6  ;;  %v4264_v19 = vmul.f32 %v6084_v35, %v6082_v18 }
0x119a   : > { %4295 = vst [vmem:[#allocation3] sm:$0xff] %v4280_v37 }
0x119b   : > { %v4281_v52 = vsel %vm4279_vm1, %v4264_v19, %v8053_v40 }
0x119c   : > { %v5033_v3 = vpack.c.bf16 %v4281_v52, %v4280_v37  ;;  %4296 = vst [vmem:[#allocation3 + $0x8] sm:$0xff] %v4281_v52 }
0x119e   : > { %5129 = vst [vmem:[%s6664_s23 + $0x78] sm:$0xff] %v5033_v3  }
0x119f PF: > { %p4873_p1 = scmp.gt.s32.totalorder %s6675_s12, 0 }
0x11a1   : > { %4302 = sbr.rel (%p4873_p1) target bundleno = 4526 (0x11ae), region = 72  ;;  %v4303_v57 = vld [vmem:[#allocation3] sm:$0xff] (!%p4873_p1) }
0x11a3   : > { %v4304_v29 = vld [vmem:[#allocation3 + $0x8] sm:$0xff] (!%p4873_p1) }
0x11a4   : > { %v5038_v6 = vpack.c.bf16 (!%p4873_p1), %v4304_v29, %v4303_v57 }
0x11a6   : > { %5039 = vst [vmem:[%s6664_s23] sm:$0xff] (!%p4873_p1), %v5038_v6   ;;  %5130 = vst [vmem:[%s6664_s23 + $0x8] sm:$0xff] (!%p4873_p1), %v5038_v6  }
0x11a7   : > { %5131 = vst [vmem:[%s6664_s23 + $0x10] sm:$0xff] (!%p4873_p1), %v5038_v6   ;;  %5132 = vst [vmem:[%s6664_s23 + $0x18] sm:$0xff] (!%p4873_p1), %v5038_v6  }
0x11a8   : > { %5133 = vst [vmem:[%s6664_s23 + $0x20] sm:$0xff] %v5038_v6   ;;  %5134 = vst [vmem:[%s6664_s23 + $0x28] sm:$0xff] %v5038_v6  }
0x11a9   : > { %5135 = vst [vmem:[%s6664_s23 + $0x30] sm:$0xff] %v5038_v6   ;;  %5136 = vst [vmem:[%s6664_s23 + $0x38] sm:$0xff] %v5038_v6  }
0x11aa   : > { %5137 = vst [vmem:[%s6664_s23 + $0x40] sm:$0xff] %v5038_v6   ;;  %5138 = vst [vmem:[%s6664_s23 + $0x48] sm:$0xff] %v5038_v6  }
0x11ab   : > { %5139 = vst [vmem:[%s6664_s23 + $0x50] sm:$0xff] %v5038_v6   ;;  %5140 = vst [vmem:[%s6664_s23 + $0x58] sm:$0xff] %v5038_v6  }
0x11ac   : > { %5141 = vst [vmem:[%s6664_s23 + $0x60] sm:$0xff] %v5038_v6   ;;  %5142 = vst [vmem:[%s6664_s23 + $0x68] sm:$0xff] %v5038_v6  }
0x11ad   : > { %5143 = vst [vmem:[%s6664_s23 + $0x70] sm:$0xff] %v5038_v6   ;;  %5144 = vst [vmem:[%s6664_s23 + $0x78] sm:$0xff] %v5038_v6  }
0x11ae PF: > { %p4906_p2 = scmp.ne.s32.totalorder %s6413_s20, 1 }
0x11af   : > { %v4364_v40 = vld [vmem:[#allocation3] sm:$0xff] (!%p4906_p2)  ;;  %v4365_v28 = vld [vmem:[#allocation3 + $0x8] sm:$0xff] (!%p4906_p2)  ;;  %v4368_v42 = vld [vmem:[#allocation4] sm:$0xff] (!%p4906_p2) }
0x11b0   : > { %4363 = sbr.rel (%p4906_p2) target bundleno = 4535 (0x11b7), region = 76  ;;  %4366 = vst [vmem:[#allocation14] sm:$0xff] (!%p4906_p2), %v4364_v40  ;;  %4367 = vst [vmem:[#allocation14 + $0x8] sm:$0xff] (!%p4906_p2), %v4365_v28  ;;  %v4369_v48 = vld [vmem:[#allocation4 + $0x8] sm:$0xff] (!%p4906_p2) }
0x11b1   : > { %4370 = vst [vmem:[#allocation16] sm:$0xff] (!%p4906_p2), %v4368_v42  ;;  %4371 = vst [vmem:[#allocation16 + $0x8] sm:$0xff] (!%p4906_p2), %v4369_v48 }
0x11b7 PF: > { %s6432_s22 = smov [#allocation14]   ;;  %p8242_p8 = scmp.ne.s32.totalorder %s8227_s27, 0 }
0x11b8   : > { %s4405_s11 = sshll.u32 %s6432_s22, 4  ;;  %s4406_s11 = int_to_ptr.vmem [resolvable:$true] %s4405_s11 }
0x11b9   : > { %s6277_s26 = scalar_lea.vmem %s4406_s11, 256  ;;  %p6284_p12 = scmp.lt.s32.totalorder %s4406_s11, %s4406_s11 }
0x11ba   : > { %p6278_p5 = scmp.ne.s32.totalorder %s4406_s11, %s6277_s26  ;;  %p6285_p0 = scmp.lt.s32.totalorder %s6277_s26, %s6277_s26 }
0x11bc   : > { %p6279_p10 = pnand %p6278_p5, %p8242_p8  ;;  %p6286_p3 = por %p6285_p0, %p6284_p12 }
0x11be   : > { %p6280_p11 = pneg %p6279_p10 }
0x11c0   : > { %p6287_p7 = pnand %p6286_p3, %p6280_p11 }
0x11c2   : > { %6290 = shalt.err (!%p6287_p7)
}
0x11c3   : > { %s6291_s17 = scalar_lea.hbm %s8205_s9, 256 }
0x11c4   : > { %p6292_p6 = scmp.ne.s32.totalorder %s8205_s9, %s6291_s17  ;;  %p6297_p13 = scmp.lt.u32.totalorder %s6291_s17, %s8205_s9 }
0x11c6   : > { %p6293_p4 = pnand %p6292_p6, %p8242_p8 }
0x11c8   : > { %p6294_p9 = pneg %p6293_p4 }
0x11ca   : > { %p6299_p1 = pnand %p6297_p13, %p6294_p9 }
0x11cc   : > { %6302 = shalt.err (!%p6299_p1)
}
0x11cd   : > { %s6433_s5 = smov 128   ;;  %s6434_s25 = smov 8  }
0x11ce   : > { %5415 = dma.vmem_to_hbm [thread:$0]  (%p8242_p8), %s4406_s11, 256, %s8205_s9, [#allocation15], %s6433_s5, %s6433_s5, %s6434_s25  }
0x11cf   : > { %s4954_s15 = sshll.u32 %s6413_s20, 11  ;;  %s4389_s29 = sshll.u32 %s6664_s23, 4  ;;  %s8121_s29 = int_to_ptr.vmem [resolvable:$true] %s4389_s29 }
0x11d0   : > { %s8118_s26 = scalar_lea.hbm %s8204_s8, %s4954_s15  ;;  %s8125_s13 = scalar_lea.sflag [#allocation9], %s457_s16 }
0x11d1   : > { %s6303_s17 = scalar_lea.vmem %s8121_s29, 2048  ;;  %p8243_p5 = scmp.ne.s32.totalorder %s8229_s28, 0 }
0x11d2   : > { %p6304_p2 = scmp.ne.s32.totalorder %s8121_s29, %s6303_s17  ;;  %s6435_s20 = smov [#allocation13]  }
0x11d3   : > { %s6307_s11 = sshll.u32 %s6435_s20, 4  ;;  %s6308_s11 = int_to_ptr.vmem [resolvable:$false] %s6307_s11 }
0x11d4   : > { %p6305_p10 = pnand %p6304_p2, %p8243_p5  ;;  %s6309_s19 = scalar_lea.vmem %s6308_s11, 4096 }
0x11d5   : > { %p6310_p12 = scmp.lt.s32.totalorder %s8121_s29, %s6308_s11  ;;  %p6311_p0 = scmp.lt.s32.totalorder %s6309_s19, %s6303_s17 }
0x11d6   : > { %p6306_p11 = pneg %p6305_p10 }
0x11d7   : > { %p6312_p3 = por %p6311_p0, %p6310_p12 }
0x11d9   : > { %p6313_p7 = pnand %p6312_p3, %p6306_p11 }
0x11db   : > { %6316 = shalt.err (!%p6313_p7)
}
0x11dc   : > { %s6317_s16 = scalar_lea.hbm %s8118_s26, 2048  ;;  %s6321_s21 = scalar_lea.hbm %s8204_s8, 4096 }
0x11dd   : > { %p6318_p6 = scmp.ne.s32.totalorder %s8118_s26, %s6317_s16  ;;  %p6322_p13 = scmp.lt.u32.totalorder %s8118_s26, %s8204_s8 }
0x11de   : > { %p6323_p1 = scmp.lt.u32.totalorder %s6321_s21, %s6317_s16  ;;  %p6325_p10 = scmp.lt.u32.totalorder %s6317_s16, %s8118_s26 }
0x11df   : > { %p6319_p4 = pnand %p6318_p6, %p8243_p5 }
0x11e0   : > { %p6324_p2 = por %p6323_p1, %p6322_p13 }
0x11e1   : > { %p6320_p9 = pneg %p6319_p4 }
0x11e2   : > { %p6326_p11 = por %p6325_p10, %p6324_p2 }
0x11e4   : > { %p6327_p12 = pnand %p6326_p11, %p6320_p9 }
0x11e6   : > { %6330 = shalt.err (!%p6327_p12)
}
0x11e7   : > { %s6436_s12 = smov 64   ;;  %s6437_s15 = smov 4  }
0x11e8   : > { %5413 = dma.vmem_to_hbm [thread:$0]  (%p8243_p5), %s8121_s29, 2048, %s8118_s26, %s8125_s13, %s6436_s12, %s6436_s12, %s6437_s15  }
0x11e9   : > { %s6438_s18 = smov [#allocation16]  }
0x11ea   : > { %s4421_s22 = sshll.u32 %s6438_s18, 4  ;;  %s4422_s22 = int_to_ptr.vmem [resolvable:$true] %s4421_s22 }
0x11eb   : > { %s6331_s17 = scalar_lea.vmem %s4422_s22, 256  ;;  %p6338_p6 = scmp.lt.s32.totalorder %s4422_s22, %s4422_s22 }
0x11ec   : > { %p6332_p0 = scmp.ne.s32.totalorder %s4422_s22, %s6331_s17  ;;  %p6339_p4 = scmp.lt.s32.totalorder %s6331_s17, %s6331_s17 }
0x11ee   : > { %p6333_p3 = pnand %p6332_p0, %p8242_p8  ;;  %p6340_p9 = por %p6339_p4, %p6338_p6 }
0x11f0   : > { %p6334_p7 = pneg %p6333_p3 }
0x11f2   : > { %p6341_p13 = pnand %p6340_p9, %p6334_p7 }
0x11f4   : > { %6344 = shalt.err (!%p6341_p13)
}
0x11f5   : > { %s6345_s19 = scalar_lea.hbm %s8206_s10, 256 }
0x11f6   : > { %p6346_p5 = scmp.ne.s32.totalorder %s8206_s10, %s6345_s19  ;;  %p6351_p10 = scmp.lt.u32.totalorder %s6345_s19, %s8206_s10 }
0x11f8   : > { %p6347_p1 = pnand %p6346_p5, %p8242_p8 }
0x11fa   : > { %p6348_p2 = pneg %p6347_p1 }
0x11fc   : > { %p6353_p11 = pnand %p6351_p10, %p6348_p2 }
0x11fe   : > { %6356 = shalt.err (!%p6353_p11)
}
0x11ff   : > { %5417 = dma.vmem_to_hbm [thread:$0]  (%p8242_p8), %s4422_s22, 256, %s8206_s10, [#allocation15], %s6433_s5, %s6433_s5, %s6434_s25  }
0x1200   : > { %6392 = dma.done.wait (%p8242_p8), [#allocation15], 512  }
0x1201   : > { %6394 = vsyncadd (%p8242_p8), [#allocation15], 4294966784 }
0x1202 PF: > { %s8244_s24 = sld [smem:[#allocation25_spill]]  ;;  %s8245_s21 = sld [smem:[#allocation22_spill]] }
0x1203   : > { %s8246_s30 = sld [smem:[#allocation27_spill]] }
0x1208   : > { %p5447_p12 = scmp.ge.s32.totalorder %s8244_s24, 2  ;;  %s4444_s14 = sand.u32 1, %s8245_s21  }
0x1209   : > { %p8247_p0 = scmp.ne.s32.totalorder %s8246_s30, 0  ;;  %s4445_s12 = scalar_lea.sflag [#allocation9], %s4444_s14 }
0x120b   : > { %p5434_p3 = pnand %p5447_p12, %p8247_p0 }
0x120d   : > { %6396 = dma.done.wait (!%p5434_p3), %s4445_s12, 2048  }
0x120e   : > { %6398 = vsyncadd (!%p5434_p3), %s4445_s12, 4294965248  ;;  %s33_s22 = sadd.s32 1, %s8244_s24   ;;  %s8248_s5 = sld [smem:[#allocation23_spill]] }
0x120f   : > { %p30_p7 = scmp.ge.s32.totalorder %s33_s22, 4   ;;  %s8249_s19 = sld [smem:[#allocation28_spill]] }
0x1210   : > { %s8250_s20 = sld [smem:[#allocation24_spill]]  ;;  %s8251_s21 = sld [smem:[#allocation26_spill]] }
0x1211   : > { %s8252_s18 = smov %s6405_s0  ;;  %32 = sbr.rel (!%p30_p7) target bundleno = 22 (0x16), region = 197 }
0x1214   : > { %s8253_s0 = smov %s8248_s5 }
0x1218   :  { %4450 = vsyncpa [#allocation8], 1 }
0x1219   :  { %4452 = vsyncpa [#allocation8 + $0x1], 1 }
0x121a   :  { %4453 = vsyncpa [#allocation11], 1 }
0x121b   :  { %4454 = vsyncpa [#allocation9], 1 }
0x121c   :  { %4456 = vsyncpa [#allocation9 + $0x1], 1 }
0x121d   :  { %4457 = vsyncpa [#allocation15], 1 }

</bundles_post_ra>
